<compile_context>
chip_gen: v6e
topology: v6e:2x2x1
jax: 0.10.0
libtpu: 0.0.40
codegen_flags: <defaults>
</compile_context>

<pallas_src>
import functools
import math

import jax
import jax.numpy as jnp
from jax.experimental import pallas as pl
from jax.experimental.pallas import tpu as pltpu

DTYPE = jnp.bfloat16
NUM_HEADS = 4
PROP_OUT_DIM = 1      # true property-output width; padded to 128 lanes inside the kernel
LN_EPS = 1e-5
NEG_INF = -1e9        # finite large-negative mask bias in f32 (avoids inf-inf NaNs)


def _pick_tile(dim, pref):
    """Largest tile <= pref that divides dim; full dim if the array is small."""
    if dim <= pref:
        return dim
    t = pref
    while t > 8 and dim % t:
        t //= 2
    return t if dim % t == 0 else dim


# ---------------------------------------------------------------------------
# Kernel 1: tiled matmul with fused bias (+ optional ReLU) epilogue.
#   bf16 operands -> MXU, f32 accumulator in VMEM scratch over the K grid axis.
# ---------------------------------------------------------------------------
def _matmul_kernel(a_ref, b_ref, bias_ref, o_ref, acc_ref, *, activation):
    @pl.when(pl.program_id(2) == 0)
    def _():
        acc_ref[...] = jnp.zeros(acc_ref.shape, jnp.float32)

    acc_ref[...] += jnp.dot(a_ref[...], b_ref[...],
                            preferred_element_type=jnp.float32)

    @pl.when(pl.program_id(2) == pl.num_programs(2) - 1)
    def _():
        out = acc_ref[...] + bias_ref[...].astype(jnp.float32)
        if activation == "relu":
            out = jnp.maximum(out, 0.0)
        o_ref[...] = out.astype(o_ref.dtype)


def pallas_matmul(a, w, bias, activation=None, tm_pref=256, tn_pref=256, tk_pref=256):
    """a: (M, K) bf16, w: (K, N) bf16, bias: (1, N) f32 -> (M, N) bf16."""
    M, K = a.shape
    K2, N = w.shape
    assert K == K2
    tm = _pick_tile(M, tm_pref)
    tn = _pick_tile(N, tn_pref)
    tk = _pick_tile(K, tk_pref)
    grid = (M // tm, N // tn, K // tk)
    kernel = functools.partial(_matmul_kernel, activation=activation)
    return pl.pallas_call(
        kernel,
        out_shape=jax.ShapeDtypeStruct((M, N), DTYPE),
        grid_spec=pltpu.PrefetchScalarGridSpec(
            num_scalar_prefetch=0,
            grid=grid,
            in_specs=[
                pl.BlockSpec((tm, tk), lambda i, j, k: (i, k)),
                pl.BlockSpec((tk, tn), lambda i, j, k: (k, j)),
                pl.BlockSpec((1, tn), lambda i, j, k: (0, j)),
            ],
            out_specs=pl.BlockSpec((tm, tn), lambda i, j, k: (i, j)),
            scratch_shapes=[pltpu.VMEM((tm, tn), jnp.float32)],
        ),
        compiler_params=pltpu.CompilerParams(
            dimension_semantics=("parallel", "parallel", "arbitrary")),
    )(a, w, bias)


# ---------------------------------------------------------------------------
# Kernel 2: fused matmul + bias + residual add + LayerNorm epilogue.
#   LayerNorm is over the full model dim, so the N axis is kept as a single
#   (full-width) block; grid = (M tiles [parallel], K tiles [arbitrary]).
#   Saves a separate add+LN pass over (M, D) in HBM (used twice per layer).
# ---------------------------------------------------------------------------
def _matmul_res_ln_kernel(a_ref, w_ref, bias_ref, res_ref, g_ref, b_ref, o_ref, acc_ref):
    @pl.when(pl.program_id(1) == 0)
    def _():
        acc_ref[...] = jnp.zeros(acc_ref.shape, jnp.float32)

    acc_ref[...] += jnp.dot(a_ref[...], w_ref[...],
                            preferred_element_type=jnp.float32)

    @pl.when(pl.program_id(1) == pl.num_programs(1) - 1)
    def _():
        x = acc_ref[...] + bias_ref[...] + res_ref[...].astype(jnp.float32)
        mu = jnp.mean(x, axis=-1, keepdims=True)
        xc = x - mu
        var = jnp.mean(xc * xc, axis=-1, keepdims=True)
        inv = jax.lax.rsqrt(var + LN_EPS)                        # EUP
        o_ref[...] = (xc * inv * g_ref[...] + b_ref[...]).astype(o_ref.dtype)


def pallas_matmul_res_ln(a, w, bias, res, gamma, beta, tm_pref=256, tk_pref=512):
    """a: (M, K) bf16, w: (K, N) bf16, bias/gamma/beta: (1, N) f32,
    res: (M, N) bf16 -> LayerNorm(a @ w + bias + res): (M, N) bf16."""
    M, K = a.shape
    K2, N = w.shape
    assert K == K2 and res.shape == (M, N)
    tm = _pick_tile(M, tm_pref)
    tk = _pick_tile(K, tk_pref)
    grid = (M // tm, K // tk)
    return pl.pallas_call(
        _matmul_res_ln_kernel,
        out_shape=jax.ShapeDtypeStruct((M, N), DTYPE),
        grid_spec=pltpu.PrefetchScalarGridSpec(
            num_scalar_prefetch=0,
            grid=grid,
            in_specs=[
                pl.BlockSpec((tm, tk), lambda i, k: (i, k)),
                pl.BlockSpec((tk, N), lambda i, k: (k, 0)),
                pl.BlockSpec((1, N), lambda i, k: (0, 0)),
                pl.BlockSpec((tm, N), lambda i, k: (i, 0)),
                pl.BlockSpec((1, N), lambda i, k: (0, 0)),
                pl.BlockSpec((1, N), lambda i, k: (0, 0)),
            ],
            out_specs=pl.BlockSpec((tm, N), lambda i, k: (i, 0)),
            scratch_shapes=[pltpu.VMEM((tm, N), jnp.float32)],
        ),
        compiler_params=pltpu.CompilerParams(
            dimension_semantics=("parallel", "arbitrary")),
    )(a, w, bias, res, gamma, beta)


# ---------------------------------------------------------------------------
# Kernel 3: flash-style (online softmax) multi-head attention with key-padding mask.
#   Grid: (q tiles [parallel], kv tiles [arbitrary]); f32 m/l/acc scratch in VMEM.
# ---------------------------------------------------------------------------
def _flash_attn_kernel(q_ref, k_ref, v_ref, bias_ref, o_ref, m_sc, l_sc, acc_sc, *, scale):
    kv = pl.program_id(1)

    @pl.when(kv == 0)
    def _():
        m_sc[...] = jnp.full(m_sc.shape, -1e30, jnp.float32)
        l_sc[...] = jnp.zeros(l_sc.shape, jnp.float32)
        acc_sc[...] = jnp.zeros(acc_sc.shape, jnp.float32)

    q = q_ref[...]                      # (BH, tq, Dh) bf16
    k = k_ref[...]                      # (BH, tk, Dh) bf16
    v = v_ref[...]                      # (BH, tk, Dh) bf16
    s = jnp.einsum("bqd,bkd->bqk", q, k,
                   preferred_element_type=jnp.float32)          # f32 scores on the MXU
    s = s * scale + bias_ref[...]                                # length mask (f32, -1e9)

    m_prev = m_sc[...]
    m_new = jnp.maximum(m_prev, s.max(-1, keepdims=True))
    alpha = jnp.exp(m_prev - m_new)                              # EUP, f32
    p = jnp.exp(s - m_new)                                       # EUP, f32
    l_sc[...] = alpha * l_sc[...] + p.sum(-1, keepdims=True)
    acc_sc[...] = alpha * acc_sc[...] + jnp.einsum(
        "bqk,bkd->bqd", p.astype(v.dtype), v,
        preferred_element_type=jnp.float32)
    m_sc[...] = m_new

    @pl.when(kv == pl.num_programs(1) - 1)
    def _():
        inv_l = pl.reciprocal(l_sc[...], approx=True)            # EUP slot, ~free
        o_ref[...] = (acc_sc[...] * inv_l).astype(o_ref.dtype)


def pallas_mha(q, k, v, key_bias, *, tq_pref=256, tk_pref=256):
    """q,k,v: (B*H, S, Dh) bf16; key_bias: (B*H, 1, S) f32 -> (B*H, S, Dh) bf16."""
    BH, S, Dh = q.shape
    scale = 1.0 / math.sqrt(Dh)
    tq = _pick_tile(S, tq_pref)
    tk = _pick_tile(S, tk_pref)
    grid = (S // tq, S // tk)
    kernel = functools.partial(_flash_attn_kernel, scale=scale)
    return pl.pallas_call(
        kernel,
        out_shape=jax.ShapeDtypeStruct((BH, S, Dh), DTYPE),
        grid_spec=pltpu.PrefetchScalarGridSpec(
            num_scalar_prefetch=0,
            grid=grid,
            in_specs=[
                pl.BlockSpec((BH, tq, Dh), lambda qi, ki: (0, qi, 0)),
                pl.BlockSpec((BH, tk, Dh), lambda qi, ki: (0, ki, 0)),
                pl.BlockSpec((BH, tk, Dh), lambda qi, ki: (0, ki, 0)),
                pl.BlockSpec((BH, 1, tk), lambda qi, ki: (0, 0, ki)),
            ],
            out_specs=pl.BlockSpec((BH, tq, Dh), lambda qi, ki: (0, qi, 0)),
            scratch_shapes=[
                pltpu.VMEM((BH, tq, 1), jnp.float32),   # running max
                pltpu.VMEM((BH, tq, 1), jnp.float32),   # running sum
                pltpu.VMEM((BH, tq, Dh), jnp.float32),  # output accumulator
            ],
        ),
        compiler_params=pltpu.CompilerParams(
            dimension_semantics=("parallel", "arbitrary")),
    )(q, k, v, key_bias)


# ---------------------------------------------------------------------------
# Kernel 4: fused residual add + LayerNorm over rows (f32 math, bf16 in/out).
#   Used once, for embedding + positional-encoding -> LayerNorm_emb.
# ---------------------------------------------------------------------------
def _add_ln_kernel(x_ref, r_ref, g_ref, b_ref, o_ref):
    x = x_ref[...].astype(jnp.float32) + r_ref[...].astype(jnp.float32)
    mu = jnp.mean(x, axis=-1, keepdims=True)
    xc = x - mu
    var = jnp.mean(xc * xc, axis=-1, keepdims=True)
    inv = jax.lax.rsqrt(var + LN_EPS)                            # EUP
    y = xc * inv * g_ref[...] + b_ref[...]
    o_ref[...] = y.astype(o_ref.dtype)


def pallas_add_layernorm(x, res, gamma, beta, rows_pref=256):
    """x,res: (R, D) bf16; gamma,beta: (1, D) f32 -> (R, D) bf16."""
    R, D = x.shape
    tr = _pick_tile(R, rows_pref)
    grid = (R // tr,)
    return pl.pallas_call(
        _add_ln_kernel,
        out_shape=jax.ShapeDtypeStruct((R, D), DTYPE),
        grid_spec=pltpu.PrefetchScalarGridSpec(
            num_scalar_prefetch=0,
            grid=grid,
            in_specs=[
                pl.BlockSpec((tr, D), lambda i: (i, 0)),
                pl.BlockSpec((tr, D), lambda i: (i, 0)),
                pl.BlockSpec((1, D), lambda i: (0, 0)),
                pl.BlockSpec((1, D), lambda i: (0, 0)),
            ],
            out_specs=pl.BlockSpec((tr, D), lambda i: (i, 0)),
        ),
        compiler_params=pltpu.CompilerParams(dimension_semantics=("parallel",)),
    )(x, res, gamma, beta)


# ---------------------------------------------------------------------------
# Kernel 5: fused masked-mean pooling (divide by TRUE lengths) + 2-layer MLP regressor.
#   Output is lane-dense (last dim padded to 128); the true 1-wide output is sliced outside.
# ---------------------------------------------------------------------------
def _pool_regressor_kernel(x_ref, m_ref, w1_ref, b1_ref, w2_ref, b2_ref, o_ref):
    x = x_ref[...].astype(jnp.float32)              # (B, S, D)
    m = m_ref[...]                                  # (B, S) f32 {0,1}
    pooled = jnp.sum(x * m[:, :, None], axis=1)     # masked sum over sequence
    lens = jnp.sum(m, axis=1, keepdims=True)        # true lengths (B, 1)
    pooled = pooled / lens                          # masked mean (by true length, not S)
    h = jnp.dot(pooled.astype(DTYPE), w1_ref[...], preferred_element_type=jnp.float32)
    h = jnp.maximum(h + b1_ref[...], 0.0)
    out = jnp.dot(h.astype(DTYPE), w2_ref[...], preferred_element_type=jnp.float32)
    o_ref[...] = out + b2_ref[...]


def pallas_pool_regressor(encoded, mask, w1, b1, w2, b2):
    """encoded: (B, S, D) bf16; mask: (B, S) f32 -> (B, OUT_PAD) f32."""
    B, S, D = encoded.shape
    H = w1.shape[1]
    OUTP = w2.shape[1]
    # TODO(synk): tile the batch axis (multiples of 8 rows) for large B; single block here.
    return pl.pallas_call(
        _pool_regressor_kernel,
        out_shape=jax.ShapeDtypeStruct((B, OUTP), jnp.float32),
        grid_spec=pltpu.PrefetchScalarGridSpec(
            num_scalar_prefetch=0,
            grid=(1,),
            in_specs=[
                pl.BlockSpec((B, S, D), lambda i: (0, 0, 0)),
                pl.BlockSpec((B, S), lambda i: (0, 0)),
                pl.BlockSpec((D, H), lambda i: (0, 0)),
                pl.BlockSpec((1, H), lambda i: (0, 0)),
                pl.BlockSpec((H, OUTP), lambda i: (0, 0)),
                pl.BlockSpec((1, OUTP), lambda i: (0, 0)),
            ],
            out_specs=pl.BlockSpec((B, OUTP), lambda i: (0, 0)),
        ),
        compiler_params=pltpu.CompilerParams(dimension_semantics=("parallel",)),
    )(encoded, mask, w1, b1, w2, b2)


# ---------------------------------------------------------------------------
# Forward pass: SNIPPredictor property branch (encoder_f 'fwd' non-causal + regressor).
# ---------------------------------------------------------------------------
def snip_predictor_forward(params, tokens_sb, lengths):
    """tokens_sb: (S, B) int32 seq-major (like env.batch_equations); lengths: (B,) int32.

    Returns (encoded_f (B, S, D) bf16, property_output (B, 1) f32)."""
    S, B = tokens_sb.shape
    D = params["emb"].shape[1]
    H = NUM_HEADS
    Dh = D // H

    # --- XLA-side glue: gather + layout conversion (kept out of the Pallas kernels) ---
    tokens = tokens_sb.T                                            # (B, S)
    x_emb = jnp.take(params["emb"], tokens, axis=0)                 # (B, S, D) bf16
    pos = jnp.broadcast_to(params["pos"][None, :S, :], (B, S, D)).astype(DTYPE)

    ar = jnp.arange(S)[None, :]
    key_valid = ar < lengths[:, None]                               # (B, S) bool
    key_bias = jnp.where(key_valid, 0.0, NEG_INF).astype(jnp.float32)
    key_bias_bh = jnp.broadcast_to(key_bias[:, None, None, :],
                                   (B, H, 1, S)).reshape(B * H, 1, S)

    # --- embedding + position, then LayerNorm_emb (fused add+LN kernel) ---
    h0 = pallas_add_layernorm(x_emb.reshape(B * S, D), pos.reshape(B * S, D),
                              params["ln_emb_g"], params["ln_emb_b"])

    # --- self-attention (non-causal, length-masked) ---
    qkv = pallas_matmul(h0, params["w_qkv"], params["b_qkv"])       # (B*S, 3D)
    qkv = qkv.reshape(B, S, 3, H, Dh).transpose(2, 0, 3, 1, 4)      # (3, B, H, S, Dh)
    q = qkv[0].reshape(B * H, S, Dh)
    k = qkv[1].reshape(B * H, S, Dh)
    v = qkv[2].reshape(B * H, S, Dh)
    attn = pallas_mha(q, k, v, key_bias_bh)                         # (B*H, S, Dh)
    attn = attn.reshape(B, H, S, Dh).transpose(0, 2, 1, 3).reshape(B * S, D)
    # attention-output projection fused with residual + LayerNorm1
    h1 = pallas_matmul_res_ln(attn, params["w_o"], params["b_o"], h0,
                              params["ln1_g"], params["ln1_b"])

    # --- FFN (D -> 4D -> D); down-projection fused with residual + LayerNorm2 ---
    f1 = pallas_matmul(h1, params["w_ff1"], params["b_ff1"], activation="relu")
    h2 = pallas_matmul_res_ln(f1, params["w_ff2"], params["b_ff2"], h1,
                              params["ln2_g"], params["ln2_b"])

    encoded_f = h2.reshape(B, S, D)

    # --- masked-mean pool + regressor head (fused, lane-dense padded output) ---
    mask_f = key_valid.astype(jnp.float32)
    prop_pad = pallas_pool_regressor(encoded_f, mask_f,
                                     params["w_r1"], params["b_r1"],
                                     params["w_r2"], params["b_r2"])
    property_output = prop_pad[:, :PROP_OUT_DIM]                    # (B, 1)

    # TODO(synk): y = x2[1:].masked_select(pred_mask[:-1]) (loss targets) has a dynamic
    # output shape and is not part of the returned outputs; omitted.
    return encoded_f, property_output


# ---------------------------------------------------------------------------
# Pure-JAX reference (mirrors the kernel's bf16/f32 cast points) for validation.
# ---------------------------------------------------------------------------
def reference_forward(params, tokens_sb, lengths):
    S, B = tokens_sb.shape
    D = params["emb"].shape[1]
    H = NUM_HEADS
    Dh = D // H
    scale = 1.0 / math.sqrt(Dh)

    def mm(a_bf16, w, bias, act=None):
        out = jnp.dot(a_bf16, w, preferred_element_type=jnp.float32) + bias
        if act == "relu":
            out = jnp.maximum(out, 0.0)
        return out.astype(DTYPE)

    def add_ln(x_bf16, r_bf16, g, b):
        x = x_bf16.astype(jnp.float32) + r_bf16.astype(jnp.float32)
        mu = jnp.mean(x, -1, keepdims=True)
        xc = x - mu
        var = jnp.mean(xc * xc, -1, keepdims=True)
        return (xc * jax.lax.rsqrt(var + LN_EPS) * g + b).astype(DTYPE)

    def mm_res_ln(a_bf16, w, bias, res_bf16, g, b):
        x = (jnp.dot(a_bf16, w, preferred_element_type=jnp.float32) + bias
             + res_bf16.astype(jnp.float32))
        mu = jnp.mean(x, -1, keepdims=True)
        xc = x - mu
        var = jnp.mean(xc * xc, -1, keepdims=True)
        return (xc * jax.lax.rsqrt(var + LN_EPS) * g + b).astype(DTYPE)

    def mha(q, k, v, bias):
        s = jnp.einsum("bqd,bkd->bqk", q, k, preferred_element_type=jnp.float32)
        s = s * scale + bias
        m = jnp.max(s, axis=-1, keepdims=True)
        p = jnp.exp(s - m)
        l = jnp.sum(p, axis=-1, keepdims=True)
        o = jnp.einsum("bqk,bkd->bqd", p.astype(DTYPE), v,
                       preferred_element_type=jnp.float32)
        return (o / l).astype(DTYPE)

    tokens = tokens_sb.T
    x_emb = jnp.take(params["emb"], tokens, axis=0)
    pos = jnp.broadcast_to(params["pos"][None, :S, :], (B, S, D)).astype(DTYPE)
    ar = jnp.arange(S)[None, :]
    key_valid = ar < lengths[:, None]
    key_bias = jnp.where(key_valid, 0.0, NEG_INF).astype(jnp.float32)
    key_bias_bh = jnp.broadcast_to(key_bias[:, None, None, :],
                                   (B, H, 1, S)).reshape(B * H, 1, S)

    h0 = add_ln(x_emb.reshape(B * S, D), pos.reshape(B * S, D),
                params["ln_emb_g"], params["ln_emb_b"])
    qkv = mm(h0, params["w_qkv"], params["b_qkv"])
    qkv = qkv.reshape(B, S, 3, H, Dh).transpose(2, 0, 3, 1, 4)
    q = qkv[0].reshape(B * H, S, Dh)
    k = qkv[1].reshape(B * H, S, Dh)
    v = qkv[2].reshape(B * H, S, Dh)
    attn = mha(q, k, v, key_bias_bh)
    attn = attn.reshape(B, H, S, Dh).transpose(0, 2, 1, 3).reshape(B * S, D)
    h1 = mm_res_ln(attn, params["w_o"], params["b_o"], h0,
                   params["ln1_g"], params["ln1_b"])
    f1 = mm(h1, params["w_ff1"], params["b_ff1"], act="relu")
    h2 = mm_res_ln(f1, params["w_ff2"], params["b_ff2"], h1,
                   params["ln2_g"], params["ln2_b"])
    encoded_f = h2.reshape(B, S, D)

    mask_f = key_valid.astype(jnp.float32)
    pooled = jnp.sum(encoded_f.astype(jnp.float32) * mask_f[:, :, None], axis=1)
    pooled = pooled / jnp.sum(mask_f, axis=1, keepdims=True)
    hreg = jnp.maximum(jnp.dot(pooled.astype(DTYPE), params["w_r1"],
                               preferred_element_type=jnp.float32) + params["b_r1"], 0.0)
    prop = jnp.dot(hreg.astype(DTYPE), params["w_r2"],
                   preferred_element_type=jnp.float32) + params["b_r2"]
    return encoded_f, prop[:, :PROP_OUT_DIM]


# ---------------------------------------------------------------------------
# Deterministic synthetic weights (submodules are injected in the PyTorch module).
# ---------------------------------------------------------------------------
def init_params(key, vocab, max_len, d_model, ffn_dim, reg_hidden, out_pad):
    ks = jax.random.split(key, 12)

    def w(k, shape, scale):
        return (jax.random.normal(k, shape, jnp.float32) * scale).astype(DTYPE)

    def bias(k, n, scale=0.01):
        return jax.random.normal(k, (1, n), jnp.float32) * scale

    d = d_model
    p = {
        "emb": w(ks[0], (vocab, d), 0.05),
        "pos": w(ks[1], (max_len, d), 0.05),
        "ln_emb_g": jnp.ones((1, d), jnp.float32),
        "ln_emb_b": jnp.zeros((1, d), jnp.float32),
        "w_qkv": w(ks[2], (d, 3 * d), (1.0 / d) ** 0.5),
        "b_qkv": bias(ks[3], 3 * d),
        "w_o": w(ks[4], (d, d), (1.0 / d) ** 0.5),
        "b_o": bias(ks[5], d),
        "ln1_g": jnp.ones((1, d), jnp.float32),
        "ln1_b": jnp.zeros((1, d), jnp.float32),
        "w_ff1": w(ks[6], (d, ffn_dim), (1.0 / d) ** 0.5),
        "b_ff1": bias(ks[7], ffn_dim),
        "w_ff2": w(ks[8], (ffn_dim, d), (1.0 / ffn_dim) ** 0.5),
        "b_ff2": bias(ks[9], d),
        "ln2_g": jnp.ones((1, d), jnp.float32),
        "ln2_b": jnp.zeros((1, d), jnp.float32),
        "w_r1": w(ks[10], (d, reg_hidden), (1.0 / d) ** 0.5),
        "b_r1": jnp.zeros((1, reg_hidden), jnp.float32),
        "w_r2": w(ks[11], (reg_hidden, out_pad), (1.0 / reg_hidden) ** 0.5),
        "b_r2": jnp.zeros((1, out_pad), jnp.float32),
    }
    return p


if __name__ == "__main__":
    key = jax.random.PRNGKey(0)
    k_par, k_tok = jax.random.split(key, 2)

    # Small shapes consistent with the module: (S, B) token ids + lengths.
    B, S = 2, 16           # batch, max_src_len
    VOCAB, D, FF = 64, 128, 512
    REG_HIDDEN, OUT_PAD = 128, 128

    params = init_params(k_par, VOCAB, S, D, FF, REG_HIDDEN, OUT_PAD)

    tokens_sb = jax.random.randint(k_tok, (S, B), 1, VOCAB, dtype=jnp.int32)
    lengths = jnp.array([S, 9], dtype=jnp.int32)
    pad_pos = jnp.arange(S)[:, None] < lengths[None, :]
    tokens_sb = jnp.where(pad_pos, tokens_sb, 0)               # pad-id 0 beyond length

    fwd = jax.jit(snip_predictor_forward)
    encoded_f, property_output = fwd(params, tokens_sb, lengths)
    jax.block_until_ready((encoded_f, property_output))

    # Pure-JAX reference check (generous tolerance for bf16 / approx-reciprocal paths).
    ref_enc, ref_prop = reference_forward(params, tokens_sb, lengths)
    err_e = float(jnp.max(jnp.abs(encoded_f.astype(jnp.float32) -
                                  ref_enc.astype(jnp.float32))))
    err_p = float(jnp.max(jnp.abs(property_output - ref_prop)))
    assert err_e < 8e-2 and err_p < 8e-2, (err_e, err_p)

    print("KERNEL_OK")
</pallas_src>

<mosaic_0001>
module attributes {stable_mosaic.version = 11 : i64} {
  func.func @_matmul_kernel(%arg0: i32, %arg1: i32, %arg2: i32, %arg3: memref<32x128xbf16, #tpu.memory_space<vmem>>, %arg4: memref<128x128xbf16, #tpu.memory_space<vmem>>, %arg5: memref<1x128xf32, #tpu.memory_space<vmem>>, %arg6: memref<32x128xbf16, #tpu.memory_space<vmem>>, %arg7: memref<32x128xf32, #tpu.memory_space<vmem>>) attributes {dimension_semantics = [#tpu.dimension_semantics<parallel>, #tpu.dimension_semantics<parallel>, #tpu.dimension_semantics<arbitrary>], iteration_bounds = array<i64: 1, 3, 1>, scalar_prefetch = 0 : i64, scratch_operands = 1 : i64, tpu.core_type = #tpu.core_type<tc>, window_params = [{transform_indices = @transform_0, window_bounds = array<i64: 32, 128>}, {transform_indices = @transform_1, window_bounds = array<i64: 128, 128>}, {transform_indices = @transform_2, window_bounds = array<i64: 1, 128>}, {transform_indices = @transform_3, window_bounds = array<i64: 32, 128>}]} {
    %c0_i32 = arith.constant 0 : i32
    %0 = arith.cmpi eq, %arg2, %c0_i32 : i32
    %1 = arith.extui %0 : i1 to i32
    %c0_i32_0 = arith.constant 0 : i32
    %2 = arith.cmpi ne, %1, %c0_i32_0 : i32
    scf.if %2 {
      %cst_10 = arith.constant 0.000000e+00 : f32
      %12 = vector.broadcast %cst_10 : f32 to vector<32x128xf32>
      %c0_11 = arith.constant 0 : index
      %c0_12 = arith.constant 0 : index
      %13 = vector.load %arg7[%c0_11, %c0_12] : memref<32x128xf32, #tpu.memory_space<vmem>>, vector<32x128xf32>
      tpu.vector_store %arg7[%c0_11, %c0_12], %12 {strides = array<i32>} : memref<32x128xf32, #tpu.memory_space<vmem>>, vector<32x128xf32>,
    } else {
    }
    %c0 = arith.constant 0 : index
    %c0_1 = arith.constant 0 : index
    %3 = vector.load %arg7[%c0, %c0_1] : memref<32x128xf32, #tpu.memory_space<vmem>>, vector<32x128xf32>
    %c0_2 = arith.constant 0 : index
    %c0_3 = arith.constant 0 : index
    %4 = vector.load %arg3[%c0_2, %c0_3] : memref<32x128xbf16, #tpu.memory_space<vmem>>, vector<32x128xbf16>
    %c0_4 = arith.constant 0 : index
    %c0_5 = arith.constant 0 : index
    %5 = vector.load %arg4[%c0_4, %c0_5] : memref<128x128xbf16, #tpu.memory_space<vmem>>, vector<128x128xbf16>
    %cst = arith.constant dense<0.000000e+00> : vector<32x128xf32>
    %6 = tpu.matmul %4, %5, %cst {dimension_numbers = #tpu.dot_dimension_numbers<[1], [0], [0], [1], [0, 0, 1, 1], [], []>} : vector<32x128xbf16>, vector<128x128xbf16>, vector<32x128xf32> -> vector<32x128xf32>
    %7 = arith.addf %3, %6 : vector<32x128xf32>
    %c0_6 = arith.constant 0 : index
    %c0_7 = arith.constant 0 : index
    %8 = vector.load %arg7[%c0_6, %c0_7] : memref<32x128xf32, #tpu.memory_space<vmem>>, vector<32x128xf32>
    tpu.vector_store %arg7[%c0_6, %c0_7], %7 {strides = array<i32>} : memref<32x128xf32, #tpu.memory_space<vmem>>, vector<32x128xf32>,
    %c0_i32_8 = arith.constant 0 : i32
    %9 = arith.cmpi eq, %arg2, %c0_i32_8 : i32
    %10 = arith.extui %9 : i1 to i32
    %c0_i32_9 = arith.constant 0 : i32
    %11 = arith.cmpi ne, %10, %c0_i32_9 : i32
    scf.if %11 {
      %c0_10 = arith.constant 0 : index
      %c0_11 = arith.constant 0 : index
      %12 = vector.load %arg7[%c0_10, %c0_11] : memref<32x128xf32, #tpu.memory_space<vmem>>, vector<32x128xf32>
      %c0_12 = arith.constant 0 : index
      %c0_13 = arith.constant 0 : index
      %13 = vector.load %arg5[%c0_12, %c0_13] : memref<1x128xf32, #tpu.memory_space<vmem>>, vector<1x128xf32>
      %14 = vector.broadcast %13 : vector<1x128xf32> to vector<32x128xf32>
      %15 = arith.addf %12, %14 : vector<32x128xf32>
      %16 = arith.truncf %15 : vector<32x128xf32> to vector<32x128xbf16>
      %c0_14 = arith.constant 0 : index
      %c0_15 = arith.constant 0 : index
      %17 = vector.load %arg6[%c0_14, %c0_15] : memref<32x128xbf16, #tpu.memory_space<vmem>>, vector<32x128xbf16>
      tpu.vector_store %arg6[%c0_14, %c0_15], %16 {strides = array<i32>} : memref<32x128xbf16, #tpu.memory_space<vmem>>, vector<32x128xbf16>,
    } else {
    }
    return
  }
  func.func @transform_0(%arg0: i32, %arg1: i32, %arg2: i32) -> (i32, i32) {
    %c0_i32 = arith.constant 0 : i32
    return %arg0, %arg2 : i32, i32
  }
  func.func @transform_1(%arg0: i32, %arg1: i32, %arg2: i32) -> (i32, i32) {
    %c0_i32 = arith.constant 0 : i32
    return %arg2, %arg1 : i32, i32
  }
  func.func @transform_2(%arg0: i32, %arg1: i32, %arg2: i32) -> (i32, i32) {
    %c0_i32 = arith.constant 0 : i32
    %c0_i32_0 = arith.constant 0 : i32
    return %c0_i32, %arg1 : i32, i32
  }
  func.func @transform_3(%arg0: i32, %arg1: i32, %arg2: i32) -> (i32, i32) {
    %c0_i32 = arith.constant 0 : i32
    return %arg0, %arg1 : i32, i32
  }
}

module attributes {stable_mosaic.version = 11 : i64} {
  func.func @_add_ln_kernel(%arg0: i32, %arg1: memref<32x128xbf16, #tpu.memory_space<vmem>>, %arg2: memref<32x128xbf16, #tpu.memory_space<vmem>>, %arg3: memref<1x128xf32, #tpu.memory_space<vmem>>, %arg4: memref<1x128xf32, #tpu.memory_space<vmem>>, %arg5: memref<32x128xbf16, #tpu.memory_space<vmem>>) attributes {dimension_semantics = [#tpu.dimension_semantics<parallel>], iteration_bounds = array<i64: 1>, scalar_prefetch = 0 : i64, scratch_operands = 0 : i64, tpu.core_type = #tpu.core_type<tc>, window_params = [{transform_indices = @transform_0, window_bounds = array<i64: 32, 128>}, {transform_indices = @transform_1, window_bounds = array<i64: 32, 128>}, {pipeline_mode = #tpu.pipeline_mode<synchronous>, transform_indices = @transform_2, window_bounds = array<i64: 1, 128>}, {pipeline_mode = #tpu.pipeline_mode<synchronous>, transform_indices = @transform_3, window_bounds = array<i64: 1, 128>}, {transform_indices = @transform_4, window_bounds = array<i64: 32, 128>}]} {
    %c0 = arith.constant 0 : index
    %c0_0 = arith.constant 0 : index
    %0 = vector.load %arg1[%c0, %c0_0] : memref<32x128xbf16, #tpu.memory_space<vmem>>, vector<32x128xbf16>
    %1 = arith.extf %0 : vector<32x128xbf16> to vector<32x128xf32>
    %c0_1 = arith.constant 0 : index
    %c0_2 = arith.constant 0 : index
    %2 = vector.load %arg2[%c0_1, %c0_2] : memref<32x128xbf16, #tpu.memory_space<vmem>>, vector<32x128xbf16>
    %3 = arith.extf %2 : vector<32x128xbf16> to vector<32x128xf32>
    %4 = arith.addf %1, %3 : vector<32x128xf32>
    %cst = arith.constant dense<0.000000e+00> : vector<32xf32>
    %5 = vector.multi_reduction <add>, %4, %cst [1] : vector<32x128xf32> to vector<32xf32>
    %6 = vector.shape_cast %5 : vector<32xf32> to vector<32x1xf32>
    %cst_3 = arith.constant 1.280000e+02 : f32
    %7 = vector.broadcast %cst_3 : f32 to vector<32x1xf32>
    %8 = arith.divf %6, %7 : vector<32x1xf32>
    %9 = vector.broadcast %8 : vector<32x1xf32> to vector<32x128xf32>
    %10 = arith.subf %4, %9 : vector<32x128xf32>
    %11 = arith.mulf %10, %10 : vector<32x128xf32>
    %cst_4 = arith.constant dense<0.000000e+00> : vector<32xf32>
    %12 = vector.multi_reduction <add>, %11, %cst_4 [1] : vector<32x128xf32> to vector<32xf32>
    %13 = vector.shape_cast %12 : vector<32xf32> to vector<32x1xf32>
    %cst_5 = arith.constant 1.280000e+02 : f32
    %14 = vector.broadcast %cst_5 : f32 to vector<32x1xf32>
    %15 = arith.divf %13, %14 : vector<32x1xf32>
    %cst_6 = arith.constant 9.99999974E-6 : f32
    %16 = vector.broadcast %cst_6 : f32 to vector<32x1xf32>
    %17 = arith.addf %15, %16 : vector<32x1xf32>
    %18 = math.rsqrt %17 : vector<32x1xf32>
    %19 = vector.broadcast %18 : vector<32x1xf32> to vector<32x128xf32>
    %20 = arith.mulf %10, %19 : vector<32x128xf32>
    %c0_7 = arith.constant 0 : index
    %c0_8 = arith.constant 0 : index
    %21 = vector.load %arg3[%c0_7, %c0_8] : memref<1x128xf32, #tpu.memory_space<vmem>>, vector<1x128xf32>
    %22 = vector.broadcast %21 : vector<1x128xf32> to vector<32x128xf32>
    %23 = arith.mulf %20, %22 : vector<32x128xf32>
    %c0_9 = arith.constant 0 : index
    %c0_10 = arith.constant 0 : index
    %24 = vector.load %arg4[%c0_9, %c0_10] : memref<1x128xf32, #tpu.memory_space<vmem>>, vector<1x128xf32>
    %25 = vector.broadcast %24 : vector<1x128xf32> to vector<32x128xf32>
    %26 = arith.addf %23, %25 : vector<32x128xf32>
    %27 = arith.truncf %26 : vector<32x128xf32> to vector<32x128xbf16>
    %c0_11 = arith.constant 0 : index
    %c0_12 = arith.constant 0 : index
    %28 = vector.load %arg5[%c0_11, %c0_12] : memref<32x128xbf16, #tpu.memory_space<vmem>>, vector<32x128xbf16>
    tpu.vector_store %arg5[%c0_11, %c0_12], %27 {strides = array<i32>} : memref<32x128xbf16, #tpu.memory_space<vmem>>, vector<32x128xbf16>,
    return
  }
  func.func @transform_0(%arg0: i32) -> (i32, i32) {
    %c0_i32 = arith.constant 0 : i32
    %c0_i32_0 = arith.constant 0 : i32
    return %arg0, %c0_i32 : i32, i32
  }
  func.func @transform_1(%arg0: i32) -> (i32, i32) {
    %c0_i32 = arith.constant 0 : i32
    %c0_i32_0 = arith.constant 0 : i32
    return %arg0, %c0_i32 : i32, i32
  }
  func.func @transform_2(%arg0: i32) -> (i32, i32) {
    %c0_i32 = arith.constant 0 : i32
    %c0_i32_0 = arith.constant 0 : i32
    %c0_i32_1 = arith.constant 0 : i32
    return %c0_i32, %c0_i32_0 : i32, i32
  }
  func.func @transform_3(%arg0: i32) -> (i32, i32) {
    %c0_i32 = arith.constant 0 : i32
    %c0_i32_0 = arith.constant 0 : i32
    %c0_i32_1 = arith.constant 0 : i32
    return %c0_i32, %c0_i32_0 : i32, i32
  }
  func.func @transform_4(%arg0: i32) -> (i32, i32) {
    %c0_i32 = arith.constant 0 : i32
    %c0_i32_0 = arith.constant 0 : i32
    return %arg0, %c0_i32 : i32, i32
  }
}

module attributes {stable_mosaic.version = 11 : i64} {
  func.func @_flash_attn_kernel(%arg0: i32, %arg1: i32, %arg2: memref<8x16x32xbf16, #tpu.memory_space<vmem>>, %arg3: memref<8x16x32xbf16, #tpu.memory_space<vmem>>, %arg4: memref<8x16x32xbf16, #tpu.memory_space<vmem>>, %arg5: memref<8x1x16xf32, #tpu.memory_space<vmem>>, %arg6: memref<8x16x32xbf16, #tpu.memory_space<vmem>>, %arg7: memref<8x16x1xf32, #tpu.memory_space<vmem>>, %arg8: memref<8x16x1xf32, #tpu.memory_space<vmem>>, %arg9: memref<8x16x32xf32, #tpu.memory_space<vmem>>) attributes {dimension_semantics = [#tpu.dimension_semantics<parallel>, #tpu.dimension_semantics<arbitrary>], iteration_bounds = array<i64: 1, 1>, scalar_prefetch = 0 : i64, scratch_operands = 3 : i64, tpu.core_type = #tpu.core_type<tc>, window_params = [{transform_indices = @transform_0, window_bounds = array<i64: 8, 16, 32>}, {transform_indices = @transform_1, window_bounds = array<i64: 8, 16, 32>}, {transform_indices = @transform_2, window_bounds = array<i64: 8, 16, 32>}, {transform_indices = @transform_3, window_bounds = array<i64: 8, 1, 16>}, {transform_indices = @transform_4, window_bounds = array<i64: 8, 16, 32>}]} {
    %c0_i32 = arith.constant 0 : i32
    %0 = arith.cmpi eq, %arg1, %c0_i32 : i32
    %1 = arith.extui %0 : i1 to i32
    %c0_i32_0 = arith.constant 0 : i32
    %2 = arith.cmpi ne, %1, %c0_i32_0 : i32
    scf.if %2 {
      %cst_36 = arith.constant -1.000000e+30 : f32
      %38 = vector.broadcast %cst_36 : f32 to vector<8x16x1xf32>
      %c0_37 = arith.constant 0 : index
      %c0_38 = arith.constant 0 : index
      %c0_39 = arith.constant 0 : index
      %39 = vector.load %arg7[%c0_37, %c0_38, %c0_39] : memref<8x16x1xf32, #tpu.memory_space<vmem>>, vector<8x16x1xf32>
      tpu.vector_store %arg7[%c0_37, %c0_38, %c0_39], %38 {strides = array<i32>} : memref<8x16x1xf32, #tpu.memory_space<vmem>>, vector<8x16x1xf32>,
      %cst_40 = arith.constant 0.000000e+00 : f32
      %40 = vector.broadcast %cst_40 : f32 to vector<8x16x1xf32>
      %c0_41 = arith.constant 0 : index
      %c0_42 = arith.constant 0 : index
      %c0_43 = arith.constant 0 : index
      %41 = vector.load %arg8[%c0_41, %c0_42, %c0_43] : memref<8x16x1xf32, #tpu.memory_space<vmem>>, vector<8x16x1xf32>
      tpu.vector_store %arg8[%c0_41, %c0_42, %c0_43], %40 {strides = array<i32>} : memref<8x16x1xf32, #tpu.memory_space<vmem>>, vector<8x16x1xf32>,
      %cst_44 = arith.constant 0.000000e+00 : f32
      %42 = vector.broadcast %cst_44 : f32 to vector<8x16x32xf32>
      %c0_45 = arith.constant 0 : index
      %c0_46 = arith.constant 0 : index
      %c0_47 = arith.constant 0 : index
      %43 = vector.load %arg9[%c0_45, %c0_46, %c0_47] : memref<8x16x32xf32, #tpu.memory_space<vmem>>, vector<8x16x32xf32>
      tpu.vector_store %arg9[%c0_45, %c0_46, %c0_47], %42 {strides = array<i32>} : memref<8x16x32xf32, #tpu.memory_space<vmem>>, vector<8x16x32xf32>,
    } else {
    }
    %c0 = arith.constant 0 : index
    %c0_1 = arith.constant 0 : index
    %c0_2 = arith.constant 0 : index
    %3 = vector.load %arg2[%c0, %c0_1, %c0_2] : memref<8x16x32xbf16, #tpu.memory_space<vmem>>, vector<8x16x32xbf16>
    %c0_3 = arith.constant 0 : index
    %c0_4 = arith.constant 0 : index
    %c0_5 = arith.constant 0 : index
    %4 = vector.load %arg3[%c0_3, %c0_4, %c0_5] : memref<8x16x32xbf16, #tpu.memory_space<vmem>>, vector<8x16x32xbf16>
    %c0_6 = arith.constant 0 : index
    %c0_7 = arith.constant 0 : index
    %c0_8 = arith.constant 0 : index
    %5 = vector.load %arg4[%c0_6, %c0_7, %c0_8] : memref<8x16x32xbf16, #tpu.memory_space<vmem>>, vector<8x16x32xbf16>
    "tpu.trace_start"() <{level = 10 : i32, message = "bqd,bkd->bqk"}> : () -> ()
    %cst = arith.constant dense<0.000000e+00> : vector<8x16x16xf32>
    %6 = tpu.matmul %3, %4, %cst {dimension_numbers = #tpu.dot_dimension_numbers<[2], [2], [1], [1], [0, 0, 0, 1, 1, 1], [0], [0]>} : vector<8x16x32xbf16>, vector<8x16x32xbf16>, vector<8x16x16xf32> -> vector<8x16x16xf32>
    "tpu.trace_stop"() : () -> ()
    %cst_9 = arith.constant 0.176776692 : f32
    %7 = vector.broadcast %cst_9 : f32 to vector<8x16x16xf32>
    %8 = arith.mulf %6, %7 : vector<8x16x16xf32>
    %c0_10 = arith.constant 0 : index
    %c0_11 = arith.constant 0 : index
    %c0_12 = arith.constant 0 : index
    %9 = vector.load %arg5[%c0_10, %c0_11, %c0_12] : memref<8x1x16xf32, #tpu.memory_space<vmem>>, vector<8x1x16xf32>
    %10 = vector.broadcast %9 : vector<8x1x16xf32> to vector<8x16x16xf32>
    %11 = arith.addf %8, %10 : vector<8x16x16xf32>
    %c0_13 = arith.constant 0 : index
    %c0_14 = arith.constant 0 : index
    %c0_15 = arith.constant 0 : index
    %12 = vector.load %arg7[%c0_13, %c0_14, %c0_15] : memref<8x16x1xf32, #tpu.memory_space<vmem>>, vector<8x16x1xf32>
    %cst_16 = arith.constant dense<0xFF800000> : vector<8x16xf32>
    %13 = vector.multi_reduction <maximumf>, %11, %cst_16 [2] : vector<8x16x16xf32> to vector<8x16xf32>
    %14 = vector.shape_cast %13 : vector<8x16xf32> to vector<8x16x1xf32>
    %15 = arith.maximumf %12, %14 : vector<8x16x1xf32>
    %16 = arith.subf %12, %15 : vector<8x16x1xf32>
    %17 = math.exp %16 : vector<8x16x1xf32>
    %18 = vector.broadcast %15 : vector<8x16x1xf32> to vector<8x16x16xf32>
    %19 = arith.subf %11, %18 : vector<8x16x16xf32>
    %20 = math.exp %19 : vector<8x16x16xf32>
    %c0_17 = arith.constant 0 : index
    %c0_18 = arith.constant 0 : index
    %c0_19 = arith.constant 0 : index
    %21 = vector.load %arg8[%c0_17, %c0_18, %c0_19] : memref<8x16x1xf32, #tpu.memory_space<vmem>>, vector<8x16x1xf32>
    %22 = arith.mulf %17, %21 : vector<8x16x1xf32>
    %cst_20 = arith.constant dense<0.000000e+00> : vector<8x16xf32>
    %23 = vector.multi_reduction <add>, %20, %cst_20 [2] : vector<8x16x16xf32> to vector<8x16xf32>
    %24 = vector.shape_cast %23 : vector<8x16xf32> to vector<8x16x1xf32>
    %25 = arith.addf %22, %24 : vector<8x16x1xf32>
    %c0_21 = arith.constant 0 : index
    %c0_22 = arith.constant 0 : index
    %c0_23 = arith.constant 0 : index
    %26 = vector.load %arg8[%c0_21, %c0_22, %c0_23] : memref<8x16x1xf32, #tpu.memory_space<vmem>>, vector<8x16x1xf32>
    tpu.vector_store %arg8[%c0_21, %c0_22, %c0_23], %25 {strides = array<i32>} : memref<8x16x1xf32, #tpu.memory_space<vmem>>, vector<8x16x1xf32>,
    %c0_24 = arith.constant 0 : index
    %c0_25 = arith.constant 0 : index
    %c0_26 = arith.constant 0 : index
    %27 = vector.load %arg9[%c0_24, %c0_25, %c0_26] : memref<8x16x32xf32, #tpu.memory_space<vmem>>, vector<8x16x32xf32>
    %28 = vector.broadcast %17 : vector<8x16x1xf32> to vector<8x16x32xf32>
    %29 = arith.mulf %28, %27 : vector<8x16x32xf32>
    %30 = arith.truncf %20 : vector<8x16x16xf32> to vector<8x16x16xbf16>
    "tpu.trace_start"() <{level = 10 : i32, message = "bqk,bkd->bqd"}> : () -> ()
    %cst_27 = arith.constant dense<0.000000e+00> : vector<8x16x32xf32>
    %31 = tpu.matmul %30, %5, %cst_27 {dimension_numbers = #tpu.dot_dimension_numbers<[2], [1], [1], [2], [0, 0, 0, 1, 1, 2], [0], [0]>} : vector<8x16x16xbf16>, vector<8x16x32xbf16>, vector<8x16x32xf32> -> vector<8x16x32xf32>
    "tpu.trace_stop"() : () -> ()
    %32 = arith.addf %29, %31 : vector<8x16x32xf32>
    %c0_28 = arith.constant 0 : index
    %c0_29 = arith.constant 0 : index
    %c0_30 = arith.constant 0 : index
    %33 = vector.load %arg9[%c0_28, %c0_29, %c0_30] : memref<8x16x32xf32, #tpu.memory_space<vmem>>, vector<8x16x32xf32>
    tpu.vector_store %arg9[%c0_28, %c0_29, %c0_30], %32 {strides = array<i32>} : memref<8x16x32xf32, #tpu.memory_space<vmem>>, vector<8x16x32xf32>,
    %c0_31 = arith.constant 0 : index
    %c0_32 = arith.constant 0 : index
    %c0_33 = arith.constant 0 : index
    %34 = vector.load %arg7[%c0_31, %c0_32, %c0_33] : memref<8x16x1xf32, #tpu.memory_space<vmem>>, vector<8x16x1xf32>
    tpu.vector_store %arg7[%c0_31, %c0_32, %c0_33], %15 {strides = array<i32>} : memref<8x16x1xf32, #tpu.memory_space<vmem>>, vector<8x16x1xf32>,
    %c0_i32_34 = arith.constant 0 : i32
    %35 = arith.cmpi eq, %arg1, %c0_i32_34 : i32
    %36 = arith.extui %35 : i1 to i32
    %c0_i32_35 = arith.constant 0 : i32
    %37 = arith.cmpi ne, %36, %c0_i32_35 : i32
    scf.if %37 {
      %c0_36 = arith.constant 0 : index
      %c0_37 = arith.constant 0 : index
      %c0_38 = arith.constant 0 : index
      %38 = vector.load %arg8[%c0_36, %c0_37, %c0_38] : memref<8x16x1xf32, #tpu.memory_space<vmem>>, vector<8x16x1xf32>
      %39 = tpu.reciprocal %38 {approx = true} : vector<8x16x1xf32> -> vector<8x16x1xf32>
      %c0_39 = arith.constant 0 : index
      %c0_40 = arith.constant 0 : index
      %c0_41 = arith.constant 0 : index
      %40 = vector.load %arg9[%c0_39, %c0_40, %c0_41] : memref<8x16x32xf32, #tpu.memory_space<vmem>>, vector<8x16x32xf32>
      %41 = vector.broadcast %39 : vector<8x16x1xf32> to vector<8x16x32xf32>
      %42 = arith.mulf %40, %41 : vector<8x16x32xf32>
      %43 = arith.truncf %42 : vector<8x16x32xf32> to vector<8x16x32xbf16>
      %c0_42 = arith.constant 0 : index
      %c0_43 = arith.constant 0 : index
      %c0_44 = arith.constant 0 : index
      %44 = vector.load %arg6[%c0_42, %c0_43, %c0_44] : memref<8x16x32xbf16, #tpu.memory_space<vmem>>, vector<8x16x32xbf16>
      tpu.vector_store %arg6[%c0_42, %c0_43, %c0_44], %43 {strides = array<i32>} : memref<8x16x32xbf16, #tpu.memory_space<vmem>>, vector<8x16x32xbf16>,
    } else {
    }
    return
  }
  func.func @transform_0(%arg0: i32, %arg1: i32) -> (i32, i32, i32) {
    %c0_i32 = arith.constant 0 : i32
    %c0_i32_0 = arith.constant 0 : i32
    %c0_i32_1 = arith.constant 0 : i32
    return %c0_i32, %arg0, %c0_i32_0 : i32, i32, i32
  }
  func.func @transform_1(%arg0: i32, %arg1: i32) -> (i32, i32, i32) {
    %c0_i32 = arith.constant 0 : i32
    %c0_i32_0 = arith.constant 0 : i32
    %c0_i32_1 = arith.constant 0 : i32
    return %c0_i32, %arg1, %c0_i32_0 : i32, i32, i32
  }
  func.func @transform_2(%arg0: i32, %arg1: i32) -> (i32, i32, i32) {
    %c0_i32 = arith.constant 0 : i32
    %c0_i32_0 = arith.constant 0 : i32
    %c0_i32_1 = arith.constant 0 : i32
    return %c0_i32, %arg1, %c0_i32_0 : i32, i32, i32
  }
  func.func @transform_3(%arg0: i32, %arg1: i32) -> (i32, i32, i32) {
    %c0_i32 = arith.constant 0 : i32
    %c0_i32_0 = arith.constant 0 : i32
    %c0_i32_1 = arith.constant 0 : i32
    return %c0_i32, %c0_i32_0, %arg1 : i32, i32, i32
  }
  func.func @transform_4(%arg0: i32, %arg1: i32) -> (i32, i32, i32) {
    %c0_i32 = arith.constant 0 : i32
    %c0_i32_0 = arith.constant 0 : i32
    %c0_i32_1 = arith.constant 0 : i32
    return %c0_i32, %arg0, %c0_i32_0 : i32, i32, i32
  }
}

module attributes {stable_mosaic.version = 11 : i64} {
  func.func @_matmul_res_ln_kernel(%arg0: i32, %arg1: i32, %arg2: memref<32x128xbf16, #tpu.memory_space<vmem>>, %arg3: memref<128x128xbf16, #tpu.memory_space<vmem>>, %arg4: memref<1x128xf32, #tpu.memory_space<vmem>>, %arg5: memref<32x128xbf16, #tpu.memory_space<vmem>>, %arg6: memref<1x128xf32, #tpu.memory_space<vmem>>, %arg7: memref<1x128xf32, #tpu.memory_space<vmem>>, %arg8: memref<32x128xbf16, #tpu.memory_space<vmem>>, %arg9: memref<32x128xf32, #tpu.memory_space<vmem>>) attributes {dimension_semantics = [#tpu.dimension_semantics<parallel>, #tpu.dimension_semantics<arbitrary>], iteration_bounds = array<i64: 1, 1>, scalar_prefetch = 0 : i64, scratch_operands = 1 : i64, tpu.core_type = #tpu.core_type<tc>, window_params = [{transform_indices = @transform_0, window_bounds = array<i64: 32, 128>}, {transform_indices = @transform_1, window_bounds = array<i64: 128, 128>}, {pipeline_mode = #tpu.pipeline_mode<synchronous>, transform_indices = @transform_2, window_bounds = array<i64: 1, 128>}, {transform_indices = @transform_3, window_bounds = array<i64: 32, 128>}, {pipeline_mode = #tpu.pipeline_mode<synchronous>, transform_indices = @transform_4, window_bounds = array<i64: 1, 128>}, {pipeline_mode = #tpu.pipeline_mode<synchronous>, transform_indices = @transform_5, window_bounds = array<i64: 1, 128>}, {transform_indices = @transform_6, window_bounds = array<i64: 32, 128>}]} {
    %c0_i32 = arith.constant 0 : i32
    %0 = arith.cmpi eq, %arg1, %c0_i32 : i32
    %1 = arith.extui %0 : i1 to i32
    %c0_i32_0 = arith.constant 0 : i32
    %2 = arith.cmpi ne, %1, %c0_i32_0 : i32
    scf.if %2 {
      %cst_10 = arith.constant 0.000000e+00 : f32
      %12 = vector.broadcast %cst_10 : f32 to vector<32x128xf32>
      %c0_11 = arith.constant 0 : index
      %c0_12 = arith.constant 0 : index
      %13 = vector.load %arg9[%c0_11, %c0_12] : memref<32x128xf32, #tpu.memory_space<vmem>>, vector<32x128xf32>
      tpu.vector_store %arg9[%c0_11, %c0_12], %12 {strides = array<i32>} : memref<32x128xf32, #tpu.memory_space<vmem>>, vector<32x128xf32>,
    } else {
    }
    %c0 = arith.constant 0 : index
    %c0_1 = arith.constant 0 : index
    %3 = vector.load %arg9[%c0, %c0_1] : memref<32x128xf32, #tpu.memory_space<vmem>>, vector<32x128xf32>
    %c0_2 = arith.constant 0 : index
    %c0_3 = arith.constant 0 : index
    %4 = vector.load %arg2[%c0_2, %c0_3] : memref<32x128xbf16, #tpu.memory_space<vmem>>, vector<32x128xbf16>
    %c0_4 = arith.constant 0 : index
    %c0_5 = arith.constant 0 : index
    %5 = vector.load %arg3[%c0_4, %c0_5] : memref<128x128xbf16, #tpu.memory_space<vmem>>, vector<128x128xbf16>
    %cst = arith.constant dense<0.000000e+00> : vector<32x128xf32>
    %6 = tpu.matmul %4, %5, %cst {dimension_numbers = #tpu.dot_dimension_numbers<[1], [0], [0], [1], [0, 0, 1, 1], [], []>} : vector<32x128xbf16>, vector<128x128xbf16>, vector<32x128xf32> -> vector<32x128xf32>
    %7 = arith.addf %3, %6 : vector<32x128xf32>
    %c0_6 = arith.constant 0 : index
    %c0_7 = arith.constant 0 : index
    %8 = vector.load %arg9[%c0_6, %c0_7] : memref<32x128xf32, #tpu.memory_space<vmem>>, vector<32x128xf32>
    tpu.vector_store %arg9[%c0_6, %c0_7], %7 {strides = array<i32>} : memref<32x128xf32, #tpu.memory_space<vmem>>, vector<32x128xf32>,
    %c0_i32_8 = arith.constant 0 : i32
    %9 = arith.cmpi eq, %arg1, %c0_i32_8 : i32
    %10 = arith.extui %9 : i1 to i32
    %c0_i32_9 = arith.constant 0 : i32
    %11 = arith.cmpi ne, %10, %c0_i32_9 : i32
    scf.if %11 {
      %c0_10 = arith.constant 0 : index
      %c0_11 = arith.constant 0 : index
      %12 = vector.load %arg9[%c0_10, %c0_11] : memref<32x128xf32, #tpu.memory_space<vmem>>, vector<32x128xf32>
      %c0_12 = arith.constant 0 : index
      %c0_13 = arith.constant 0 : index
      %13 = vector.load %arg4[%c0_12, %c0_13] : memref<1x128xf32, #tpu.memory_space<vmem>>, vector<1x128xf32>
      %14 = vector.broadcast %13 : vector<1x128xf32> to vector<32x128xf32>
      %15 = arith.addf %12, %14 : vector<32x128xf32>
      %c0_14 = arith.constant 0 : index
      %c0_15 = arith.constant 0 : index
      %16 = vector.load %arg5[%c0_14, %c0_15] : memref<32x128xbf16, #tpu.memory_space<vmem>>, vector<32x128xbf16>
      %17 = arith.extf %16 : vector<32x128xbf16> to vector<32x128xf32>
      %18 = arith.addf %15, %17 : vector<32x128xf32>
      %cst_16 = arith.constant dense<0.000000e+00> : vector<32xf32>
      %19 = vector.multi_reduction <add>, %18, %cst_16 [1] : vector<32x128xf32> to vector<32xf32>
      %20 = vector.shape_cast %19 : vector<32xf32> to vector<32x1xf32>
      %cst_17 = arith.constant 1.280000e+02 : f32
      %21 = vector.broadcast %cst_17 : f32 to vector<32x1xf32>
      %22 = arith.divf %20, %21 : vector<32x1xf32>
      %23 = vector.broadcast %22 : vector<32x1xf32> to vector<32x128xf32>
      %24 = arith.subf %18, %23 : vector<32x128xf32>
      %25 = arith.mulf %24, %24 : vector<32x128xf32>
      %cst_18 = arith.constant dense<0.000000e+00> : vector<32xf32>
      %26 = vector.multi_reduction <add>, %25, %cst_18 [1] : vector<32x128xf32> to vector<32xf32>
      %27 = vector.shape_cast %26 : vector<32xf32> to vector<32x1xf32>
      %cst_19 = arith.constant 1.280000e+02 : f32
      %28 = vector.broadcast %cst_19 : f32 to vector<32x1xf32>
      %29 = arith.divf %27, %28 : vector<32x1xf32>
      %cst_20 = arith.constant 9.99999974E-6 : f32
      %30 = vector.broadcast %cst_20 : f32 to vector<32x1xf32>
      %31 = arith.addf %29, %30 : vector<32x1xf32>
      %32 = math.rsqrt %31 : vector<32x1xf32>
      %33 = vector.broadcast %32 : vector<32x1xf32> to vector<32x128xf32>
      %34 = arith.mulf %24, %33 : vector<32x128xf32>
      %c0_21 = arith.constant 0 : index
      %c0_22 = arith.constant 0 : index
      %35 = vector.load %arg6[%c0_21, %c0_22] : memref<1x128xf32, #tpu.memory_space<vmem>>, vector<1x128xf32>
      %36 = vector.broadcast %35 : vector<1x128xf32> to vector<32x128xf32>
      %37 = arith.mulf %34, %36 : vector<32x128xf32>
      %c0_23 = arith.constant 0 : index
      %c0_24 = arith.constant 0 : index
      %38 = vector.load %arg7[%c0_23, %c0_24] : memref<1x128xf32, #tpu.memory_space<vmem>>, vector<1x128xf32>
      %39 = vector.broadcast %38 : vector<1x128xf32> to vector<32x128xf32>
      %40 = arith.addf %37, %39 : vector<32x128xf32>
      %41 = arith.truncf %40 : vector<32x128xf32> to vector<32x128xbf16>
      %c0_25 = arith.constant 0 : index
      %c0_26 = arith.constant 0 : index
      %42 = vector.load %arg8[%c0_25, %c0_26] : memref<32x128xbf16, #tpu.memory_space<vmem>>, vector<32x128xbf16>
      tpu.vector_store %arg8[%c0_25, %c0_26], %41 {strides = array<i32>} : memref<32x128xbf16, #tpu.memory_space<vmem>>, vector<32x128xbf16>,
    } else {
    }
    return
  }
  func.func @transform_0(%arg0: i32, %arg1: i32) -> (i32, i32) {
    %c0_i32 = arith.constant 0 : i32
    return %arg0, %arg1 : i32, i32
  }
  func.func @transform_1(%arg0: i32, %arg1: i32) -> (i32, i32) {
    %c0_i32 = arith.constant 0 : i32
    %c0_i32_0 = arith.constant 0 : i32
    return %arg1, %c0_i32 : i32, i32
  }
  func.func @transform_2(%arg0: i32, %arg1: i32) -> (i32, i32) {
    %c0_i32 = arith.constant 0 : i32
    %c0_i32_0 = arith.constant 0 : i32
    %c0_i32_1 = arith.constant 0 : i32
    return %c0_i32, %c0_i32_0 : i32, i32
  }
  func.func @transform_3(%arg0: i32, %arg1: i32) -> (i32, i32) {
    %c0_i32 = arith.constant 0 : i32
    %c0_i32_0 = arith.constant 0 : i32
    return %arg0, %c0_i32 : i32, i32
  }
  func.func @transform_4(%arg0: i32, %arg1: i32) -> (i32, i32) {
    %c0_i32 = arith.constant 0 : i32
    %c0_i32_0 = arith.constant 0 : i32
    %c0_i32_1 = arith.constant 0 : i32
    return %c0_i32, %c0_i32_0 : i32, i32
  }
  func.func @transform_5(%arg0: i32, %arg1: i32) -> (i32, i32) {
    %c0_i32 = arith.constant 0 : i32
    %c0_i32_0 = arith.constant 0 : i32
    %c0_i32_1 = arith.constant 0 : i32
    return %c0_i32, %c0_i32_0 : i32, i32
  }
  func.func @transform_6(%arg0: i32, %arg1: i32) -> (i32, i32) {
    %c0_i32 = arith.constant 0 : i32
    %c0_i32_0 = arith.constant 0 : i32
    return %arg0, %c0_i32 : i32, i32
  }
}

module attributes {stable_mosaic.version = 11 : i64} {
  func.func @_matmul_kernel(%arg0: i32, %arg1: i32, %arg2: i32, %arg3: memref<32x128xbf16, #tpu.memory_space<vmem>>, %arg4: memref<128x256xbf16, #tpu.memory_space<vmem>>, %arg5: memref<1x256xf32, #tpu.memory_space<vmem>>, %arg6: memref<32x256xbf16, #tpu.memory_space<vmem>>, %arg7: memref<32x256xf32, #tpu.memory_space<vmem>>) attributes {dimension_semantics = [#tpu.dimension_semantics<parallel>, #tpu.dimension_semantics<parallel>, #tpu.dimension_semantics<arbitrary>], iteration_bounds = array<i64: 1, 2, 1>, scalar_prefetch = 0 : i64, scratch_operands = 1 : i64, tpu.core_type = #tpu.core_type<tc>, window_params = [{transform_indices = @transform_0, window_bounds = array<i64: 32, 128>}, {transform_indices = @transform_1, window_bounds = array<i64: 128, 256>}, {transform_indices = @transform_2, window_bounds = array<i64: 1, 256>}, {transform_indices = @transform_3, window_bounds = array<i64: 32, 256>}]} {
    %c0_i32 = arith.constant 0 : i32
    %0 = arith.cmpi eq, %arg2, %c0_i32 : i32
    %1 = arith.extui %0 : i1 to i32
    %c0_i32_0 = arith.constant 0 : i32
    %2 = arith.cmpi ne, %1, %c0_i32_0 : i32
    scf.if %2 {
      %cst_10 = arith.constant 0.000000e+00 : f32
      %12 = vector.broadcast %cst_10 : f32 to vector<32x256xf32>
      %c0_11 = arith.constant 0 : index
      %c0_12 = arith.constant 0 : index
      %13 = vector.load %arg7[%c0_11, %c0_12] : memref<32x256xf32, #tpu.memory_space<vmem>>, vector<32x256xf32>
      tpu.vector_store %arg7[%c0_11, %c0_12], %12 {strides = array<i32>} : memref<32x256xf32, #tpu.memory_space<vmem>>, vector<32x256xf32>,
    } else {
    }
    %c0 = arith.constant 0 : index
    %c0_1 = arith.constant 0 : index
    %3 = vector.load %arg7[%c0, %c0_1] : memref<32x256xf32, #tpu.memory_space<vmem>>, vector<32x256xf32>
    %c0_2 = arith.constant 0 : index
    %c0_3 = arith.constant 0 : index
    %4 = vector.load %arg3[%c0_2, %c0_3] : memref<32x128xbf16, #tpu.memory_space<vmem>>, vector<32x128xbf16>
    %c0_4 = arith.constant 0 : index
    %c0_5 = arith.constant 0 : index
    %5 = vector.load %arg4[%c0_4, %c0_5] : memref<128x256xbf16, #tpu.memory_space<vmem>>, vector<128x256xbf16>
    %cst = arith.constant dense<0.000000e+00> : vector<32x256xf32>
    %6 = tpu.matmul %4, %5, %cst {dimension_numbers = #tpu.dot_dimension_numbers<[1], [0], [0], [1], [0, 0, 1, 1], [], []>} : vector<32x128xbf16>, vector<128x256xbf16>, vector<32x256xf32> -> vector<32x256xf32>
    %7 = arith.addf %3, %6 : vector<32x256xf32>
    %c0_6 = arith.constant 0 : index
    %c0_7 = arith.constant 0 : index
    %8 = vector.load %arg7[%c0_6, %c0_7] : memref<32x256xf32, #tpu.memory_space<vmem>>, vector<32x256xf32>
    tpu.vector_store %arg7[%c0_6, %c0_7], %7 {strides = array<i32>} : memref<32x256xf32, #tpu.memory_space<vmem>>, vector<32x256xf32>,
    %c0_i32_8 = arith.constant 0 : i32
    %9 = arith.cmpi eq, %arg2, %c0_i32_8 : i32
    %10 = arith.extui %9 : i1 to i32
    %c0_i32_9 = arith.constant 0 : i32
    %11 = arith.cmpi ne, %10, %c0_i32_9 : i32
    scf.if %11 {
      %c0_10 = arith.constant 0 : index
      %c0_11 = arith.constant 0 : index
      %12 = vector.load %arg7[%c0_10, %c0_11] : memref<32x256xf32, #tpu.memory_space<vmem>>, vector<32x256xf32>
      %c0_12 = arith.constant 0 : index
      %c0_13 = arith.constant 0 : index
      %13 = vector.load %arg5[%c0_12, %c0_13] : memref<1x256xf32, #tpu.memory_space<vmem>>, vector<1x256xf32>
      %14 = vector.broadcast %13 : vector<1x256xf32> to vector<32x256xf32>
      %15 = arith.addf %12, %14 : vector<32x256xf32>
      %cst_14 = arith.constant 0.000000e+00 : f32
      %16 = vector.broadcast %cst_14 : f32 to vector<32x256xf32>
      %17 = arith.maximumf %15, %16 : vector<32x256xf32>
      %18 = arith.truncf %17 : vector<32x256xf32> to vector<32x256xbf16>
      %c0_15 = arith.constant 0 : index
      %c0_16 = arith.constant 0 : index
      %19 = vector.load %arg6[%c0_15, %c0_16] : memref<32x256xbf16, #tpu.memory_space<vmem>>, vector<32x256xbf16>
      tpu.vector_store %arg6[%c0_15, %c0_16], %18 {strides = array<i32>} : memref<32x256xbf16, #tpu.memory_space<vmem>>, vector<32x256xbf16>,
    } else {
    }
    return
  }
  func.func @transform_0(%arg0: i32, %arg1: i32, %arg2: i32) -> (i32, i32) {
    %c0_i32 = arith.constant 0 : i32
    return %arg0, %arg2 : i32, i32
  }
  func.func @transform_1(%arg0: i32, %arg1: i32, %arg2: i32) -> (i32, i32) {
    %c0_i32 = arith.constant 0 : i32
    return %arg2, %arg1 : i32, i32
  }
  func.func @transform_2(%arg0: i32, %arg1: i32, %arg2: i32) -> (i32, i32) {
    %c0_i32 = arith.constant 0 : i32
    %c0_i32_0 = arith.constant 0 : i32
    return %c0_i32, %arg1 : i32, i32
  }
  func.func @transform_3(%arg0: i32, %arg1: i32, %arg2: i32) -> (i32, i32) {
    %c0_i32 = arith.constant 0 : i32
    return %arg0, %arg1 : i32, i32
  }
}

module attributes {stable_mosaic.version = 11 : i64} {
  func.func @_matmul_res_ln_kernel(%arg0: i32, %arg1: i32, %arg2: memref<32x512xbf16, #tpu.memory_space<vmem>>, %arg3: memref<512x128xbf16, #tpu.memory_space<vmem>>, %arg4: memref<1x128xf32, #tpu.memory_space<vmem>>, %arg5: memref<32x128xbf16, #tpu.memory_space<vmem>>, %arg6: memref<1x128xf32, #tpu.memory_space<vmem>>, %arg7: memref<1x128xf32, #tpu.memory_space<vmem>>, %arg8: memref<32x128xbf16, #tpu.memory_space<vmem>>, %arg9: memref<32x128xf32, #tpu.memory_space<vmem>>) attributes {dimension_semantics = [#tpu.dimension_semantics<parallel>, #tpu.dimension_semantics<arbitrary>], iteration_bounds = array<i64: 1, 1>, scalar_prefetch = 0 : i64, scratch_operands = 1 : i64, tpu.core_type = #tpu.core_type<tc>, window_params = [{transform_indices = @transform_0, window_bounds = array<i64: 32, 512>}, {transform_indices = @transform_1, window_bounds = array<i64: 512, 128>}, {pipeline_mode = #tpu.pipeline_mode<synchronous>, transform_indices = @transform_2, window_bounds = array<i64: 1, 128>}, {transform_indices = @transform_3, window_bounds = array<i64: 32, 128>}, {pipeline_mode = #tpu.pipeline_mode<synchronous>, transform_indices = @transform_4, window_bounds = array<i64: 1, 128>}, {pipeline_mode = #tpu.pipeline_mode<synchronous>, transform_indices = @transform_5, window_bounds = array<i64: 1, 128>}, {transform_indices = @transform_6, window_bounds = array<i64: 32, 128>}]} {
    %c0_i32 = arith.constant 0 : i32
    %0 = arith.cmpi eq, %arg1, %c0_i32 : i32
    %1 = arith.extui %0 : i1 to i32
    %c0_i32_0 = arith.constant 0 : i32
    %2 = arith.cmpi ne, %1, %c0_i32_0 : i32
    scf.if %2 {
      %cst_10 = arith.constant 0.000000e+00 : f32
      %12 = vector.broadcast %cst_10 : f32 to vector<32x128xf32>
      %c0_11 = arith.constant 0 : index
      %c0_12 = arith.constant 0 : index
      %13 = vector.load %arg9[%c0_11, %c0_12] : memref<32x128xf32, #tpu.memory_space<vmem>>, vector<32x128xf32>
      tpu.vector_store %arg9[%c0_11, %c0_12], %12 {strides = array<i32>} : memref<32x128xf32, #tpu.memory_space<vmem>>, vector<32x128xf32>,
    } else {
    }
    %c0 = arith.constant 0 : index
    %c0_1 = arith.constant 0 : index
    %3 = vector.load %arg9[%c0, %c0_1] : memref<32x128xf32, #tpu.memory_space<vmem>>, vector<32x128xf32>
    %c0_2 = arith.constant 0 : index
    %c0_3 = arith.constant 0 : index
    %4 = vector.load %arg2[%c0_2, %c0_3] : memref<32x512xbf16, #tpu.memory_space<vmem>>, vector<32x512xbf16>
    %c0_4 = arith.constant 0 : index
    %c0_5 = arith.constant 0 : index
    %5 = vector.load %arg3[%c0_4, %c0_5] : memref<512x128xbf16, #tpu.memory_space<vmem>>, vector<512x128xbf16>
    %cst = arith.constant dense<0.000000e+00> : vector<32x128xf32>
    %6 = tpu.matmul %4, %5, %cst {dimension_numbers = #tpu.dot_dimension_numbers<[1], [0], [0], [1], [0, 0, 1, 1], [], []>} : vector<32x512xbf16>, vector<512x128xbf16>, vector<32x128xf32> -> vector<32x128xf32>
    %7 = arith.addf %3, %6 : vector<32x128xf32>
    %c0_6 = arith.constant 0 : index
    %c0_7 = arith.constant 0 : index
    %8 = vector.load %arg9[%c0_6, %c0_7] : memref<32x128xf32, #tpu.memory_space<vmem>>, vector<32x128xf32>
    tpu.vector_store %arg9[%c0_6, %c0_7], %7 {strides = array<i32>} : memref<32x128xf32, #tpu.memory_space<vmem>>, vector<32x128xf32>,
    %c0_i32_8 = arith.constant 0 : i32
    %9 = arith.cmpi eq, %arg1, %c0_i32_8 : i32
    %10 = arith.extui %9 : i1 to i32
    %c0_i32_9 = arith.constant 0 : i32
    %11 = arith.cmpi ne, %10, %c0_i32_9 : i32
    scf.if %11 {
      %c0_10 = arith.constant 0 : index
      %c0_11 = arith.constant 0 : index
      %12 = vector.load %arg9[%c0_10, %c0_11] : memref<32x128xf32, #tpu.memory_space<vmem>>, vector<32x128xf32>
      %c0_12 = arith.constant 0 : index
      %c0_13 = arith.constant 0 : index
      %13 = vector.load %arg4[%c0_12, %c0_13] : memref<1x128xf32, #tpu.memory_space<vmem>>, vector<1x128xf32>
      %14 = vector.broadcast %13 : vector<1x128xf32> to vector<32x128xf32>
      %15 = arith.addf %12, %14 : vector<32x128xf32>
      %c0_14 = arith.constant 0 : index
      %c0_15 = arith.constant 0 : index
      %16 = vector.load %arg5[%c0_14, %c0_15] : memref<32x128xbf16, #tpu.memory_space<vmem>>, vector<32x128xbf16>
      %17 = arith.extf %16 : vector<32x128xbf16> to vector<32x128xf32>
      %18 = arith.addf %15, %17 : vector<32x128xf32>
      %cst_16 = arith.constant dense<0.000000e+00> : vector<32xf32>
      %19 = vector.multi_reduction <add>, %18, %cst_16 [1] : vector<32x128xf32> to vector<32xf32>
      %20 = vector.shape_cast %19 : vector<32xf32> to vector<32x1xf32>
      %cst_17 = arith.constant 1.280000e+02 : f32
      %21 = vector.broadcast %cst_17 : f32 to vector<32x1xf32>
      %22 = arith.divf %20, %21 : vector<32x1xf32>
      %23 = vector.broadcast %22 : vector<32x1xf32> to vector<32x128xf32>
      %24 = arith.subf %18, %23 : vector<32x128xf32>
      %25 = arith.mulf %24, %24 : vector<32x128xf32>
      %cst_18 = arith.constant dense<0.000000e+00> : vector<32xf32>
      %26 = vector.multi_reduction <add>, %25, %cst_18 [1] : vector<32x128xf32> to vector<32xf32>
      %27 = vector.shape_cast %26 : vector<32xf32> to vector<32x1xf32>
      %cst_19 = arith.constant 1.280000e+02 : f32
      %28 = vector.broadcast %cst_19 : f32 to vector<32x1xf32>
      %29 = arith.divf %27, %28 : vector<32x1xf32>
      %cst_20 = arith.constant 9.99999974E-6 : f32
      %30 = vector.broadcast %cst_20 : f32 to vector<32x1xf32>
      %31 = arith.addf %29, %30 : vector<32x1xf32>
      %32 = math.rsqrt %31 : vector<32x1xf32>
      %33 = vector.broadcast %32 : vector<32x1xf32> to vector<32x128xf32>
      %34 = arith.mulf %24, %33 : vector<32x128xf32>
      %c0_21 = arith.constant 0 : index
      %c0_22 = arith.constant 0 : index
      %35 = vector.load %arg6[%c0_21, %c0_22] : memref<1x128xf32, #tpu.memory_space<vmem>>, vector<1x128xf32>
      %36 = vector.broadcast %35 : vector<1x128xf32> to vector<32x128xf32>
      %37 = arith.mulf %34, %36 : vector<32x128xf32>
      %c0_23 = arith.constant 0 : index
      %c0_24 = arith.constant 0 : index
      %38 = vector.load %arg7[%c0_23, %c0_24] : memref<1x128xf32, #tpu.memory_space<vmem>>, vector<1x128xf32>
      %39 = vector.broadcast %38 : vector<1x128xf32> to vector<32x128xf32>
      %40 = arith.addf %37, %39 : vector<32x128xf32>
      %41 = arith.truncf %40 : vector<32x128xf32> to vector<32x128xbf16>
      %c0_25 = arith.constant 0 : index
      %c0_26 = arith.constant 0 : index
      %42 = vector.load %arg8[%c0_25, %c0_26] : memref<32x128xbf16, #tpu.memory_space<vmem>>, vector<32x128xbf16>
      tpu.vector_store %arg8[%c0_25, %c0_26], %41 {strides = array<i32>} : memref<32x128xbf16, #tpu.memory_space<vmem>>, vector<32x128xbf16>,
    } else {
    }
    return
  }
  func.func @transform_0(%arg0: i32, %arg1: i32) -> (i32, i32) {
    %c0_i32 = arith.constant 0 : i32
    return %arg0, %arg1 : i32, i32
  }
  func.func @transform_1(%arg0: i32, %arg1: i32) -> (i32, i32) {
    %c0_i32 = arith.constant 0 : i32
    %c0_i32_0 = arith.constant 0 : i32
    return %arg1, %c0_i32 : i32, i32
  }
  func.func @transform_2(%arg0: i32, %arg1: i32) -> (i32, i32) {
    %c0_i32 = arith.constant 0 : i32
    %c0_i32_0 = arith.constant 0 : i32
    %c0_i32_1 = arith.constant 0 : i32
    return %c0_i32, %c0_i32_0 : i32, i32
  }
  func.func @transform_3(%arg0: i32, %arg1: i32) -> (i32, i32) {
    %c0_i32 = arith.constant 0 : i32
    %c0_i32_0 = arith.constant 0 : i32
    return %arg0, %c0_i32 : i32, i32
  }
  func.func @transform_4(%arg0: i32, %arg1: i32) -> (i32, i32) {
    %c0_i32 = arith.constant 0 : i32
    %c0_i32_0 = arith.constant 0 : i32
    %c0_i32_1 = arith.constant 0 : i32
    return %c0_i32, %c0_i32_0 : i32, i32
  }
  func.func @transform_5(%arg0: i32, %arg1: i32) -> (i32, i32) {
    %c0_i32 = arith.constant 0 : i32
    %c0_i32_0 = arith.constant 0 : i32
    %c0_i32_1 = arith.constant 0 : i32
    return %c0_i32, %c0_i32_0 : i32, i32
  }
  func.func @transform_6(%arg0: i32, %arg1: i32) -> (i32, i32) {
    %c0_i32 = arith.constant 0 : i32
    %c0_i32_0 = arith.constant 0 : i32
    return %arg0, %c0_i32 : i32, i32
  }
}

module attributes {stable_mosaic.version = 11 : i64} {
  func.func @_pool_regressor_kernel(%arg0: i32, %arg1: memref<2x16x128xbf16, #tpu.memory_space<vmem>>, %arg2: memref<2x16xf32, #tpu.memory_space<vmem>>, %arg3: memref<128x128xbf16, #tpu.memory_space<vmem>>, %arg4: memref<1x128xf32, #tpu.memory_space<vmem>>, %arg5: memref<128x128xbf16, #tpu.memory_space<vmem>>, %arg6: memref<1x128xf32, #tpu.memory_space<vmem>>, %arg7: memref<2x128xf32, #tpu.memory_space<vmem>>) attributes {dimension_semantics = [#tpu.dimension_semantics<parallel>], iteration_bounds = array<i64: 1>, scalar_prefetch = 0 : i64, scratch_operands = 0 : i64, tpu.core_type = #tpu.core_type<tc>, window_params = [{pipeline_mode = #tpu.pipeline_mode<synchronous>, transform_indices = @transform_0, window_bounds = array<i64: 2, 16, 128>}, {pipeline_mode = #tpu.pipeline_mode<synchronous>, transform_indices = @transform_1, window_bounds = array<i64: 2, 16>}, {pipeline_mode = #tpu.pipeline_mode<synchronous>, transform_indices = @transform_2, window_bounds = array<i64: 128, 128>}, {pipeline_mode = #tpu.pipeline_mode<synchronous>, transform_indices = @transform_3, window_bounds = array<i64: 1, 128>}, {pipeline_mode = #tpu.pipeline_mode<synchronous>, transform_indices = @transform_4, window_bounds = array<i64: 128, 128>}, {pipeline_mode = #tpu.pipeline_mode<synchronous>, transform_indices = @transform_5, window_bounds = array<i64: 1, 128>}, {pipeline_mode = #tpu.pipeline_mode<synchronous>, transform_indices = @transform_6, window_bounds = array<i64: 2, 128>}]} {
    %c0 = arith.constant 0 : index
    %c0_0 = arith.constant 0 : index
    %c0_1 = arith.constant 0 : index
    %0 = vector.load %arg1[%c0, %c0_0, %c0_1] : memref<2x16x128xbf16, #tpu.memory_space<vmem>>, vector<2x16x128xbf16>
    %1 = arith.extf %0 : vector<2x16x128xbf16> to vector<2x16x128xf32>
    %c0_2 = arith.constant 0 : index
    %c0_3 = arith.constant 0 : index
    %2 = vector.load %arg2[%c0_2, %c0_3] : memref<2x16xf32, #tpu.memory_space<vmem>>, vector<2x16xf32>
    %3 = vector.shape_cast %2 : vector<2x16xf32> to vector<2x16x1xf32>
    %4 = vector.broadcast %3 : vector<2x16x1xf32> to vector<2x16x128xf32>
    %5 = arith.mulf %1, %4 : vector<2x16x128xf32>
    %cst = arith.constant dense<0.000000e+00> : vector<2x128xf32>
    %6 = vector.multi_reduction <add>, %5, %cst [1] : vector<2x16x128xf32> to vector<2x128xf32>
    %cst_4 = arith.constant dense<0.000000e+00> : vector<2xf32>
    %7 = vector.multi_reduction <add>, %2, %cst_4 [1] : vector<2x16xf32> to vector<2xf32>
    %8 = vector.shape_cast %7 : vector<2xf32> to vector<2x1xf32>
    %9 = vector.broadcast %8 : vector<2x1xf32> to vector<2x128xf32>
    %10 = arith.divf %6, %9 : vector<2x128xf32>
    %11 = arith.truncf %10 : vector<2x128xf32> to vector<2x128xbf16>
    %c0_5 = arith.constant 0 : index
    %c0_6 = arith.constant 0 : index
    %12 = vector.load %arg3[%c0_5, %c0_6] : memref<128x128xbf16, #tpu.memory_space<vmem>>, vector<128x128xbf16>
    %cst_7 = arith.constant dense<0.000000e+00> : vector<2x128xf32>
    %13 = tpu.matmul %11, %12, %cst_7 {dimension_numbers = #tpu.dot_dimension_numbers<[1], [0], [0], [1], [0, 0, 1, 1], [], []>} : vector<2x128xbf16>, vector<128x128xbf16>, vector<2x128xf32> -> vector<2x128xf32>
    %c0_8 = arith.constant 0 : index
    %c0_9 = arith.constant 0 : index
    %14 = vector.load %arg4[%c0_8, %c0_9] : memref<1x128xf32, #tpu.memory_space<vmem>>, vector<1x128xf32>
    %15 = vector.broadcast %14 : vector<1x128xf32> to vector<2x128xf32>
    %16 = arith.addf %13, %15 : vector<2x128xf32>
    %cst_10 = arith.constant 0.000000e+00 : f32
    %17 = vector.broadcast %cst_10 : f32 to vector<2x128xf32>
    %18 = arith.maximumf %16, %17 : vector<2x128xf32>
    %19 = arith.truncf %18 : vector<2x128xf32> to vector<2x128xbf16>
    %c0_11 = arith.constant 0 : index
    %c0_12 = arith.constant 0 : index
    %20 = vector.load %arg5[%c0_11, %c0_12] : memref<128x128xbf16, #tpu.memory_space<vmem>>, vector<128x128xbf16>
    %cst_13 = arith.constant dense<0.000000e+00> : vector<2x128xf32>
    %21 = tpu.matmul %19, %20, %cst_13 {dimension_numbers = #tpu.dot_dimension_numbers<[1], [0], [0], [1], [0, 0, 1, 1], [], []>} : vector<2x128xbf16>, vector<128x128xbf16>, vector<2x128xf32> -> vector<2x128xf32>
    %c0_14 = arith.constant 0 : index
    %c0_15 = arith.constant 0 : index
    %22 = vector.load %arg6[%c0_14, %c0_15] : memref<1x128xf32, #tpu.memory_space<vmem>>, vector<1x128xf32>
    %23 = vector.broadcast %22 : vector<1x128xf32> to vector<2x128xf32>
    %24 = arith.addf %21, %23 : vector<2x128xf32>
    %c0_16 = arith.constant 0 : index
    %c0_17 = arith.constant 0 : index
    %25 = vector.load %arg7[%c0_16, %c0_17] : memref<2x128xf32, #tpu.memory_space<vmem>>, vector<2x128xf32>
    tpu.vector_store %arg7[%c0_16, %c0_17], %24 {strides = array<i32>} : memref<2x128xf32, #tpu.memory_space<vmem>>, vector<2x128xf32>,
    return
  }
  func.func @transform_0(%arg0: i32) -> (i32, i32, i32) {
    %c0_i32 = arith.constant 0 : i32
    %c0_i32_0 = arith.constant 0 : i32
    %c0_i32_1 = arith.constant 0 : i32
    %c0_i32_2 = arith.constant 0 : i32
    return %c0_i32, %c0_i32_0, %c0_i32_1 : i32, i32, i32
  }
  func.func @transform_1(%arg0: i32) -> (i32, i32) {
    %c0_i32 = arith.constant 0 : i32
    %c0_i32_0 = arith.constant 0 : i32
    %c0_i32_1 = arith.constant 0 : i32
    return %c0_i32, %c0_i32_0 : i32, i32
  }
  func.func @transform_2(%arg0: i32) -> (i32, i32) {
    %c0_i32 = arith.constant 0 : i32
    %c0_i32_0 = arith.constant 0 : i32
    %c0_i32_1 = arith.constant 0 : i32
    return %c0_i32, %c0_i32_0 : i32, i32
  }
  func.func @transform_3(%arg0: i32) -> (i32, i32) {
    %c0_i32 = arith.constant 0 : i32
    %c0_i32_0 = arith.constant 0 : i32
    %c0_i32_1 = arith.constant 0 : i32
    return %c0_i32, %c0_i32_0 : i32, i32
  }
  func.func @transform_4(%arg0: i32) -> (i32, i32) {
    %c0_i32 = arith.constant 0 : i32
    %c0_i32_0 = arith.constant 0 : i32
    %c0_i32_1 = arith.constant 0 : i32
    return %c0_i32, %c0_i32_0 : i32, i32
  }
  func.func @transform_5(%arg0: i32) -> (i32, i32) {
    %c0_i32 = arith.constant 0 : i32
    %c0_i32_0 = arith.constant 0 : i32
    %c0_i32_1 = arith.constant 0 : i32
    return %c0_i32, %c0_i32_0 : i32, i32
  }
  func.func @transform_6(%arg0: i32) -> (i32, i32) {
    %c0_i32 = arith.constant 0 : i32
    %c0_i32_0 = arith.constant 0 : i32
    %c0_i32_1 = arith.constant 0 : i32
    return %c0_i32, %c0_i32_0 : i32, i32
  }
}

</mosaic_0001>

<bundles_post_ra>
// kernel: snip_predictor_forward.7
= control target key start
LH: loop header
LB: loop body
LE: loop exit
PB: predicated region body
PF: predicated region fallthrough
CT: control target
= control target key end

     0   :  { %s224_s0 = inlined_call_operand.vmem [shape: bf16[32,128], index: 0, kind: input, shape index: {}]   ;;  %s225_s1 = inlined_call_operand.vmem [shape: bf16[32,128], index: 1, kind: input, shape index: {}]   ;;  %s226_s2 = inlined_call_operand.vmem [shape: f32[1,128], index: 2, kind: input, shape index: {}]   ;;  %s227_s3 = inlined_call_operand.vmem [shape: f32[1,128], index: 3, kind: input, shape index: {}]   ;;  %s228_s4 = inlined_call_operand.vmem [shape: bf16[32,128], index: 4, kind: output, shape index: {}]  }
   0x1   :  { %v139_v0 = vld [vmem:[%s224_s0] sm:$0xff]   ;;  %v164_v2 = vld [vmem:[%s224_s0 + $0x8] sm:$0xff]  }
   0x2   :  { %v147_v1 = vld [vmem:[%s225_s1] sm:$0xff]   ;;  %v140_v3 = vunpack.c.l.bf16 %v139_v0  ;;  %v144_v5 = vunpack.c.l.bf16 %v164_v2  ;;  %v165_v6 = vld [vmem:[%s225_s1 + $0x8] sm:$0xff]   ;;  %v141_v7 = vunpack.c.h.bf16 %v139_v0  ;;  %v145_v10 = vunpack.c.h.bf16 %v164_v2 }
   0x3   :  { %v148_v4 = vunpack.c.l.bf16 %v147_v1  ;;  %v152_v8 = vunpack.c.l.bf16 %v165_v6  ;;  %v149_v9 = vunpack.c.h.bf16 %v147_v1  ;;  %v153_v11 = vunpack.c.h.bf16 %v165_v6  ;;  %v128_v46 = vld [vmem:[%s226_s2] ss:$0 sm:$0xff] }
   0x4   :  { %v129_v51 = vld [vmem:[%s227_s3] ss:$0 sm:$0xff] }
   0x5   :  { %v33_v12 = vadd.f32 %v148_v4, %v140_v3  ;;  %v35_v13 = vadd.f32 %v152_v8, %v144_v5  ;;  %v34_v14 = vadd.f32 %v149_v9, %v141_v7  ;;  %v36_v15 = vadd.f32 %v153_v11, %v145_v10 }
   0x7   :  { %37 = vadd.xlane.f32.xlu0 %v33_v12  ;;  %41 = vadd.xlane.f32.xlu1 %v35_v13 }
   0xb   :  { %39 = vadd.xlane.f32.xlu0 %v34_v14  ;;  %43 = vadd.xlane.f32.xlu1 %v36_v15 }
  0x90   :  { %v38_v16 = vpop.xlane.xlu0 %37  ;;  %v42_v18 = vpop.xlane.xlu1 %41 }
  0x91   :  { %v46_v17 = vmul.f32 0.0078125, %v38_v16  ;;  %v48_v19 = vmul.f32 0.0078125, %v42_v18 }
  0x93   :  { %v50_v20 = vsub.f32 %v33_v12, %v46_v17  ;;  %v52_v21 = vsub.f32 %v35_v13, %v48_v19 }
  0x94   :  { %v40_v22 = vpop.xlane.xlu0 %39  ;;  %v44_v25 = vpop.xlane.xlu1 %43 }
  0x95   :  { %v47_v23 = vmul.f32 0.0078125, %v40_v22  ;;  %v54_v24 = vmul.f32 %v50_v20, %v50_v20  ;;  %v49_v26 = vmul.f32 0.0078125, %v44_v25  ;;  %v56_v28 = vmul.f32 %v52_v21, %v52_v21 }
  0x97   :  { %v51_v27 = vsub.f32 %v34_v14, %v47_v23  ;;  %58 = vadd.xlane.f32.xlu0 %v54_v24  ;;  %v53_v29 = vsub.f32 %v36_v15, %v49_v26 }
  0x99   :  { %v55_v30 = vmul.f32 %v51_v27, %v51_v27  ;;  %v57_v31 = vmul.f32 %v53_v29, %v53_v29 }
  0x9b   :  { %62 = vadd.xlane.f32.xlu0 %v56_v28  ;;  %60 = vadd.xlane.f32.xlu1 %v55_v30 }
  0x9f   :  { %64 = vadd.xlane.f32.xlu1 %v57_v31 }
 0x120   :  { %v59_v32 = vpop.xlane.xlu0 %58 }
 0x121   :  { %v66_v33 = vmul.f32 0.0078125, %v59_v32 }
 0x123   :  { %v70_v34 = vadd.f32 1e-05, %v66_v33 }
 0x124   :  { %v61_v35 = vpop.xlane.xlu1 %60  ;;  %v63_v36 = vpop.xlane.xlu0 %62 }
 0x125   :  { %167 = vrsqrt.f32 %v70_v34  ;;  %v67_v37 = vmul.f32 0.0078125, %v61_v35  ;;  %v68_v38 = vmul.f32 0.0078125, %v63_v36 }
 0x127   :  { %v71_v39 = vadd.f32 1e-05, %v67_v37  ;;  %v72_v40 = vadd.f32 1e-05, %v68_v38 }
 0x128   :  { %v65_v41 = vpop.xlane.xlu1 %64 }
 0x129   :  { %169 = vrsqrt.f32 %v71_v39  ;;  %v69_v42 = vmul.f32 0.0078125, %v65_v41 }
 0x12a   :  { %171 = vrsqrt.f32 %v72_v40 }
 0x12b   :  { %v73_v43 = vadd.f32 1e-05, %v69_v42 }
 0x12d   :  { %173 = vrsqrt.f32 %v73_v43 }
 0x132   :  { %v168_v44 = vpop.eup %167 }
 0x133   :  { %v78_v45 = vmul.f32 %v168_v44, %v50_v20 }
 0x135   :  { %v89_v49 = vmul.f32 %v128_v46, %v78_v45 }
 0x136   :  { %v170_v47 = vpop.eup %169 }
 0x137   :  { %v172_v48 = vpop.eup %171  ;;  %v79_v50 = vmul.f32 %v170_v47, %v51_v27  ;;  %v100_v55 = vadd.f32 %v129_v51, %v89_v49 }
 0x138   :  { %v80_v52 = vmul.f32 %v172_v48, %v52_v21 }
 0x139   :  { %v90_v53 = vmul.f32 %v128_v46, %v79_v50 }
 0x13a   :  { %v174_v54 = vpop.eup %173  ;;  %v91_v57 = vmul.f32 %v128_v46, %v80_v52 }
 0x13b   :  { %v101_v56 = vadd.f32 %v129_v51, %v90_v53  ;;  %v81_v58 = vmul.f32 %v174_v54, %v53_v29 }
 0x13c   :  { %v102_v61 = vadd.f32 %v129_v51, %v91_v57 }
 0x13d   :  { %v157_v59 = vpack.c.bf16 %v101_v56, %v100_v55  ;;  %v92_v60 = vmul.f32 %v128_v46, %v81_v58 }
 0x13f   :  { %158 = vst [vmem:[%s228_s4] sm:$0xff] %v157_v59   ;;  %v103_v62 = vadd.f32 %v129_v51, %v92_v60 }
 0x141   :  { %v162_v63 = vpack.c.bf16 %v103_v62, %v102_v61 }
 0x143   :  { %166 = vst [vmem:[%s228_s4 + $0x8] sm:$0xff] %v162_v63  }

// kernel: snip_predictor_forward.8
= control target key start
LH: loop header
LB: loop body
LE: loop exit
PB: predicated region body
PF: predicated region fallthrough
CT: control target
= control target key end

     0   :  { %s879_s12 = smov 0   ;;  %s881_s13 = smov 0   ;;  %s984_s0 = inlined_call_operand.vmem [shape: bf16[32,128], index: 0, kind: input, shape index: {}]   ;;  %s985_s1 = inlined_call_operand.vmem [shape: bf16[128,384], index: 1, kind: input, shape index: {}]   ;;  %s986_s2 = inlined_call_operand.vmem [shape: f32[1,384], index: 2, kind: input, shape index: {}]   ;;  %s987_s3 = inlined_call_operand.vmem [shape: bf16[32,384], index: 3, kind: output, shape index: {}]  }
   0x1   :  { %s883_s14 = smov 0   ;;  %s885_s15 = smov 0  }
   0x2   :  { %s887_s16 = smov 0  }
   0x3 LB: > { %s28_s17 = sadd.s32 1, %s853_s15  ;;  %s695_s18 = sadd.s32 4294967295, %s857_s16   ;;  %s857_s16 = sphi %s887_s16, %s13_s16   ;;  %s853_s15 = sphi %s885_s15, %s992_s15   ;;  %s849_s14 = sphi %s883_s14, %s991_s14   ;;  %s845_s13 = sphi %s881_s13, %s990_s13   ;;  %s841_s12 = sphi %s879_s12, %s989_s12  }
   0x4   : > { %p30_p0 = scmp.ge.s32.totalorder %s28_s17, 3  ;;  %p76_p1 = scmp.ne.s32.totalorder %s845_s13, %s841_s12 }
   0x5   : > { %p77_p2 = scmp.eq.s32.totalorder %s857_s16, 0  ;;  %p134_p4 = scmp.eq.s32.totalorder %s695_s18, 2 }
   0x6   : > { %s994_s17 = smov (%p30_p0, %s28_s17), 0  ;;  %s69_s20 = sadd.s32 1, %s845_s13 }
   0x7   : > { %p78_p3 = por %p77_p2, %p76_p1  ;;  %s65_s19 = ssub.s32 %s853_s15, %s994_s17 }
   0x8   : > { %p67_p5 = scmp.eq.s32.totalorder %s65_s19, 0  ;;  %p914_p6 = por %p134_p4, %p76_p1 }
   0x9   : > { %p699_p7 = scmp.ge.s32.totalorder %s857_s16, 3 }
   0xa   : > { %s919_s22 = scalar_select %p67_p5, %s845_s13, %s69_s20  }
   0xb   : > { %168 = sbr.rel (%p699_p7) target bundleno = 30 (0x1e), region = 20 }
  0x10   : > { %171 = sbr.rel (!%p78_p3) target bundleno = 30 (0x1e), region = 24  ;;  %s173_s23 = sand.u32 (%p78_p3), 1, %s845_s13  }
  0x11   : > { %s701_s24 = sshll.u32 (%p78_p3), %s853_s15, 2  ;;  %s700_s25 = sshll.u32 (%p78_p3), %s173_s23, 6 }
  0x12   : > { %s927_s28 = scalar_lea.vmem (%p78_p3), %s985_s1, %s701_s24  ;;  %s175_s29 = scalar_lea.vmem (%p78_p3), [#allocation3], %s700_s25 }
  0x13   : > { %v197_v0 = vld [vmem:[%s927_s28] sm:$0xf] (%p78_p3)  ;;  %v199_v1 = vld [vmem:[%s927_s28 + $0xc] sm:$0xf] (%p78_p3)  ;;  %v201_v2 = vld [vmem:[%s927_s28 + $0x18] sm:$0xf] (%p78_p3) }
  0x14   : > { %198 = vst [vmem:[%s175_s29] sm:$0xf] (%p78_p3), %v197_v0  ;;  %200 = vst [vmem:[%s175_s29 + $0x4] sm:$0xf] (%p78_p3), %v199_v1  ;;  %v203_v3 = vld [vmem:[%s927_s28 + $0x24] sm:$0xf] (%p78_p3) }
  0x15   : > { %v205_v4 = vld [vmem:[%s927_s28 + $0x30] sm:$0xf]  ;;  %202 = vst [vmem:[%s175_s29 + $0x8] sm:$0xf] %v201_v2  ;;  %204 = vst [vmem:[%s175_s29 + $0xc] sm:$0xf] %v203_v3 }
  0x16   : > { %206 = vst [vmem:[%s175_s29 + $0x10] sm:$0xf] %v205_v4  ;;  %v207_v5 = vld [vmem:[%s927_s28 + $0x3c] sm:$0xf]  ;;  %v209_v6 = vld [vmem:[%s927_s28 + $0x48] sm:$0xf] }
  0x17   : > { %v211_v7 = vld [vmem:[%s927_s28 + $0x54] sm:$0xf]  ;;  %208 = vst [vmem:[%s175_s29 + $0x14] sm:$0xf] %v207_v5  ;;  %210 = vst [vmem:[%s175_s29 + $0x18] sm:$0xf] %v209_v6 }
  0x18   : > { %212 = vst [vmem:[%s175_s29 + $0x1c] sm:$0xf] %v211_v7  ;;  %v213_v8 = vld [vmem:[%s927_s28 + $0x60] sm:$0xf]  ;;  %v215_v9 = vld [vmem:[%s927_s28 + $0x6c] sm:$0xf] }
  0x19   : > { %v217_v10 = vld [vmem:[%s927_s28 + $0x78] sm:$0xf]  ;;  %214 = vst [vmem:[%s175_s29 + $0x20] sm:$0xf] %v213_v8  ;;  %216 = vst [vmem:[%s175_s29 + $0x24] sm:$0xf] %v215_v9 }
  0x1a   : > { %218 = vst [vmem:[%s175_s29 + $0x28] sm:$0xf] %v217_v10  ;;  %v219_v11 = vld [vmem:[%s927_s28 + $0x84] sm:$0xf]  ;;  %v221_v12 = vld [vmem:[%s927_s28 + $0x90] sm:$0xf] }
  0x1b   : > { %v223_v13 = vld [vmem:[%s927_s28 + $0x9c] sm:$0xf]  ;;  %220 = vst [vmem:[%s175_s29 + $0x2c] sm:$0xf] %v219_v11  ;;  %222 = vst [vmem:[%s175_s29 + $0x30] sm:$0xf] %v221_v12 }
  0x1c   : > { %224 = vst [vmem:[%s175_s29 + $0x34] sm:$0xf] %v223_v13  ;;  %v225_v14 = vld [vmem:[%s927_s28 + $0xa8] sm:$0xf]  ;;  %v227_v15 = vld [vmem:[%s927_s28 + $0xb4] sm:$0xf] }
  0x1d   : > { %226 = vst [vmem:[%s175_s29 + $0x38] sm:$0xf] %v225_v14  ;;  %228 = vst [vmem:[%s175_s29 + $0x3c] sm:$0xf] %v227_v15 }
  0x1e PF: > { %p702_p8 = scmp.ge.s32.totalorder %s857_s16, 1  ;;  %p289_p9 = scmp.lt.s32.totalorder %s857_s16, 4 }
  0x20   : > { %p290_p10 = pnand %p702_p8, %p289_p9 }
  0x21   : > { %s296_s30 = sand.u32 (!%p290_p10), 1, %s841_s12   ;;  %p339_p11 = scmp.lt.s32.totalorder (!%p290_p10), %s849_s14, 2 }
  0x22   : > { %293 = sbr.rel (%p290_p10) target bundleno = 284 (0x11c), region = 69  ;;  %s703_s6 = sshll.u32 (!%p290_p10), %s296_s30, 6 }
  0x23   : > { %s298_s7 = scalar_lea.vmem (!%p290_p10), [#allocation3], %s703_s6  ;;  %s704_s20 = sshll.u32 (!%p290_p10), %s296_s30, 4 }
  0x24   : > { %s328_s23 = scalar_lea.vmem (!%p290_p10), [#allocation4], %s704_s20 }
  0x27   : > { %v817_v16 = vld [vmem:[%s984_s0] sm:$0xff]   ;;  %v809_v17 = vld [vmem:[%s298_s7 + $0x38] sm:$0xff]   ;;  %v810_v18 = vld [vmem:[%s298_s7 + $0x30] sm:$0xff]   ;;  %s340_s10 = scalar_select %p339_p11, %s849_s14, 2 }
  0x28   : > { %765 = vmatprep.mubr.bf16.mxu0 %v817_v16  ;;  %749 = vmatprep.subr.bf16.mxu0 %v809_v17  ;;  %v811_v19 = vld [vmem:[%s298_s7 + $0x28] sm:$0xff]   ;;  %v812_v20 = vld [vmem:[%s298_s7 + $0x20] sm:$0xff]   ;;  %v813_v21 = vld [vmem:[%s298_s7 + $0x18] sm:$0xff]   ;;  %s721_s24 = sshll.u32 (%p914_p6), %s849_s14, 2 }
  0x29   : > { %750 = vmatpush3.bf16.msra.mxu0 %v809_v17  ;;  %v814_v22 = vld [vmem:[%s298_s7 + $0x10] sm:$0xff]   ;;  %v815_v23 = vld [vmem:[%s298_s7 + $0x8] sm:$0xff]   ;;  %v816_v24 = vld [vmem:[%s298_s7] sm:$0xff]   ;;  %s341_s19 = scalar_lea.vmem %s986_s2, %s340_s10  ;;  %s542_s26 = scalar_lea.vmem (%p914_p6), %s987_s3, %s721_s24 }
  0x2a   : > { %751 = vmatprep.subr.bf16.mxu0 %v810_v18  ;;  %v818_v25 = vld [vmem:[%s984_s0 + $0x8] sm:$0xff]   ;;  %v715_v27 = vld [vmem:[%s341_s19] ss:$0 sm:$0xff] }
  0x2d   : > { %752 = vmatpush3.bf16.msra.mxu0 %v810_v18 }
  0x2e   : > { %753 = vmatprep.subr.bf16.mxu0 %v811_v19 }
  0x31   : > { %754 = vmatpush3.bf16.msra.mxu0 %v811_v19 }
  0x32   : > { %755 = vmatprep.subr.bf16.mxu0 %v812_v20 }
  0x35   : > { %756 = vmatpush3.bf16.msra.mxu0 %v812_v20 }
  0x36   : > { %757 = vmatprep.subr.bf16.mxu0 %v813_v21 }
  0x39   : > { %758 = vmatpush3.bf16.msra.mxu0 %v813_v21 }
  0x3a   : > { %759 = vmatprep.subr.bf16.mxu0 %v814_v22 }
  0x3d   : > { %760 = vmatpush3.bf16.msra.mxu0 %v814_v22 }
  0x3e   : > { %761 = vmatprep.subr.bf16.mxu0 %v815_v23 }
  0x41   : > { %762 = vmatpush3.bf16.msra.mxu0 %v815_v23 }
  0x42   : > { %763 = vmatprep.subr.bf16.mxu0 %v816_v24 }
  0x45   : > { %764 = vmatpush3.bf16.msra.mxu0 %v816_v24 }
  0x48   : > { %766 = vmatmul.mubr.bf16.vlgmr.msra.gmra.mxu0 %v818_v25 }
 0x108   : > { %v767_v26 = vpop.f32.mrf.mxu0 }
 0x109   : > { %v509_v30 = vadd.f32 %v767_v26, %v715_v27 }
 0x10a   : > { %v470_v28 = vpop.f32.mrf.mxu0 }
 0x10b   : > { %v507_v33 = vadd.f32 %v715_v27, %v470_v28 }
 0x10c   : > { %v768_v29 = vpop.f32.mrf.mxu0 }
 0x10d   : > { %v510_v31 = vadd.f32 %v768_v29, %v715_v27 }
 0x10e   : > { %v473_v32 = vpop.f32.mrf.mxu0 }
 0x10f   : > { %v736_v34 = vpack.c.bf16 %v510_v31, %v509_v30  ;;  %v508_v35 = vadd.f32 %v715_v27, %v473_v32  ;;  %537 = sbr.rel (!%p914_p6) target bundleno = 284 (0x11c), region = 85 }
 0x111   : > { %738 = vst [vmem:[%s328_s23 + $0x8] sm:$0xff] %v736_v34   ;;  %v731_v36 = vpack.c.bf16 %v508_v35, %v507_v33 }
 0x113   : > { %732 = vst [vmem:[%s328_s23] sm:$0xff] %v731_v36  }
 0x118   : > { %v563_v39 = vld [vmem:[%s328_s23 + $0x8] sm:$0xf]  ;;  %v565_v40 = vld [vmem:[%s328_s23 + $0xc] sm:$0xf] }
 0x119   : > { %564 = vst [vmem:[%s542_s26 + $0x18] sm:$0xf] %v563_v39  ;;  %566 = vst [vmem:[%s542_s26 + $0x24] sm:$0xf] %v565_v40 }
 0x11a   : > { %v559_v37 = vld [vmem:[%s328_s23] sm:$0xf]  ;;  %v561_v38 = vld [vmem:[%s328_s23 + $0x4] sm:$0xf] }
 0x11b   : > { %560 = vst [vmem:[%s542_s26] sm:$0xf] %v559_v37  ;;  %562 = vst [vmem:[%s542_s26 + $0xc] sm:$0xf] %v561_v38 }
 0x11c PF: > { %s13_s16 = sadd.s32 1, %s857_s16   ;;  %s989_s12 = smov %s845_s13 }
 0x11d   : > { %p10_p12 = scmp.ge.s32.totalorder %s13_s16, 5   ;;  %s990_s13 = smov %s919_s22 }
 0x11e   : > { %s991_s14 = smov %s853_s15  ;;  %s992_s15 = smov %s994_s17 }
 0x11f   :  { %12 = sbr.rel (!%p10_p12) target bundleno = 3 (0x3), region = 163 }

// kernel: snip_predictor_forward.10
= control target key start
LH: loop header
LB: loop body
LE: loop exit
PB: predicated region body
PF: predicated region fallthrough
CT: control target
= control target key end

     0   :  { %s469_s1 = inlined_call_operand.vmem [shape: bf16[128,128], index: 1, kind: input, shape index: {}]   ;;  %s470_s0 = inlined_call_operand.vmem [shape: bf16[32,128], index: 0, kind: input, shape index: {}]   ;;  %s471_s3 = inlined_call_operand.vmem [shape: bf16[32,128], index: 3, kind: input, shape index: {}]   ;;  %s472_s2 = inlined_call_operand.vmem [shape: f32[1,128], index: 2, kind: input, shape index: {}]   ;;  %s473_s4 = inlined_call_operand.vmem [shape: f32[1,128], index: 4, kind: input, shape index: {}]   ;;  %s474_s5 = inlined_call_operand.vmem [shape: f32[1,128], index: 5, kind: input, shape index: {}]   ;;  %s475_s6 = inlined_call_operand.vmem [shape: bf16[32,128], index: 6, kind: output, shape index: {}]  }
   0x1   :  { %v365_v0 = vld [vmem:[%s469_s1 + $0x38] sm:$0xff]   ;;  %v366_v1 = vld [vmem:[%s469_s1 + $0x30] sm:$0xff]   ;;  %v367_v2 = vld [vmem:[%s469_s1 + $0x28] sm:$0xff]  }
   0x2   :  { %345 = vmatprep.subr.bf16.mxu0 %v365_v0  ;;  %v368_v3 = vld [vmem:[%s469_s1 + $0x20] sm:$0xff]   ;;  %v369_v5 = vld [vmem:[%s469_s1 + $0x18] sm:$0xff]   ;;  %v370_v6 = vld [vmem:[%s469_s1 + $0x10] sm:$0xff]  }
   0x3   :  { %346 = vmatpush3.bf16.msra.mxu0 %v365_v0  ;;  %v373_v4 = vld [vmem:[%s470_s0] sm:$0xff]   ;;  %v371_v7 = vld [vmem:[%s469_s1 + $0x8] sm:$0xff]  }
   0x4   :  { %347 = vmatprep.subr.bf16.mxu0 %v366_v1  ;;  %361 = vmatprep.mubr.bf16.mxu0 %v373_v4  ;;  %v372_v8 = vld [vmem:[%s469_s1] sm:$0xff]   ;;  %v374_v9 = vld [vmem:[%s470_s0 + $0x8] sm:$0xff]  }
   0x5   :  { %v333_v10 = vld [vmem:[%s471_s3 + $0x8] sm:$0xff]   ;;  %v304_v11 = vld [vmem:[%s472_s2] ss:$0 sm:$0xff] }
   0x6   :  { %v316_v12 = vld [vmem:[%s471_s3] sm:$0xff]   ;;  %v321_v13 = vunpack.c.l.bf16 %v333_v10  ;;  %v322_v20 = vunpack.c.h.bf16 %v333_v10 }
   0x7   :  { %348 = vmatpush3.bf16.msra.mxu0 %v366_v1  ;;  %v317_v16 = vunpack.c.l.bf16 %v316_v12  ;;  %v318_v24 = vunpack.c.h.bf16 %v316_v12  ;;  %v305_v59 = vld [vmem:[%s473_s4] ss:$0 sm:$0xff] }
   0x8   :  { %349 = vmatprep.subr.bf16.mxu0 %v367_v2  ;;  %v306_v0 = vld [vmem:[%s474_s5] ss:$0 sm:$0xff] }
   0xb   :  { %350 = vmatpush3.bf16.msra.mxu0 %v367_v2 }
   0xc   :  { %351 = vmatprep.subr.bf16.mxu0 %v368_v3 }
   0xf   :  { %352 = vmatpush3.bf16.msra.mxu0 %v368_v3 }
  0x10   :  { %353 = vmatprep.subr.bf16.mxu0 %v369_v5 }
  0x13   :  { %354 = vmatpush3.bf16.msra.mxu0 %v369_v5 }
  0x14   :  { %355 = vmatprep.subr.bf16.mxu0 %v370_v6 }
  0x17   :  { %356 = vmatpush3.bf16.msra.mxu0 %v370_v6 }
  0x18   :  { %357 = vmatprep.subr.bf16.mxu0 %v371_v7 }
  0x1b   :  { %358 = vmatpush3.bf16.msra.mxu0 %v371_v7 }
  0x1c   :  { %359 = vmatprep.subr.bf16.mxu0 %v372_v8 }
  0x1f   :  { %360 = vmatpush3.bf16.msra.mxu0 %v372_v8 }
  0x22   :  { %362 = vmatmul.mubr.bf16.vlgmr.msra.gmra.mxu0 %v374_v9 }
  0xe2   :  { %v363_v14 = vpop.f32.mrf.mxu0 }
  0xe3   :  { %v189_v15 = vadd.f32 %v363_v14, %v304_v11 }
  0xe4   :  { %v150_v17 = vpop.f32.mrf.mxu0 }
  0xe5   :  { %v187_v18 = vadd.f32 %v304_v11, %v150_v17  ;;  %v201_v19 = vadd.f32 %v321_v13, %v189_v15 }
  0xe6   :  { %v364_v21 = vpop.f32.mrf.mxu0 }
  0xe7   :  { %v190_v22 = vadd.f32 %v364_v21, %v304_v11  ;;  %207 = vadd.xlane.f32.xlu1 %v201_v19  ;;  %v199_v23 = vadd.f32 %v317_v16, %v187_v18 }
  0xe8   :  { %v153_v25 = vpop.f32.mrf.mxu0 }
  0xe9   :  { %v188_v26 = vadd.f32 %v304_v11, %v153_v25  ;;  %203 = vadd.xlane.f32.xlu0 %v199_v23  ;;  %v202_v27 = vadd.f32 %v322_v20, %v190_v22 }
  0xeb   :  { %209 = vadd.xlane.f32.xlu1 %v202_v27  ;;  %v200_v28 = vadd.f32 %v318_v24, %v188_v26 }
  0xed   :  { %205 = vadd.xlane.f32.xlu0 %v200_v28 }
 0x170   :  { %v208_v29 = vpop.xlane.xlu1 %207 }
 0x171   :  { %v214_v31 = vmul.f32 0.0078125, %v208_v29 }
 0x172   :  { %v204_v30 = vpop.xlane.xlu0 %203 }
 0x173   :  { %v212_v32 = vmul.f32 0.0078125, %v204_v30  ;;  %v218_v36 = vsub.f32 %v201_v19, %v214_v31 }
 0x174   :  { %v210_v33 = vpop.xlane.xlu1 %209 }
 0x175   :  { %v216_v34 = vsub.f32 %v199_v23, %v212_v32  ;;  %v215_v37 = vmul.f32 0.0078125, %v210_v33  ;;  %v222_v42 = vmul.f32 %v218_v36, %v218_v36 }
 0x176   :  { %v206_v35 = vpop.xlane.xlu0 %205 }
 0x177   :  { %v213_v38 = vmul.f32 0.0078125, %v206_v35  ;;  %v220_v39 = vmul.f32 %v216_v34, %v216_v34  ;;  %v219_v41 = vsub.f32 %v202_v27, %v215_v37 }
 0x179   :  { %v217_v40 = vsub.f32 %v200_v28, %v213_v38  ;;  %224 = vadd.xlane.f32.xlu0 %v220_v39  ;;  %v223_v44 = vmul.f32 %v219_v41, %v219_v41 }
 0x17b   :  { %v221_v43 = vmul.f32 %v217_v40, %v217_v40 }
 0x17d   :  { %228 = vadd.xlane.f32.xlu0 %v222_v42  ;;  %226 = vadd.xlane.f32.xlu1 %v221_v43 }
 0x181   :  { %230 = vadd.xlane.f32.xlu1 %v223_v44 }
 0x202   :  { %v225_v45 = vpop.xlane.xlu0 %224 }
 0x203   :  { %v232_v46 = vmul.f32 0.0078125, %v225_v45 }
 0x205   :  { %v236_v47 = vadd.f32 1e-05, %v232_v46 }
 0x206   :  { %v227_v48 = vpop.xlane.xlu1 %226  ;;  %v229_v49 = vpop.xlane.xlu0 %228 }
 0x207   :  { %375 = vrsqrt.f32 %v236_v47  ;;  %v233_v50 = vmul.f32 0.0078125, %v227_v48  ;;  %v234_v51 = vmul.f32 0.0078125, %v229_v49 }
 0x209   :  { %v237_v52 = vadd.f32 1e-05, %v233_v50  ;;  %v238_v53 = vadd.f32 1e-05, %v234_v51 }
 0x20a   :  { %v231_v54 = vpop.xlane.xlu1 %230 }
 0x20b   :  { %377 = vrsqrt.f32 %v237_v52  ;;  %v235_v55 = vmul.f32 0.0078125, %v231_v54 }
 0x20c   :  { %379 = vrsqrt.f32 %v238_v53 }
 0x20d   :  { %v239_v56 = vadd.f32 1e-05, %v235_v55 }
 0x20f   :  { %381 = vrsqrt.f32 %v239_v56 }
 0x214   :  { %v376_v57 = vpop.eup %375 }
 0x215   :  { %v244_v58 = vmul.f32 %v376_v57, %v216_v34 }
 0x217   :  { %v255_v62 = vmul.f32 %v305_v59, %v244_v58 }
 0x218   :  { %v378_v60 = vpop.eup %377 }
 0x219   :  { %v380_v61 = vpop.eup %379  ;;  %v245_v63 = vmul.f32 %v378_v60, %v217_v40  ;;  %v266_v4 = vadd.f32 %v306_v0, %v255_v62 }
 0x21a   :  { %v246_v1 = vmul.f32 %v380_v61, %v218_v36 }
 0x21b   :  { %v256_v2 = vmul.f32 %v305_v59, %v245_v63 }
 0x21c   :  { %v382_v3 = vpop.eup %381  ;;  %v257_v6 = vmul.f32 %v305_v59, %v246_v1 }
 0x21d   :  { %v267_v5 = vadd.f32 %v306_v0, %v256_v2  ;;  %v247_v7 = vmul.f32 %v382_v3, %v219_v41 }
 0x21e   :  { %v268_v10 = vadd.f32 %v306_v0, %v257_v6 }
 0x21f   :  { %v326_v8 = vpack.c.bf16 %v267_v5, %v266_v4  ;;  %v258_v9 = vmul.f32 %v305_v59, %v247_v7 }
 0x221   :  { %327 = vst [vmem:[%s475_s6] sm:$0xff] %v326_v8   ;;  %v269_v11 = vadd.f32 %v306_v0, %v258_v9 }
 0x223   :  { %v331_v12 = vpack.c.bf16 %v269_v11, %v268_v10 }
 0x225   :  { %334 = vst [vmem:[%s475_s6 + $0x8] sm:$0xff] %v331_v12  }

// kernel: snip_predictor_forward.11
= control target key start
LH: loop header
LB: loop body
LE: loop exit
PB: predicated region body
PF: predicated region fallthrough
CT: control target
= control target key end

     0   :  { %s960_s12 = smov 0   ;;  %s962_s13 = smov 0   ;;  %s1082_s0 = inlined_call_operand.vmem [shape: bf16[32,128], index: 0, kind: input, shape index: {}]   ;;  %s1083_s1 = inlined_call_operand.vmem [shape: bf16[128,512], index: 1, kind: input, shape index: {}]   ;;  %s1084_s2 = inlined_call_operand.vmem [shape: f32[1,512], index: 2, kind: input, shape index: {}]   ;;  %s1085_s3 = inlined_call_operand.vmem [shape: bf16[32,512], index: 3, kind: output, shape index: {}]  }
   0x1   :  { %s964_s14 = smov 0   ;;  %s966_s15 = smov 0  }
   0x2   :  { %s968_s16 = smov 0  }
   0x3 LB: > { %s28_s17 = sadd.s32 1, %s933_s15  ;;  %s771_s18 = sadd.s32 4294967295, %s937_s16   ;;  %s937_s16 = sphi %s968_s16, %s13_s16   ;;  %s933_s15 = sphi %s966_s15, %s1090_s15   ;;  %s929_s14 = sphi %s964_s14, %s1089_s14   ;;  %s925_s13 = sphi %s962_s13, %s1088_s13   ;;  %s921_s12 = sphi %s960_s12, %s1087_s12  }
   0x4   : > { %p30_p0 = scmp.ge.s32.totalorder %s28_s17, 2  ;;  %p76_p1 = scmp.ne.s32.totalorder %s925_s13, %s921_s12 }
   0x5   : > { %p77_p2 = scmp.eq.s32.totalorder %s937_s16, 0  ;;  %p134_p4 = scmp.eq.s32.totalorder %s771_s18, 1 }
   0x6   : > { %s1092_s17 = smov (%p30_p0, %s28_s17), 0  ;;  %s69_s20 = sadd.s32 1, %s925_s13 }
   0x7   : > { %p78_p3 = por %p77_p2, %p76_p1  ;;  %s65_s19 = ssub.s32 %s933_s15, %s1092_s17 }
   0x8   : > { %p67_p5 = scmp.eq.s32.totalorder %s65_s19, 0  ;;  %p995_p6 = por %p134_p4, %p76_p1 }
   0x9   : > { %p775_p7 = scmp.ge.s32.totalorder %s937_s16, 2 }
   0xa   : > { %s1000_s22 = scalar_select %p67_p5, %s925_s13, %s69_s20  }
   0xb   : > { %168 = sbr.rel (%p775_p7) target bundleno = 28 (0x1c), region = 20 }
  0x10   : > { %171 = sbr.rel (!%p78_p3) target bundleno = 28 (0x1c), region = 24  ;;  %s173_s23 = sand.u32 (%p78_p3), 1, %s925_s13  }
  0x11   : > { %s810_s24 = sshll.u32 (%p78_p3), %s933_s15, 3  ;;  %s776_s25 = sshll.u32 (%p78_p3), %s173_s23, 7 }
  0x12   : > { %s1008_s28 = scalar_lea.vmem (%p78_p3), %s1083_s1, %s810_s24  ;;  %s175_s29 = scalar_lea.vmem (%p78_p3), [#allocation3], %s776_s25 }
  0x13   : > { %v240_v0 = vld [vmem:[%s1008_s28] sm:$0xff] (%p78_p3)  ;;  %v242_v1 = vld [vmem:[%s1008_s28 + $0x10] sm:$0xff] (%p78_p3) }
  0x14   : > { %v244_v2 = vld [vmem:[%s1008_s28 + $0x20] sm:$0xff] (%p78_p3)  ;;  %241 = vst [vmem:[%s175_s29] sm:$0xff] (%p78_p3), %v240_v0  ;;  %243 = vst [vmem:[%s175_s29 + $0x8] sm:$0xff] (%p78_p3), %v242_v1  ;;  %v246_v3 = vld [vmem:[%s1008_s28 + $0x30] sm:$0xff] (%p78_p3) }
  0x15   : > { %245 = vst [vmem:[%s175_s29 + $0x10] sm:$0xff] %v244_v2  ;;  %v248_v4 = vld [vmem:[%s1008_s28 + $0x40] sm:$0xff]  ;;  %v250_v5 = vld [vmem:[%s1008_s28 + $0x50] sm:$0xff]  ;;  %247 = vst [vmem:[%s175_s29 + $0x18] sm:$0xff] %v246_v3 }
  0x16   : > { %249 = vst [vmem:[%s175_s29 + $0x20] sm:$0xff] %v248_v4  ;;  %251 = vst [vmem:[%s175_s29 + $0x28] sm:$0xff] %v250_v5  ;;  %v252_v6 = vld [vmem:[%s1008_s28 + $0x60] sm:$0xff]  ;;  %v254_v7 = vld [vmem:[%s1008_s28 + $0x70] sm:$0xff] }
  0x17   : > { %v256_v8 = vld [vmem:[%s1008_s28 + $0x80] sm:$0xff]  ;;  %253 = vst [vmem:[%s175_s29 + $0x30] sm:$0xff] %v252_v6  ;;  %255 = vst [vmem:[%s175_s29 + $0x38] sm:$0xff] %v254_v7  ;;  %v258_v9 = vld [vmem:[%s1008_s28 + $0x90] sm:$0xff] }
  0x18   : > { %257 = vst [vmem:[%s175_s29 + $0x40] sm:$0xff] %v256_v8  ;;  %v260_v10 = vld [vmem:[%s1008_s28 + $0xa0] sm:$0xff]  ;;  %v262_v11 = vld [vmem:[%s1008_s28 + $0xb0] sm:$0xff]  ;;  %259 = vst [vmem:[%s175_s29 + $0x48] sm:$0xff] %v258_v9 }
  0x19   : > { %261 = vst [vmem:[%s175_s29 + $0x50] sm:$0xff] %v260_v10  ;;  %263 = vst [vmem:[%s175_s29 + $0x58] sm:$0xff] %v262_v11  ;;  %v264_v12 = vld [vmem:[%s1008_s28 + $0xc0] sm:$0xff]  ;;  %v266_v13 = vld [vmem:[%s1008_s28 + $0xd0] sm:$0xff] }
  0x1a   : > { %v268_v14 = vld [vmem:[%s1008_s28 + $0xe0] sm:$0xff]  ;;  %265 = vst [vmem:[%s175_s29 + $0x60] sm:$0xff] %v264_v12  ;;  %267 = vst [vmem:[%s175_s29 + $0x68] sm:$0xff] %v266_v13  ;;  %v270_v15 = vld [vmem:[%s1008_s28 + $0xf0] sm:$0xff] }
  0x1b   : > { %269 = vst [vmem:[%s175_s29 + $0x70] sm:$0xff] %v268_v14  ;;  %271 = vst [vmem:[%s175_s29 + $0x78] sm:$0xff] %v270_v15 }
  0x1c PF: > { %p779_p8 = scmp.ge.s32.totalorder %s937_s16, 1  ;;  %p284_p9 = scmp.lt.s32.totalorder %s937_s16, 3 }
  0x1e   : > { %p285_p10 = pnand %p779_p8, %p284_p9 }
  0x1f   : > { %s291_s30 = sand.u32 (!%p285_p10), 1, %s921_s12   ;;  %s782_s10 = sshll.u32 (!%p285_p10), %s929_s14, 1 }
  0x20   : > { %288 = sbr.rel (%p285_p10) target bundleno = 285 (0x11d), region = 66  ;;  %s780_s4 = sshll.u32 (!%p285_p10), %s291_s30, 7 }
  0x21   : > { %s1031_s5 = scalar_lea.vmem (!%p285_p10), [#allocation3], %s780_s4  ;;  %p337_p11 = scmp.lt.s32.totalorder (!%p285_p10), %s782_s10, 3 }
  0x22   : > { %s781_s20 = sshll.u32 (!%p285_p10), %s291_s30, 5 }
  0x23   : > { %s324_s23 = scalar_lea.vmem (!%p285_p10), [#allocation4], %s781_s20 }
  0x25   : > { %v939_v16 = vmov 0   ;;  %v873_v17 = vld [vmem:[%s1031_s5 + $0x74] ss:$8 sps:$4 sm:$0xff]   ;;  %v875_v18 = vld [vmem:[%s1031_s5 + $0x70] ss:$8 sps:$4 sm:$0xff]   ;;  %v897_v33 = vld [vmem:[%s1082_s0] sm:$0xff]   ;;  %v558_v35 = vlaneseq }
  0x26   : > { %508 = vmatprep.mubr.bf16.mxu0 %v939_v16  ;;  %518 = vmatprep.mubr.bf16.mxu1 %v939_v16  ;;  %v876_v19 = vld [vmem:[%s1031_s5 + $0x64] ss:$8 sps:$4 sm:$0xff]   ;;  %v878_v20 = vld [vmem:[%s1031_s5 + $0x60] ss:$8 sps:$4 sm:$0xff]   ;;  %v879_v21 = vld [vmem:[%s1031_s5 + $0x54] ss:$8 sps:$4 sm:$0xff]  }
  0x27   : > { %476 = vmatprep.subr.bf16.mxu0 %v873_v17  ;;  %816 = vmatprep.subr.bf16.mxu1 %v873_v17  ;;  %v881_v22 = vld [vmem:[%s1031_s5 + $0x50] ss:$8 sps:$4 sm:$0xff]   ;;  %v882_v23 = vld [vmem:[%s1031_s5 + $0x44] ss:$8 sps:$4 sm:$0xff]   ;;  %v884_v24 = vld [vmem:[%s1031_s5 + $0x40] ss:$8 sps:$4 sm:$0xff]  }
  0x28   : > { %477 = vmatpush1.bf16.msra.mxu0 %v875_v18  ;;  %824 = vmatpush1.bf16.msra.mxu1 %v875_v18  ;;  %v885_v25 = vld [vmem:[%s1031_s5 + $0x34] ss:$8 sps:$4 sm:$0xff]   ;;  %v887_v26 = vld [vmem:[%s1031_s5 + $0x30] ss:$8 sps:$4 sm:$0xff]   ;;  %v888_v27 = vld [vmem:[%s1031_s5 + $0x24] ss:$8 sps:$4 sm:$0xff]  }
  0x29   : > { %478 = vmatprep.subr.bf16.mxu0 %v876_v19  ;;  %817 = vmatprep.subr.bf16.mxu1 %v876_v19  ;;  %v890_v28 = vld [vmem:[%s1031_s5 + $0x20] ss:$8 sps:$4 sm:$0xff]   ;;  %v891_v29 = vld [vmem:[%s1031_s5 + $0x14] ss:$8 sps:$4 sm:$0xff]   ;;  %v893_v30 = vld [vmem:[%s1031_s5 + $0x10] ss:$8 sps:$4 sm:$0xff]  }
  0x2a   : > { %v894_v31 = vld [vmem:[%s1031_s5 + $0x4] ss:$8 sps:$4 sm:$0xff]   ;;  %v896_v32 = vld [vmem:[%s1031_s5] ss:$8 sps:$4 sm:$0xff]   ;;  %s1094_s10 = smov (!%p337_p11, %s782_s10), 3  ;;  %v559_v36 = vshrl.u32 %v558_v35, 7 }
  0x2b   : > { %v898_v34 = vld [vmem:[%s1082_s0 + $0x8] sm:$0xff]   ;;  %s339_s19 = scalar_lea.vmem %s1084_s2, %s1094_s10  ;;  %s815_s12 = sshll.u32 (%p995_p6), %s929_s14, 3 }
  0x2c   : > { %479 = vmatpush1.bf16.msra.mxu0 %v878_v20  ;;  %825 = vmatpush1.bf16.msra.mxu1 %v878_v20  ;;  %v560_v37 = vsub.s32 0, %v559_v36  ;;  %v556_v38 = vld [vmem:[%s339_s19] sm:$0x3]  ;;  %v564_v39 = vsub.s32 1, %v559_v36  ;;  %s624_s26 = scalar_lea.vmem (%p995_p6), %s1085_s3, %s815_s12 }
  0x2d   : > { %480 = vmatprep.subr.bf16.mxu0 %v879_v21  ;;  %818 = vmatprep.subr.bf16.mxu1 %v879_v21 }
  0x2e   : > { %v561_v40 = vrot.slane %v556_v38, %v560_v37  ;;  %v565_v41 = vrot.slane %v556_v38, %v564_v39 }
  0x30   : > { %481 = vmatpush1.bf16.msra.mxu0 %v881_v22  ;;  %826 = vmatpush1.bf16.msra.mxu1 %v881_v22 }
  0x31   : > { %482 = vmatprep.subr.bf16.mxu0 %v882_v23  ;;  %819 = vmatprep.subr.bf16.mxu1 %v882_v23 }
  0x34   : > { %483 = vmatpush1.bf16.msra.mxu0 %v884_v24  ;;  %827 = vmatpush1.bf16.msra.mxu1 %v884_v24 }
  0x35   : > { %484 = vmatprep.subr.bf16.mxu0 %v885_v25  ;;  %820 = vmatprep.subr.bf16.mxu1 %v885_v25 }
  0x38   : > { %485 = vmatpush1.bf16.msra.mxu0 %v887_v26  ;;  %828 = vmatpush1.bf16.msra.mxu1 %v887_v26 }
  0x39   : > { %486 = vmatprep.subr.bf16.mxu0 %v888_v27  ;;  %821 = vmatprep.subr.bf16.mxu1 %v888_v27 }
  0x3c   : > { %487 = vmatpush1.bf16.msra.mxu0 %v890_v28  ;;  %829 = vmatpush1.bf16.msra.mxu1 %v890_v28 }
  0x3d   : > { %488 = vmatprep.subr.bf16.mxu0 %v891_v29  ;;  %822 = vmatprep.subr.bf16.mxu1 %v891_v29 }
  0x40   : > { %489 = vmatpush1.bf16.msra.mxu0 %v893_v30  ;;  %830 = vmatpush1.bf16.msra.mxu1 %v893_v30 }
  0x41   : > { %490 = vmatprep.subr.bf16.mxu0 %v894_v31  ;;  %823 = vmatprep.subr.bf16.mxu1 %v894_v31 }
  0x44   : > { %491 = vmatpush1.bf16.msra.mxu0 %v896_v32  ;;  %831 = vmatpush1.bf16.msra.mxu1 %v896_v32 }
  0x47   : > { %509 = vmatmul.mubr.bf16.vlgmr.msra.gmra.mxu0 %v897_v33  ;;  %519 = vmatmul.mubr.bf16.vlgmr.msra.gmra.mxu1 %v898_v34 }
 0x107   : > { %v510_v42 = vpop.f32.mrf.mxu0  ;;  %v520_v43 = vpop.f32.mrf.mxu1 }
 0x108   : > { %v568_v44 = vadd.f32 %v561_v40, %v510_v42  ;;  %v572_v45 = vadd.f32 %v561_v40, %v520_v43 }
 0x109   : > { %v512_v46 = vpop.f32.mrf.mxu0  ;;  %v522_v47 = vpop.f32.mrf.mxu1 }
 0x10a   : > { %v569_v48 = vadd.f32 %v565_v41, %v512_v46  ;;  %v573_v49 = vadd.f32 %v565_v41, %v522_v47  ;;  %v576_v52 = vmax.f32 %v568_v44, 0.0  ;;  %v580_v53 = vmax.f32 %v572_v45, 0.0 }
 0x10b   : > { %v514_v50 = vpop.f32.mrf.mxu0  ;;  %v524_v51 = vpop.f32.mrf.mxu1 }
 0x10c   : > { %v577_v54 = vmax.f32 %v569_v48, 0.0  ;;  %v581_v55 = vmax.f32 %v573_v49, 0.0  ;;  %v570_v56 = vadd.f32 %v561_v40, %v514_v50  ;;  %v574_v57 = vadd.f32 %v561_v40, %v524_v51 }
 0x10d   : > { %v516_v58 = vpop.f32.mrf.mxu0  ;;  %v526_v59 = vpop.f32.mrf.mxu1 }
 0x10e   : > { %v811_v60 = vpack.c.bf16 %v577_v54, %v576_v52  ;;  %v813_v61 = vpack.c.bf16 %v581_v55, %v580_v53  ;;  %v571_v62 = vadd.f32 %v565_v41, %v516_v58  ;;  %v575_v63 = vadd.f32 %v565_v41, %v526_v59 }
 0x10f   : > { %v578_v0 = vmax.f32 %v570_v56, 0.0  ;;  %v582_v1 = vmax.f32 %v574_v57, 0.0 }
 0x110   : > { %608 = vst [vmem:[%s324_s23] sm:$0xff] %v811_v60  ;;  %610 = vst [vmem:[%s324_s23 + $0x10] sm:$0xff] %v813_v61  ;;  %v579_v2 = vmax.f32 %v571_v62, 0.0  ;;  %v583_v3 = vmax.f32 %v575_v63, 0.0  ;;  %618 = sbr.rel (!%p995_p6) target bundleno = 285 (0x11d), region = 82 }
 0x112   : > { %v812_v4 = vpack.c.bf16 %v579_v2, %v578_v0  ;;  %v814_v5 = vpack.c.bf16 %v583_v3, %v582_v1 }
 0x114   : > { %609 = vst [vmem:[%s324_s23 + $0x8] sm:$0xff] %v812_v4  ;;  %611 = vst [vmem:[%s324_s23 + $0x18] sm:$0xff] %v814_v5 }
 0x117   : > { %v659_v6 = vld [vmem:[%s324_s23] sm:$0xff]  ;;  %v663_v8 = vld [vmem:[%s324_s23 + $0x10] sm:$0xff] }
 0x118   : > { %660 = vst [vmem:[%s624_s26] sm:$0xff] %v659_v6  ;;  %664 = vst [vmem:[%s624_s26 + $0x20] sm:$0xff] %v663_v8 }
 0x11b   : > { %v661_v7 = vld [vmem:[%s324_s23 + $0x8] sm:$0xff]  ;;  %v665_v9 = vld [vmem:[%s324_s23 + $0x18] sm:$0xff] }
 0x11c   : > { %662 = vst [vmem:[%s624_s26 + $0x10] sm:$0xff] %v661_v7  ;;  %666 = vst [vmem:[%s624_s26 + $0x30] sm:$0xff] %v665_v9 }
 0x11d PF: > { %s13_s16 = sadd.s32 1, %s937_s16   ;;  %s1087_s12 = smov %s925_s13 }
 0x11e   : > { %p10_p12 = scmp.ge.s32.totalorder %s13_s16, 4   ;;  %s1088_s13 = smov %s1000_s22 }
 0x11f   : > { %s1089_s14 = smov %s933_s15  ;;  %s1090_s15 = smov %s1092_s17 }
 0x120   :  { %12 = sbr.rel (!%p10_p12) target bundleno = 3 (0x3), region = 157 }

// kernel: snip_predictor_forward.12
= control target key start
LH: loop header
LB: loop body
LE: loop exit
PB: predicated region body
PF: predicated region fallthrough
CT: control target
= control target key end

     0   :  { %s922_s1 = inlined_call_operand.vmem [shape: bf16[512,128], index: 1, kind: input, shape index: {}]   ;;  %s923_s0 = inlined_call_operand.vmem [shape: bf16[32,512], index: 0, kind: input, shape index: {}]   ;;  %s924_s3 = inlined_call_operand.vmem [shape: bf16[32,128], index: 3, kind: input, shape index: {}]   ;;  %s925_s2 = inlined_call_operand.vmem [shape: f32[1,128], index: 2, kind: input, shape index: {}]   ;;  %s926_s4 = inlined_call_operand.vmem [shape: f32[1,128], index: 4, kind: input, shape index: {}]   ;;  %s927_s5 = inlined_call_operand.vmem [shape: f32[1,128], index: 5, kind: input, shape index: {}]   ;;  %s928_s6 = inlined_call_operand.vmem [shape: bf16[32,128], index: 6, kind: output, shape index: {}]  }
   0x1   :  { %v694_v0 = vld [vmem:[%s922_s1 + $0x78] sm:$0xff]   ;;  %v698_v4 = vld [vmem:[%s922_s1 + $0x70] sm:$0xff]   ;;  %v702_v8 = vld [vmem:[%s922_s1 + $0x68] sm:$0xff]  }
   0x2   :  { %v695_v1 = vld [vmem:[%s922_s1 + $0xf8] sm:$0xff]   ;;  %638 = vmatprep.subr.bf16.mxu0 %v694_v0  ;;  %v699_v5 = vld [vmem:[%s922_s1 + $0xf0] sm:$0xff]   ;;  %v703_v9 = vld [vmem:[%s922_s1 + $0xe8] sm:$0xff]  }
   0x3   :  { %v696_v2 = vld [vmem:[%s922_s1 + $0x38] sm:$0xff]   ;;  %666 = vmatprep.subr.bf16.mxu1 %v695_v1  ;;  %v700_v6 = vld [vmem:[%s922_s1 + $0x30] sm:$0xff]   ;;  %v704_v10 = vld [vmem:[%s922_s1 + $0x28] sm:$0xff]  }
   0x4   :  { %v697_v3 = vld [vmem:[%s922_s1 + $0xb8] sm:$0xff]   ;;  %639 = vmatpush3.bf16.msra.mxu0 %v696_v2  ;;  %v701_v7 = vld [vmem:[%s922_s1 + $0xb0] sm:$0xff]   ;;  %v705_v11 = vld [vmem:[%s922_s1 + $0xa8] sm:$0xff]  }
   0x5   :  { %667 = vmatpush3.bf16.msra.mxu1 %v697_v3  ;;  %640 = vmatprep.subr.bf16.mxu0 %v698_v4  ;;  %v706_v12 = vld [vmem:[%s922_s1 + $0x60] sm:$0xff]   ;;  %v710_v16 = vld [vmem:[%s922_s1 + $0x58] sm:$0xff]   ;;  %v714_v20 = vld [vmem:[%s922_s1 + $0x50] sm:$0xff]  }
   0x6   :  { %668 = vmatprep.subr.bf16.mxu1 %v699_v5  ;;  %v707_v13 = vld [vmem:[%s922_s1 + $0xe0] sm:$0xff]   ;;  %v711_v17 = vld [vmem:[%s922_s1 + $0xd8] sm:$0xff]   ;;  %v715_v21 = vld [vmem:[%s922_s1 + $0xd0] sm:$0xff]  }
   0x7   :  { %v708_v14 = vld [vmem:[%s922_s1 + $0x20] sm:$0xff]   ;;  %v712_v18 = vld [vmem:[%s922_s1 + $0x18] sm:$0xff]   ;;  %v716_v22 = vld [vmem:[%s922_s1 + $0x10] sm:$0xff]  }
   0x8   :  { %641 = vmatpush3.bf16.msra.mxu0 %v700_v6  ;;  %v709_v15 = vld [vmem:[%s922_s1 + $0xa0] sm:$0xff]   ;;  %v713_v19 = vld [vmem:[%s922_s1 + $0x98] sm:$0xff]   ;;  %v717_v23 = vld [vmem:[%s922_s1 + $0x90] sm:$0xff]  }
   0x9   :  { %669 = vmatpush3.bf16.msra.mxu1 %v701_v7  ;;  %642 = vmatprep.subr.bf16.mxu0 %v702_v8  ;;  %v718_v24 = vld [vmem:[%s922_s1 + $0x48] sm:$0xff]   ;;  %v722_v28 = vld [vmem:[%s922_s1 + $0x40] sm:$0xff]  }
   0xa   :  { %670 = vmatprep.subr.bf16.mxu1 %v703_v9  ;;  %v719_v25 = vld [vmem:[%s922_s1 + $0xc8] sm:$0xff]   ;;  %v723_v29 = vld [vmem:[%s922_s1 + $0xc0] sm:$0xff]  }
   0xb   :  { %v720_v26 = vld [vmem:[%s922_s1 + $0x8] sm:$0xff]   ;;  %v724_v30 = vld [vmem:[%s922_s1] sm:$0xff]  }
   0xc   :  { %643 = vmatpush3.bf16.msra.mxu0 %v704_v10  ;;  %v721_v27 = vld [vmem:[%s922_s1 + $0x88] sm:$0xff]   ;;  %v725_v31 = vld [vmem:[%s922_s1 + $0x80] sm:$0xff]  }
   0xd   :  { %671 = vmatpush3.bf16.msra.mxu1 %v705_v11  ;;  %644 = vmatprep.subr.bf16.mxu0 %v706_v12  ;;  %v726_v32 = vld [vmem:[%s923_s0] ss:$16 sps:$4 sm:$0xff]   ;;  %v728_v33 = vld [vmem:[%s923_s0 + $0x4] ss:$16 sps:$4 sm:$0xff]   ;;  %v729_v34 = vld [vmem:[%s923_s0 + $0x8] ss:$16 sps:$4 sm:$0xff]  }
   0xe   :  { %672 = vmatprep.subr.bf16.mxu1 %v707_v13  ;;  %v731_v35 = vld [vmem:[%s923_s0 + $0xc] ss:$16 sps:$4 sm:$0xff]   ;;  %372 = vmatprep.mubr.bf16.mxu0 %v728_v33  ;;  %v732_v36 = vld [vmem:[%s923_s0 + $0x24] ss:$16 sps:$4 sm:$0xff]   ;;  %v736_v38 = vld [vmem:[%s923_s0 + $0x20] ss:$16 sps:$4 sm:$0xff]  }
   0xf   :  { %421 = vmatprep.mubr.bf16.mxu1 %v731_v35  ;;  %v734_v37 = vld [vmem:[%s923_s0 + $0x2c] ss:$16 sps:$4 sm:$0xff]   ;;  %v737_v39 = vld [vmem:[%s923_s0 + $0x28] ss:$16 sps:$4 sm:$0xff]   ;;  %v619_v45 = vld [vmem:[%s924_s3] sm:$0xff]  }
  0x10   :  { %645 = vmatpush3.bf16.msra.mxu0 %v708_v14  ;;  %v607_v49 = vld [vmem:[%s925_s2] ss:$0 sm:$0xff]  ;;  %v620_v52 = vunpack.c.l.bf16 %v619_v45  ;;  %v621_v62 = vunpack.c.h.bf16 %v619_v45  ;;  %v636_v1 = vld [vmem:[%s924_s3 + $0x8] sm:$0xff]  }
  0x11   :  { %673 = vmatpush3.bf16.msra.mxu1 %v709_v15  ;;  %646 = vmatprep.subr.bf16.mxu0 %v710_v16  ;;  %v624_v9 = vunpack.c.l.bf16 %v636_v1  ;;  %v625_v16 = vunpack.c.h.bf16 %v636_v1 }
  0x12   :  { %674 = vmatprep.subr.bf16.mxu1 %v711_v17 }
  0x14   :  { %647 = vmatpush3.bf16.msra.mxu0 %v712_v18 }
  0x15   :  { %675 = vmatpush3.bf16.msra.mxu1 %v713_v19  ;;  %648 = vmatprep.subr.bf16.mxu0 %v714_v20 }
  0x16   :  { %676 = vmatprep.subr.bf16.mxu1 %v715_v21 }
  0x18   :  { %649 = vmatpush3.bf16.msra.mxu0 %v716_v22 }
  0x19   :  { %677 = vmatpush3.bf16.msra.mxu1 %v717_v23  ;;  %650 = vmatprep.subr.bf16.mxu0 %v718_v24 }
  0x1a   :  { %678 = vmatprep.subr.bf16.mxu1 %v719_v25 }
  0x1c   :  { %651 = vmatpush3.bf16.msra.mxu0 %v720_v26 }
  0x1d   :  { %679 = vmatpush3.bf16.msra.mxu1 %v721_v27  ;;  %652 = vmatprep.subr.bf16.mxu0 %v722_v28 }
  0x1e   :  { %680 = vmatprep.subr.bf16.mxu1 %v723_v29 }
  0x20   :  { %653 = vmatpush3.bf16.msra.mxu0 %v724_v30 }
  0x21   :  { %681 = vmatpush3.bf16.msra.mxu1 %v725_v31 }
  0x23   :  { %373 = vmatmul.mubr.bf16.vlgmr.msra.gmra.mxu0 %v726_v32 }
  0x24   :  { %422 = vmatmul.mubr.bf16.vlgmr.msra.gmra.mxu1 %v729_v34  ;;  %380 = vmatprep.mubr.bf16.mxu0 %v732_v36 }
  0x25   :  { %429 = vmatprep.mubr.bf16.mxu1 %v734_v37 }
  0x2b   :  { %381 = vmatmul.mubr.bf16.gmra.mxu0 %v736_v38 }
  0x2c   :  { %430 = vmatmul.mubr.bf16.gmra.mxu1 %v737_v39 }
  0xe3   :  { %v654_v40 = vpop.f32.mrf.mxu0 }
  0xe4   :  { %v682_v41 = vpop.f32.mrf.mxu1 }
  0xe5   :  { %v655_v42 = vpop.f32.mrf.mxu0 }
  0xe6   :  { %v656_v43 = vadd.f32 %v655_v42, %v654_v40  ;;  %v683_v44 = vpop.f32.mrf.mxu1 }
  0xe7   :  { %v684_v46 = vadd.f32 %v683_v44, %v682_v41  ;;  %v657_v47 = vpop.f32.mrf.mxu0 }
  0xe8   :  { %v685_v48 = vpop.f32.mrf.mxu1 }
  0xe9   :  { %v424_v50 = vadd.f32 %v684_v46, %v656_v43  ;;  %v658_v51 = vpop.f32.mrf.mxu0 }
  0xea   :  { %v659_v53 = vadd.f32 %v658_v51, %v657_v47  ;;  %v686_v54 = vpop.f32.mrf.mxu1 }
  0xeb   :  { %v687_v55 = vadd.f32 %v686_v54, %v685_v48  ;;  %v660_v56 = vpop.f32.mrf.mxu0  ;;  %v460_v57 = vadd.f32 %v607_v49, %v424_v50 }
  0xec   :  { %v688_v58 = vpop.f32.mrf.mxu1 }
  0xed   :  { %v427_v59 = vadd.f32 %v687_v55, %v659_v53  ;;  %v661_v60 = vpop.f32.mrf.mxu0  ;;  %v472_v61 = vadd.f32 %v620_v52, %v460_v57  ;;  %v609_v53 = vld [vmem:[%s927_s5] ss:$0 sm:$0xff] }
  0xee   :  { %v662_v63 = vadd.f32 %v661_v60, %v660_v56  ;;  %v689_v0 = vpop.f32.mrf.mxu1 }
  0xef   :  { %v690_v2 = vadd.f32 %v689_v0, %v688_v58  ;;  %476 = vadd.xlane.f32.xlu0 %v472_v61  ;;  %v663_v3 = vpop.f32.mrf.mxu0  ;;  %v461_v4 = vadd.f32 %v607_v49, %v427_v59 }
  0xf0   :  { %v691_v5 = vpop.f32.mrf.mxu1 }
  0xf1   :  { %v432_v6 = vadd.f32 %v690_v2, %v662_v63  ;;  %v664_v7 = vpop.f32.mrf.mxu0  ;;  %v473_v8 = vadd.f32 %v621_v62, %v461_v4 }
  0xf2   :  { %v665_v10 = vadd.f32 %v664_v7, %v663_v3  ;;  %v692_v11 = vpop.f32.mrf.mxu1 }
  0xf3   :  { %v693_v12 = vadd.f32 %v692_v11, %v691_v5  ;;  %478 = vadd.xlane.f32.xlu0 %v473_v8  ;;  %v462_v13 = vadd.f32 %v607_v49, %v432_v6 }
  0xf5   :  { %v435_v14 = vadd.f32 %v693_v12, %v665_v10  ;;  %v474_v15 = vadd.f32 %v624_v9, %v462_v13 }
  0xf7   :  { %480 = vadd.xlane.f32.xlu1 %v474_v15  ;;  %v463_v17 = vadd.f32 %v607_v49, %v435_v14  ;;  %v608_v49 = vld [vmem:[%s926_s4] ss:$0 sm:$0xff] }
  0xf9   :  { %v475_v18 = vadd.f32 %v625_v16, %v463_v17 }
  0xfb   :  { %482 = vadd.xlane.f32.xlu1 %v475_v18 }
 0x178   :  { %v477_v19 = vpop.xlane.xlu0 %476 }
 0x179   :  { %v485_v20 = vmul.f32 0.0078125, %v477_v19 }
 0x17b   :  { %v489_v21 = vsub.f32 %v472_v61, %v485_v20 }
 0x17c   :  { %v479_v22 = vpop.xlane.xlu0 %478 }
 0x17d   :  { %v486_v23 = vmul.f32 0.0078125, %v479_v22  ;;  %v493_v24 = vmul.f32 %v489_v21, %v489_v21 }
 0x17f   :  { %v490_v25 = vsub.f32 %v473_v8, %v486_v23  ;;  %497 = vadd.xlane.f32.xlu0 %v493_v24 }
 0x180   :  { %v481_v26 = vpop.xlane.xlu1 %480 }
 0x181   :  { %v487_v27 = vmul.f32 0.0078125, %v481_v26  ;;  %v494_v28 = vmul.f32 %v490_v25, %v490_v25 }
 0x183   :  { %v491_v29 = vsub.f32 %v474_v15, %v487_v27  ;;  %499 = vadd.xlane.f32.xlu1 %v494_v28 }
 0x184   :  { %v483_v30 = vpop.xlane.xlu1 %482 }
 0x185   :  { %v488_v31 = vmul.f32 0.0078125, %v483_v30  ;;  %v495_v32 = vmul.f32 %v491_v29, %v491_v29 }
 0x187   :  { %v492_v33 = vsub.f32 %v475_v18, %v488_v31  ;;  %501 = vadd.xlane.f32.xlu0 %v495_v32 }
 0x189   :  { %v496_v34 = vmul.f32 %v492_v33, %v492_v33 }
 0x18b   :  { %503 = vadd.xlane.f32.xlu1 %v496_v34 }
 0x208   :  { %v498_v35 = vpop.xlane.xlu0 %497 }
 0x209   :  { %v505_v36 = vmul.f32 0.0078125, %v498_v35 }
 0x20b   :  { %v509_v37 = vadd.f32 1e-05, %v505_v36 }
 0x20c   :  { %v500_v38 = vpop.xlane.xlu1 %499 }
 0x20d   :  { %738 = vrsqrt.f32 %v509_v37  ;;  %v506_v39 = vmul.f32 0.0078125, %v500_v38 }
 0x20f   :  { %v510_v40 = vadd.f32 1e-05, %v506_v39 }
 0x210   :  { %v502_v41 = vpop.xlane.xlu0 %501 }
 0x211   :  { %740 = vrsqrt.f32 %v510_v40  ;;  %v507_v42 = vmul.f32 0.0078125, %v502_v41 }
 0x213   :  { %v511_v43 = vadd.f32 1e-05, %v507_v42 }
 0x214   :  { %v504_v44 = vpop.xlane.xlu1 %503 }
 0x215   :  { %742 = vrsqrt.f32 %v511_v43  ;;  %v508_v45 = vmul.f32 0.0078125, %v504_v44 }
 0x217   :  { %v512_v46 = vadd.f32 1e-05, %v508_v45 }
 0x219   :  { %744 = vrsqrt.f32 %v512_v46 }
 0x21a   :  { %v739_v47 = vpop.eup %738 }
 0x21b   :  { %v517_v48 = vmul.f32 %v739_v47, %v489_v21 }
 0x21d   :  { %v528_v51 = vmul.f32 %v608_v49, %v517_v48 }
 0x21e   :  { %v741_v50 = vpop.eup %740 }
 0x21f   :  { %v518_v52 = vmul.f32 %v741_v50, %v490_v25  ;;  %v539_v56 = vadd.f32 %v609_v53, %v528_v51 }
 0x221   :  { %v529_v54 = vmul.f32 %v608_v49, %v518_v52 }
 0x222   :  { %v743_v55 = vpop.eup %742 }
 0x223   :  { %v540_v57 = vadd.f32 %v609_v53, %v529_v54  ;;  %v519_v58 = vmul.f32 %v743_v55, %v491_v29 }
 0x225   :  { %v629_v59 = vpack.c.bf16 %v540_v57, %v539_v56  ;;  %v530_v61 = vmul.f32 %v608_v49, %v519_v58 }
 0x226   :  { %v745_v60 = vpop.eup %744 }
 0x227   :  { %630 = vst [vmem:[%s928_s6] sm:$0xff] %v629_v59   ;;  %v520_v62 = vmul.f32 %v745_v60, %v492_v33  ;;  %v541_v0 = vadd.f32 %v609_v53, %v530_v61 }
 0x229   :  { %v531_v63 = vmul.f32 %v608_v49, %v520_v62 }
 0x22b   :  { %v542_v1 = vadd.f32 %v609_v53, %v531_v63 }
 0x22d   :  { %v634_v2 = vpack.c.bf16 %v542_v1, %v541_v0 }
 0x22f   :  { %637 = vst [vmem:[%s928_s6 + $0x8] sm:$0xff] %v634_v2  }

// kernel: snip_predictor_forward.9
= control target key start
LH: loop header
LB: loop body
LE: loop exit
PB: predicated region body
PF: predicated region fallthrough
CT: control target
= control target key end

     0   :  { %vm55_vm0 = vcmask 261120   ;;  %v2169_v0 = vmov 0.0   ;;  %vm2170_vm1 = vmmov 0   ;;  %vm22_vm2 = vcmask 7168   ;;  %s2886_s1 = inlined_call_operand.vmem [shape: bf16[8,16,32], index: 1, kind: input, shape index: {}]   ;;  %s2887_s0 = inlined_call_operand.vmem [shape: bf16[8,16,32], index: 0, kind: input, shape index: {}]   ;;  %s2888_s3 = inlined_call_operand.vmem [shape: f32[8,1,16], index: 3, kind: input, shape index: {}]   ;;  %s2889_s2 = inlined_call_operand.vmem [shape: bf16[8,16,32], index: 2, kind: input, shape index: {}]   ;;  %s2890_s4 = inlined_call_operand.vmem [shape: bf16[8,16,32], index: 4, kind: output, shape index: {}]  }
   0x1   :  { %1947 = vmatprep.subr.bf16.mxu0 %v2169_v0  ;;  %1953 = vmatprep.subr.bf16.mxu1 %v2169_v0  ;;  %v2049_v1 = vld [vmem:[%s2886_s1] sm:$0xff]   ;;  %56 = vst.msk [vmem:[#allocation4] sm:$0xff] %vm55_vm0, %v2169_v0  ;;  %57 = vst.msk [vmem:[#allocation4 + $0x8] sm:$0xff] %vm55_vm0, %v2169_v0  ;;  %v2050_v2 = vld [vmem:[%s2886_s1 + $0x8] sm:$0xff]   ;;  %v2171_v25 = vmov -1e+30  }
   0x2   :  { %58 = vst.msk [vmem:[#allocation4 + $0x10] sm:$0xff] %vm55_vm0, %v2169_v0  ;;  %59 = vst.msk [vmem:[#allocation4 + $0x18] sm:$0xff] %vm55_vm0, %v2169_v0  ;;  %1949 = vmatprep.mubr.msk.bf16.mxu0 %vm2170_vm1, %v2169_v0  ;;  %1955 = vmatprep.mubr.msk.bf16.mxu1 %vm2170_vm1, %v2169_v0  ;;  %v135_v3 = vsel %vm55_vm0, %v2049_v1, 0  ;;  %v192_v4 = vsel %vm55_vm0, %v2050_v2, 0  ;;  %v2053_v5 = vld [vmem:[%s2886_s1 + $0x10] sm:$0xff]   ;;  %v2054_v6 = vld [vmem:[%s2886_s1 + $0x18] sm:$0xff]  }
   0x3   :  { %60 = vst.msk [vmem:[#allocation4 + $0x20] sm:$0xff] %vm55_vm0, %v2169_v0  ;;  %61 = vst.msk [vmem:[#allocation4 + $0x28] sm:$0xff] %vm55_vm0, %v2169_v0  ;;  %1948 = vmatpush3.bf16.xpose.msra.mxu0 %v135_v3  ;;  %1954 = vmatpush3.bf16.xpose.msra.mxu1 %v192_v4  ;;  %v2051_v7 = vld [vmem:[%s2887_s0] sm:$0xff]   ;;  %v2052_v8 = vld [vmem:[%s2887_s0 + $0x8] sm:$0xff]   ;;  %v249_v9 = vsel %vm55_vm0, %v2053_v5, 0  ;;  %v306_v10 = vsel %vm55_vm0, %v2054_v6, 0 }
   0x4   :  { %62 = vst.msk [vmem:[#allocation4 + $0x30] sm:$0xff] %vm55_vm0, %v2169_v0  ;;  %63 = vst.msk [vmem:[#allocation4 + $0x38] sm:$0xff] %vm55_vm0, %v2169_v0  ;;  %1959 = vmatprep.subr.bf16.mxu0 %v2169_v0  ;;  %1965 = vmatprep.subr.bf16.mxu1 %v2169_v0  ;;  %v2056_v11 = vld [vmem:[%s2886_s1 + $0x20] sm:$0xff]   ;;  %v2058_v12 = vld [vmem:[%s2886_s1 + $0x28] sm:$0xff]   ;;  %vm681_vm3 = vcmask 130048   ;;  %vm1814_vm4 = vcmask 257024  }
   0x5   :  { %64 = vst.msk [vmem:[#allocation4 + $0x40] sm:$0xff] %vm55_vm0, %v2169_v0  ;;  %65 = vst.msk [vmem:[#allocation4 + $0x48] sm:$0xff] %vm55_vm0, %v2169_v0  ;;  %v2055_v13 = vld [vmem:[%s2887_s0 + $0x10] sm:$0xff]   ;;  %v2057_v14 = vld [vmem:[%s2887_s0 + $0x18] sm:$0xff]   ;;  %v363_v15 = vsel %vm55_vm0, %v2056_v11, 0  ;;  %v420_v16 = vsel %vm55_vm0, %v2058_v12, 0 }
   0x6   :  { %66 = vst.msk [vmem:[#allocation4 + $0x50] sm:$0xff] %vm55_vm0, %v2169_v0  ;;  %67 = vst.msk [vmem:[#allocation4 + $0x58] sm:$0xff] %vm55_vm0, %v2169_v0  ;;  %v2060_v17 = vld [vmem:[%s2886_s1 + $0x30] sm:$0xff]   ;;  %v2062_v18 = vld [vmem:[%s2886_s1 + $0x38] sm:$0xff]  }
   0x7   :  { %68 = vst.msk [vmem:[#allocation4 + $0x60] sm:$0xff] %vm55_vm0, %v2169_v0  ;;  %69 = vst.msk [vmem:[#allocation4 + $0x68] sm:$0xff] %vm55_vm0, %v2169_v0  ;;  %v2059_v19 = vld [vmem:[%s2887_s0 + $0x20] sm:$0xff]   ;;  %v2061_v20 = vld [vmem:[%s2887_s0 + $0x28] sm:$0xff]   ;;  %v477_v21 = vsel %vm55_vm0, %v2060_v17, 0  ;;  %v534_v22 = vsel %vm55_vm0, %v2062_v18, 0 }
   0x8   :  { %70 = vst.msk [vmem:[#allocation4 + $0x70] sm:$0xff] %vm55_vm0, %v2169_v0  ;;  %71 = vst.msk [vmem:[#allocation4 + $0x78] sm:$0xff] %vm55_vm0, %v2169_v0  ;;  %v2063_v23 = vld [vmem:[%s2887_s0 + $0x30] sm:$0xff]   ;;  %v2064_v24 = vld [vmem:[%s2887_s0 + $0x38] sm:$0xff]  }
   0x9   :  { %25 = vst.msk [vmem:[#allocation2 + $0x10] sm:$0xff] %vm22_vm2, %v2171_v25  ;;  %23 = vst.msk [vmem:[#allocation2] sm:$0xff] %vm22_vm2, %v2171_v25  ;;  %v1859_v27 = vld [vmem:[%s2888_s3] ss:$0 sm:$0xff]  ;;  %v1860_v30 = vld [vmem:[%s2888_s3 + $0x1] ss:$0 sm:$0xff] }
   0xa   :  { %1950 = vmatmul.mubr.msk.bf16.vlgmr.msra.gmra.mxu0 %vm55_vm0, %v2051_v7  ;;  %1956 = vmatmul.mubr.msk.bf16.vlgmr.msra.gmra.mxu1 %vm55_vm0, %v2052_v8  ;;  %24 = vst.msk [vmem:[#allocation2 + $0x8] sm:$0xff] %vm22_vm2, %v2171_v25  ;;  %26 = vst.msk [vmem:[#allocation2 + $0x18] sm:$0xff] %vm22_vm2, %v2171_v25  ;;  %v1861_v47 = vld [vmem:[%s2888_s3 + $0x2] ss:$0 sm:$0xff]  ;;  %v1862_v51 = vld [vmem:[%s2888_s3 + $0x3] ss:$0 sm:$0xff] }
   0xb   :  { %1960 = vmatpush3.bf16.xpose.msra.mxu0 %v249_v9  ;;  %1966 = vmatpush3.bf16.xpose.msra.mxu1 %v306_v10  ;;  %27 = vst.msk [vmem:[#allocation2 + $0x20] sm:$0xff] %vm22_vm2, %v2171_v25  ;;  %28 = vst.msk [vmem:[#allocation2 + $0x28] sm:$0xff] %vm22_vm2, %v2171_v25  ;;  %v1863_v11 = vld [vmem:[%s2888_s3 + $0x4] ss:$0 sm:$0xff] }
   0xc   :  { %1961 = vmatprep.mubr.msk.bf16.mxu0 %vm2170_vm1, %v2169_v0  ;;  %1971 = vmatprep.subr.bf16.mxu0 %v2169_v0  ;;  %29 = vst.msk [vmem:[#allocation2 + $0x30] sm:$0xff] %vm22_vm2, %v2171_v25  ;;  %30 = vst.msk [vmem:[#allocation2 + $0x38] sm:$0xff] %vm22_vm2, %v2171_v25 }
   0xd   :  { %1967 = vmatprep.mubr.msk.bf16.mxu1 %vm2170_vm1, %v2169_v0  ;;  %1977 = vmatprep.subr.bf16.mxu1 %v2169_v0  ;;  %31 = vst.msk [vmem:[#allocation2 + $0x40] sm:$0xff] %vm22_vm2, %v2171_v25  ;;  %32 = vst.msk [vmem:[#allocation2 + $0x48] sm:$0xff] %vm22_vm2, %v2171_v25 }
   0xe   :  { %33 = vst.msk [vmem:[#allocation2 + $0x50] sm:$0xff] %vm22_vm2, %v2171_v25  ;;  %34 = vst.msk [vmem:[#allocation2 + $0x58] sm:$0xff] %vm22_vm2, %v2171_v25 }
   0xf   :  { %35 = vst.msk [vmem:[#allocation2 + $0x60] sm:$0xff] %vm22_vm2, %v2171_v25  ;;  %36 = vst.msk [vmem:[#allocation2 + $0x68] sm:$0xff] %vm22_vm2, %v2171_v25 }
  0x10   :  { %37 = vst.msk [vmem:[#allocation2 + $0x70] sm:$0xff] %vm22_vm2, %v2171_v25  ;;  %38 = vst.msk [vmem:[#allocation2 + $0x78] sm:$0xff] %vm22_vm2, %v2171_v25 }
  0x11   :  { %39 = vst.msk [vmem:[#allocation3] sm:$0xff] %vm22_vm2, %v2169_v0  ;;  %40 = vst.msk [vmem:[#allocation3 + $0x8] sm:$0xff] %vm22_vm2, %v2169_v0 }
  0x12   :  { %1962 = vmatmul.mubr.msk.bf16.vlgmr.msra.gmra.mxu0 %vm55_vm0, %v2055_v13  ;;  %1968 = vmatmul.mubr.msk.bf16.vlgmr.msra.gmra.mxu1 %vm55_vm0, %v2057_v14  ;;  %41 = vst.msk [vmem:[#allocation3 + $0x10] sm:$0xff] %vm22_vm2, %v2169_v0  ;;  %42 = vst.msk [vmem:[#allocation3 + $0x18] sm:$0xff] %vm22_vm2, %v2169_v0 }
  0x13   :  { %1972 = vmatpush3.bf16.xpose.msra.mxu0 %v363_v15  ;;  %1978 = vmatpush3.bf16.xpose.msra.mxu1 %v420_v16  ;;  %43 = vst.msk [vmem:[#allocation3 + $0x20] sm:$0xff] %vm22_vm2, %v2169_v0  ;;  %44 = vst.msk [vmem:[#allocation3 + $0x28] sm:$0xff] %vm22_vm2, %v2169_v0  ;;  %v1864_v15 = vld [vmem:[%s2888_s3 + $0x5] ss:$0 sm:$0xff]  ;;  %v2172_v16 = vmov 0  }
  0x14   :  { %1973 = vmatprep.mubr.msk.bf16.mxu0 %vm2170_vm1, %v2169_v0  ;;  %1983 = vmatprep.subr.bf16.mxu0 %v2169_v0  ;;  %45 = vst.msk [vmem:[#allocation3 + $0x30] sm:$0xff] %vm22_vm2, %v2169_v0  ;;  %46 = vst.msk [vmem:[#allocation3 + $0x38] sm:$0xff] %vm22_vm2, %v2169_v0 }
  0x15   :  { %1979 = vmatprep.mubr.msk.bf16.mxu1 %vm2170_vm1, %v2169_v0  ;;  %1989 = vmatprep.subr.bf16.mxu1 %v2169_v0  ;;  %47 = vst.msk [vmem:[#allocation3 + $0x40] sm:$0xff] %vm22_vm2, %v2169_v0  ;;  %48 = vst.msk [vmem:[#allocation3 + $0x48] sm:$0xff] %vm22_vm2, %v2169_v0 }
  0x16   :  { %49 = vst.msk [vmem:[#allocation3 + $0x50] sm:$0xff] %vm22_vm2, %v2169_v0  ;;  %50 = vst.msk [vmem:[#allocation3 + $0x58] sm:$0xff] %vm22_vm2, %v2169_v0  ;;  %2048 = vset.pattern.permute.xlu1 %v2172_v16  ;;  %2047 = vset.pattern.permute.xlu0 %v2172_v16 }
  0x17   :  { %51 = vst.msk [vmem:[#allocation3 + $0x60] sm:$0xff] %vm22_vm2, %v2169_v0  ;;  %52 = vst.msk [vmem:[#allocation3 + $0x68] sm:$0xff] %vm22_vm2, %v2169_v0 }
  0x18   :  { %53 = vst.msk [vmem:[#allocation3 + $0x70] sm:$0xff] %vm22_vm2, %v2169_v0  ;;  %54 = vst.msk [vmem:[#allocation3 + $0x78] sm:$0xff] %vm22_vm2, %v2169_v0 }
  0x1a   :  { %1974 = vmatmul.mubr.msk.bf16.vlgmr.msra.gmra.mxu0 %vm55_vm0, %v2059_v19  ;;  %1980 = vmatmul.mubr.msk.bf16.vlgmr.msra.gmra.mxu1 %vm55_vm0, %v2061_v20 }
  0x1b   :  { %1984 = vmatpush3.bf16.xpose.msra.mxu0 %v477_v21  ;;  %1990 = vmatpush3.bf16.xpose.msra.mxu1 %v534_v22 }
  0x1c   :  { %1985 = vmatprep.mubr.msk.bf16.mxu0 %vm2170_vm1, %v2169_v0  ;;  %1991 = vmatprep.mubr.msk.bf16.mxu1 %vm2170_vm1, %v2169_v0 }
  0x1d   :  { %1995 = vmatprep.subr.bf16.mxu0 %v2169_v0  ;;  %2001 = vmatprep.subr.bf16.mxu1 %v2169_v0 }
  0x22   :  { %1986 = vmatmul.mubr.msk.bf16.vlgmr.msra.gmra.mxu0 %vm55_vm0, %v2063_v23  ;;  %1992 = vmatmul.mubr.msk.bf16.vlgmr.msra.gmra.mxu1 %vm55_vm0, %v2064_v24 }
  0x23   :  { %1997 = vmatprep.mubr.msk.bf16.mxu0 %vm2170_vm1, %v2169_v0  ;;  %2003 = vmatprep.mubr.msk.bf16.mxu1 %vm2170_vm1, %v2169_v0 }
  0xca   :  { %v171_v26 = vpop.f32.mrf.mxu0  ;;  %v228_v29 = vpop.f32.mrf.mxu1 }
  0xcb   :  { %v577_v28 = vmul.f32 0.17677669, %v171_v26  ;;  %v579_v31 = vmul.f32 0.17677669, %v228_v29 }
  0xcc   :  { %v1951_v32 = vpop.f32.mrf.mxu0  ;;  %v1957_v33 = vpop.f32.mrf.mxu1 }
  0xcd   :  { %v2378_v34 = vadd.f32 %v1859_v27, %v577_v28  ;;  %v2380_v36 = vadd.f32 %v1860_v30, %v579_v31 }
  0xce   :  { %v174_v35 = vpop.f32.mrf.mxu0  ;;  %v231_v38 = vpop.f32.mrf.mxu1 }
  0xcf   :  { %v578_v37 = vmul.f32 0.17677669, %v174_v35  ;;  %v682_v39 = vsel %vm681_vm3, %v2378_v34, -inf  ;;  %v580_v40 = vmul.f32 0.17677669, %v231_v38  ;;  %v688_v41 = vsel %vm681_vm3, %v2380_v36, -inf }
  0xd0   :  { %683 = vmax.xlane.f32.xlu0 %v682_v39  ;;  %v1952_v42 = vpop.f32.mrf.mxu0  ;;  %689 = vmax.xlane.f32.xlu1 %v688_v41  ;;  %v1958_v43 = vpop.f32.mrf.mxu1  ;;  %v1865_v35 = vld [vmem:[%s2888_s3 + $0x6] ss:$0 sm:$0xff] }
  0xd1   :  { %v2386_v44 = vadd.f32 %v1859_v27, %v578_v37  ;;  %v2388_v46 = vadd.f32 %v1860_v30, %v580_v40  ;;  %v1866_v40 = vld [vmem:[%s2888_s3 + $0x7] ss:$0 sm:$0xff] }
  0xd2   :  { %v285_v45 = vpop.f32.mrf.mxu0  ;;  %v342_v49 = vpop.f32.mrf.mxu1 }
  0xd3   :  { %v581_v48 = vmul.f32 0.17677669, %v285_v45  ;;  %v685_v50 = vsel %vm681_vm3, %v2386_v44, -inf  ;;  %v691_v52 = vsel %vm681_vm3, %v2388_v46, -inf  ;;  %v583_v53 = vmul.f32 0.17677669, %v342_v49 }
  0xd4   :  { %686 = vmax.xlane.f32.xlu0 %v685_v50  ;;  %v1963_v54 = vpop.f32.mrf.mxu0  ;;  %692 = vmax.xlane.f32.xlu1 %v691_v52  ;;  %v1969_v55 = vpop.f32.mrf.mxu1 }
  0xd5   :  { %v2400_v56 = vadd.f32 %v1861_v47, %v581_v48  ;;  %v2402_v58 = vadd.f32 %v1862_v51, %v583_v53 }
  0xd6   :  { %v288_v57 = vpop.f32.mrf.mxu0  ;;  %v345_v60 = vpop.f32.mrf.mxu1 }
  0xd7   :  { %v582_v59 = vmul.f32 0.17677669, %v288_v57  ;;  %v694_v61 = vsel %vm681_vm3, %v2400_v56, -inf  ;;  %v584_v63 = vmul.f32 0.17677669, %v345_v60  ;;  %v700_v3 = vsel %vm681_vm3, %v2402_v58, -inf }
  0xd8   :  { %v1964_v62 = vpop.f32.mrf.mxu0  ;;  %695 = vmax.xlane.f32.xlu0 %v694_v61  ;;  %v1970_v1 = vpop.f32.mrf.mxu1  ;;  %v2460_v57 = vld [vmem:[#allocation2] sm:$0xff] }
  0xd9   :  { %v2406_v2 = vadd.f32 %v1861_v47, %v582_v59  ;;  %v2410_v5 = vadd.f32 %v1862_v51, %v584_v63  ;;  %v2462_v59 = vld [vmem:[#allocation2 + $0x10] sm:$0xff]  ;;  %v2470_v1 = vld [vmem:[#allocation2 + $0x8] sm:$0xff] }
  0xda   :  { %v399_v4 = vpop.f32.mrf.mxu0  ;;  %v456_v8 = vpop.f32.mrf.mxu1 }
  0xdb   :  { %v585_v6 = vmul.f32 0.17677669, %v399_v4  ;;  %v697_v7 = vsel %vm681_vm3, %v2406_v2, -inf  ;;  %v587_v10 = vmul.f32 0.17677669, %v456_v8  ;;  %v703_v13 = vsel %vm681_vm3, %v2410_v5, -inf }
  0xdc   :  { %698 = vmax.xlane.f32.xlu1 %v697_v7  ;;  %v1975_v9 = vpop.f32.mrf.mxu0  ;;  %701 = vmax.xlane.f32.xlu0 %v700_v3  ;;  %v1981_v12 = vpop.f32.mrf.mxu1  ;;  %v2477_v4 = vld [vmem:[#allocation2 + $0x18] sm:$0xff] }
  0xdd   :  { %v2419_v14 = vadd.f32 %v1863_v11, %v585_v6  ;;  %v2424_v18 = vadd.f32 %v1864_v15, %v587_v10 }
  0xde   :  { %v402_v17 = vpop.f32.mrf.mxu0  ;;  %v459_v20 = vpop.f32.mrf.mxu1 }
  0xdf   :  { %v586_v19 = vmul.f32 0.17677669, %v402_v17  ;;  %v706_v21 = vsel %vm681_vm3, %v2419_v14, -inf  ;;  %v588_v23 = vmul.f32 0.17677669, %v459_v20  ;;  %v712_v26 = vsel %vm681_vm3, %v2424_v18, -inf }
  0xe0   :  { %704 = vmax.xlane.f32.xlu1 %v703_v13  ;;  %v1976_v22 = vpop.f32.mrf.mxu0  ;;  %707 = vmax.xlane.f32.xlu0 %v706_v21  ;;  %v1982_v24 = vpop.f32.mrf.mxu1  ;;  %v2504_v17 = vld [vmem:[#allocation2 + $0x28] sm:$0xff] }
  0xe1   :  { %v2428_v25 = vadd.f32 %v1863_v11, %v586_v19  ;;  %v2432_v28 = vadd.f32 %v1864_v15, %v588_v23  ;;  %v2490_v11 = vld [vmem:[#allocation2 + $0x20] sm:$0xff]  ;;  %v2506_v19 = vld [vmem:[#allocation2 + $0x30] sm:$0xff] }
  0xe2   :  { %v513_v27 = vpop.f32.mrf.mxu0  ;;  %v570_v31 = vpop.f32.mrf.mxu1 }
  0xe3   :  { %v589_v29 = vmul.f32 0.17677669, %v513_v27  ;;  %v709_v30 = vsel %vm681_vm3, %v2428_v25, -inf  ;;  %v591_v33 = vmul.f32 0.17677669, %v570_v31  ;;  %v715_v38 = vsel %vm681_vm3, %v2432_v28, -inf }
  0xe4   :  { %710 = vmax.xlane.f32.xlu1 %v709_v30  ;;  %v1987_v32 = vpop.f32.mrf.mxu0  ;;  %713 = vmax.xlane.f32.xlu0 %v712_v26  ;;  %v1993_v37 = vpop.f32.mrf.mxu1  ;;  %v2519_v26 = vld [vmem:[#allocation2 + $0x38] sm:$0xff]  ;;  %v2521_v27 = vld [vmem:[#allocation2 + $0x40] sm:$0xff] }
  0xe5   :  { %v2441_v39 = vadd.f32 %v1865_v35, %v589_v29  ;;  %v2446_v42 = vadd.f32 %v1866_v40, %v591_v33  ;;  %v2538_v37 = vld [vmem:[#allocation2 + $0x48] sm:$0xff] }
  0xe6   :  { %v516_v41 = vpop.f32.mrf.mxu0  ;;  %v573_v45 = vpop.f32.mrf.mxu1 }
  0xe7   :  { %v590_v43 = vmul.f32 0.17677669, %v516_v41  ;;  %v718_v47 = vsel %vm681_vm3, %v2441_v39, -inf  ;;  %v592_v49 = vmul.f32 0.17677669, %v573_v45  ;;  %v724_v52 = vsel %vm681_vm3, %v2446_v42, -inf }
  0xe8   :  { %716 = vmax.xlane.f32.xlu1 %v715_v38  ;;  %v1988_v48 = vpop.f32.mrf.mxu0  ;;  %719 = vmax.xlane.f32.xlu0 %v718_v47  ;;  %v1994_v51 = vpop.f32.mrf.mxu1  ;;  %v2540_v38 = vld [vmem:[#allocation2 + $0x50] sm:$0xff] }
  0xe9   :  { %v2450_v50 = vadd.f32 %v1865_v35, %v590_v43  ;;  %v2454_v53 = vadd.f32 %v1866_v40, %v592_v49  ;;  %v2065_v43 = vld [vmem:[%s2889_s2] sm:$0xff]   ;;  %v2557_v49 = vld [vmem:[#allocation2 + $0x58] sm:$0xff] }
  0xea   :  { %1996 = vmatpush3.bf16.msra.mxu0 %v2065_v43 }
  0xeb   :  { %v721_v54 = vsel %vm681_vm3, %v2450_v50, -inf  ;;  %v727_v55 = vsel %vm681_vm3, %v2454_v53, -inf  ;;  %2007 = vmatprep.subr.bf16.mxu0 %v2169_v0 }
  0xec   :  { %722 = vmax.xlane.f32.xlu1 %v721_v54  ;;  %725 = vmax.xlane.f32.xlu0 %v724_v52  ;;  %v2562_v52 = vld [vmem:[#allocation2 + $0x60] sm:$0xff] }
  0xf0   :  { %728 = vmax.xlane.f32.xlu1 %v727_v55 }
 0x159   :  { %v684_v60 = vpop.xlane.xlu0 %683  ;;  %v690_v61 = vpop.xlane.xlu1 %689 }
 0x15a   :  { %v2465_v62 = vmax.f32 %v2460_v57, %v684_v60  ;;  %v2468_v63 = vmax.f32 %v2462_v59, %v690_v61  ;;  %v2066_v60 = vld [vmem:[%s2889_s2 + $0x8] sm:$0xff]  }
 0x15b   :  { %2002 = vmatpush3.bf16.msra.mxu1 %v2066_v60 }
 0x15c   :  { %1587 = vst.msk [vmem:[#allocation2] sm:$0xff] %vm22_vm2, %v2465_v62  ;;  %796 = vperm.xlu0 %2047, %v2465_v62   ;;  %1589 = vst.msk [vmem:[#allocation2 + $0x10] sm:$0xff] %vm22_vm2, %v2468_v63  ;;  %806 = vperm.xlu1 %2048, %v2468_v63  }
 0x15d   :  { %v687_v7 = vpop.xlane.xlu0 %686  ;;  %v693_v8 = vpop.xlane.xlu1 %692  ;;  %2013 = vmatprep.subr.bf16.mxu1 %v2169_v0 }
 0x15e   :  { %v2485_v9 = vmax.f32 %v2470_v1, %v687_v7  ;;  %v2488_v10 = vmax.f32 %v2477_v4, %v693_v8 }
 0x160   :  { %v747_v12 = vsub.f32 %v2470_v1, %v2485_v9  ;;  %1588 = vst.msk [vmem:[#allocation2 + $0x8] sm:$0xff] %vm22_vm2, %v2485_v9  ;;  %1590 = vst.msk [vmem:[#allocation2 + $0x18] sm:$0xff] %vm22_vm2, %v2488_v10  ;;  %801 = vperm.xlu1 %2048, %v2485_v9  }
 0x161   :  { %v696_v15 = vpop.xlane.xlu0 %695 }
 0x162   :  { %v2502_v16 = vmax.f32 %v2490_v11, %v696_v15 }
 0x164   :  { %1591 = vst.msk [vmem:[#allocation2 + $0x20] sm:$0xff] %vm22_vm2, %v2502_v16  ;;  %811 = vperm.xlu1 %2048, %v2488_v10   ;;  %v2893_v1 = vsub.f32 %v2490_v11, %v2502_v16 }
 0x165   :  { %v699_v21 = vpop.xlane.xlu1 %698  ;;  %v702_v22 = vpop.xlane.xlu0 %701 }
 0x166   :  { %v2514_v23 = vmax.f32 %v2504_v17, %v699_v21  ;;  %v2517_v24 = vmax.f32 %v2506_v19, %v702_v22  ;;  %v2584_v21 = vld [vmem:[#allocation2 + $0x68] sm:$0xff]  ;;  %v2586_v22 = vld [vmem:[#allocation2 + $0x70] sm:$0xff]  ;;  %v770_v9 = vmul.f32 1.442695, %v2893_v1 }
 0x168   :  { %1592 = vst.msk [vmem:[#allocation2 + $0x28] sm:$0xff] %vm22_vm2, %v2514_v23  ;;  %1593 = vst.msk [vmem:[#allocation2 + $0x30] sm:$0xff] %vm22_vm2, %v2517_v24  ;;  %816 = vperm.xlu1 %2048, %v2502_v16  }
 0x169   :  { %v705_v31 = vpop.xlane.xlu1 %704  ;;  %v708_v32 = vpop.xlane.xlu0 %707 }
 0x16a   :  { %v2533_v33 = vmax.f32 %v2519_v26, %v705_v31  ;;  %v2536_v35 = vmax.f32 %v2521_v27, %v708_v32 }
 0x16c   :  { %1594 = vst.msk [vmem:[#allocation2 + $0x38] sm:$0xff] %vm22_vm2, %v2533_v33  ;;  %1595 = vst.msk [vmem:[#allocation2 + $0x40] sm:$0xff] %vm22_vm2, %v2536_v35  ;;  %826 = vperm.xlu1 %2048, %v2517_v24   ;;  %v2897_v11 = vsub.f32 %v2521_v27, %v2536_v35 }
 0x16d   :  { %v711_v45 = vpop.xlane.xlu1 %710  ;;  %v714_v47 = vpop.xlane.xlu0 %713 }
 0x16e   :  { %v2555_v48 = vmax.f32 %v2538_v37, %v711_v45  ;;  %v2560_v51 = vmax.f32 %v2540_v38, %v714_v47  ;;  %v778_v16 = vmul.f32 1.442695, %v2897_v11 }
 0x170   :  { %1596 = vst.msk [vmem:[#allocation2 + $0x48] sm:$0xff] %vm22_vm2, %v2555_v48  ;;  %841 = vperm.xlu0 %2047, %v2555_v48   ;;  %1597 = vst.msk [vmem:[#allocation2 + $0x50] sm:$0xff] %vm22_vm2, %v2560_v51  ;;  %821 = vperm.xlu1 %2048, %v2514_v23  }
 0x171   :  { %v717_v61 = vpop.xlane.xlu1 %716  ;;  %v720_v7 = vpop.xlane.xlu0 %719 }
 0x172   :  { %v2579_v8 = vmax.f32 %v2557_v49, %v717_v61  ;;  %v2582_v15 = vmax.f32 %v2562_v52, %v720_v7  ;;  %v2605_v61 = vld [vmem:[#allocation2 + $0x78] sm:$0xff] }
 0x174   :  { %1598 = vst.msk [vmem:[#allocation2 + $0x58] sm:$0xff] %vm22_vm2, %v2579_v8  ;;  %851 = vperm.xlu0 %2047, %v2579_v8   ;;  %1599 = vst.msk [vmem:[#allocation2 + $0x60] sm:$0xff] %vm22_vm2, %v2582_v15  ;;  %831 = vperm.xlu1 %2048, %v2533_v33  }
 0x175   :  { %v723_v43 = vpop.xlane.xlu1 %722  ;;  %v726_v45 = vpop.xlane.xlu0 %725 }
 0x176   :  { %v2600_v47 = vmax.f32 %v2584_v21, %v723_v43  ;;  %v2603_v60 = vmax.f32 %v2586_v22, %v726_v45 }
 0x178   :  { %1600 = vst.msk [vmem:[#allocation2 + $0x68] sm:$0xff] %vm22_vm2, %v2600_v47  ;;  %861 = vperm.xlu0 %2047, %v2600_v47   ;;  %1601 = vst.msk [vmem:[#allocation2 + $0x70] sm:$0xff] %vm22_vm2, %v2603_v60  ;;  %836 = vperm.xlu1 %2048, %v2536_v35  }
 0x179   :  { %v729_v43 = vpop.xlane.xlu1 %728 }
 0x17a   :  { %v2618_v45 = vmax.f32 %v2605_v61, %v729_v43 }
 0x17c   :  { %1602 = vst.msk [vmem:[#allocation2 + $0x78] sm:$0xff] %vm22_vm2, %v2618_v45  ;;  %871 = vperm.xlu0 %2047, %v2618_v45   ;;  %846 = vperm.xlu1 %2048, %v2560_v51  }
 0x180   :  { %856 = vperm.xlu1 %2048, %v2582_v15  }
 0x184   :  { %866 = vperm.xlu1 %2048, %v2603_v60  }
 0x1d7   :  { %v797_v31 = vpop.permute.xlu0 %796  ;;  %v807_v54 = vpop.permute.xlu1 %806 }
 0x1d8   :  { %v874_v32 = vsub.f32 %v2378_v34, %v797_v31  ;;  %v876_v43 = vsub.f32 %v2380_v36, %v807_v54 }
 0x1da   :  { %v890_v55 = vmul.f32 1.442695, %v874_v32  ;;  %v894_v40 = vmul.f32 1.442695, %v876_v43 }
 0x1db   :  { %v802_v7 = vpop.permute.xlu1 %801 }
 0x1dc   :  { %2073 = vpow2.f32 %v890_v55  ;;  %v875_v41 = vsub.f32 %v2386_v44, %v802_v7 }
 0x1dd   :  { %2075 = vpow2.f32 %v894_v40 }
 0x1de   :  { %v892_v29 = vmul.f32 1.442695, %v875_v41 }
 0x1df   :  { %v812_v30 = vpop.permute.xlu1 %811 }
 0x1e0   :  { %2077 = vpow2.f32 %v892_v29  ;;  %v877_v13 = vsub.f32 %v2388_v46, %v812_v30 }
 0x1e2   :  { %v896_v20 = vmul.f32 1.442695, %v877_v13 }
 0x1e3   :  { %v817_v3 = vpop.permute.xlu1 %816 }
 0x1e4   :  { %2079 = vpow2.f32 %v896_v20  ;;  %v878_v34 = vsub.f32 %v2400_v56, %v817_v3 }
 0x1e6   :  { %v898_v31 = vmul.f32 1.442695, %v878_v34 }
 0x1e7   :  { %v827_v6 = vpop.permute.xlu1 %826 }
 0x1e8   :  { %2081 = vpow2.f32 %v898_v31  ;;  %v880_v54 = vsub.f32 %v2402_v58, %v827_v6  ;;  %v2067_v58 = vld [vmem:[%s2889_s2 + $0x10] sm:$0xff]  }
 0x1e9   :  { %v2074_v36 = vpop.eup %2073 }
 0x1ea   :  { %v2076_v55 = vpop.eup %2075  ;;  %v954_v40 = vsel %vm681_vm3, %v2074_v36, 0.0  ;;  %v902_v44 = vmul.f32 1.442695, %v880_v54 }
 0x1eb   :  { %v842_v41 = vpop.permute.xlu0 %841  ;;  %955 = vadd.xlane.f32.xlu1 %v954_v40  ;;  %v960_v29 = vsel %vm681_vm3, %v2076_v55, 0.0  ;;  %v822_v46 = vpop.permute.xlu1 %821 }
 0x1ec   :  { %961 = vadd.xlane.f32.xlu0 %v960_v29  ;;  %2083 = vpow2.f32 %v902_v44  ;;  %v879_v13 = vsub.f32 %v2406_v2, %v822_v46  ;;  %v883_v3 = vsub.f32 %v2428_v25, %v842_v41  ;;  %v2068_v25 = vld [vmem:[%s2889_s2 + $0x18] sm:$0xff]  }
 0x1ed   :  { %v2078_v56 = vpop.eup %2077 }
 0x1ee   :  { %v900_v6 = vmul.f32 1.442695, %v879_v13  ;;  %v957_v30 = vsel %vm681_vm3, %v2078_v56, 0.0  ;;  %v1147_v32 = vpack.c.bf16 %v2078_v56, %v2074_v36  ;;  %v908_v34 = vmul.f32 1.442695, %v883_v3 }
 0x1ef   :  { %v852_v20 = vpop.permute.xlu0 %851  ;;  %v832_v7 = vpop.permute.xlu1 %831 }
 0x1f0   :  { %958 = vadd.xlane.f32.xlu0 %v957_v30  ;;  %2085 = vpow2.f32 %v900_v6  ;;  %v881_v43 = vsub.f32 %v2410_v5, %v832_v7  ;;  %1998 = vmatmul.mubr.msk.bf16.vlgmr.msra.gmra.mxu0 %vm681_vm3, %v1147_v32  ;;  %v885_v31 = vsub.f32 %v2432_v28, %v852_v20 }
 0x1f1   :  { %v2080_v2 = vpop.eup %2079  ;;  %2008 = vmatpush3.bf16.msra.mxu0 %v2067_v58  ;;  %2009 = vmatprep.mubr.msk.bf16.mxu0 %vm2170_vm1, %v2169_v0 }
 0x1f2   :  { %v904_v36 = vmul.f32 1.442695, %v881_v43  ;;  %v963_v40 = vsel %vm681_vm3, %v2080_v2, 0.0  ;;  %v1148_v44 = vpack.c.bf16 %v2080_v2, %v2076_v55  ;;  %2019 = vmatprep.subr.bf16.mxu0 %v2169_v0  ;;  %v912_v28 = vmul.f32 1.442695, %v885_v31  ;;  %v2069_v2 = vld [vmem:[%s2889_s2 + $0x20] sm:$0xff]  }
 0x1f3   :  { %v862_v54 = vpop.permute.xlu0 %861  ;;  %964 = vadd.xlane.f32.xlu1 %v963_v40  ;;  %v837_v5 = vpop.permute.xlu1 %836 }
 0x1f4   :  { %2087 = vpow2.f32 %v904_v36  ;;  %v882_v41 = vsub.f32 %v2419_v14, %v837_v5  ;;  %2004 = vmatmul.mubr.msk.bf16.vlgmr.msra.gmra.mxu1 %vm681_vm3, %v1148_v44  ;;  %v887_v46 = vsub.f32 %v2450_v50, %v862_v54 }
 0x1f5   :  { %v2082_v29 = vpop.eup %2081  ;;  %2014 = vmatpush3.bf16.msra.mxu1 %v2068_v25  ;;  %2015 = vmatprep.mubr.msk.bf16.mxu1 %vm2170_vm1, %v2169_v0  ;;  %2089 = vpow2.f32 %v908_v34 }
 0x1f6   :  { %v906_v13 = vmul.f32 1.442695, %v882_v41  ;;  %v966_v55 = vsel %vm681_vm3, %v2082_v29, 0.0  ;;  %2025 = vmatprep.subr.bf16.mxu1 %v2169_v0  ;;  %v916_v6 = vmul.f32 1.442695, %v887_v46 }
 0x1f7   :  { %v872_v56 = vpop.permute.xlu0 %871  ;;  %967 = vadd.xlane.f32.xlu0 %v966_v55  ;;  %v847_v3 = vpop.permute.xlu1 %846 }
 0x1f8   :  { %2091 = vpow2.f32 %v906_v13  ;;  %v884_v14 = vsub.f32 %v2424_v18, %v847_v3  ;;  %v889_v50 = vsub.f32 %v2454_v53, %v872_v56  ;;  %v2072_v3 = vld [vmem:[%s2889_s2 + $0x38] sm:$0xff]  }
 0x1f9   :  { %v2084_v58 = vpop.eup %2083  ;;  %2093 = vpow2.f32 %v912_v28 }
 0x1fa   :  { %v910_v20 = vmul.f32 1.442695, %v884_v14  ;;  %v972_v30 = vsel %vm681_vm3, %v2084_v58, 0.0  ;;  %v920_v18 = vmul.f32 1.442695, %v889_v50 }
 0x1fb   :  { %973 = vadd.xlane.f32.xlu0 %v972_v30  ;;  %v857_v32 = vpop.permute.xlu1 %856 }
 0x1fc   :  { %2095 = vpow2.f32 %v910_v20  ;;  %v886_v7 = vsub.f32 %v2441_v39, %v857_v32  ;;  %v2070_v39 = vld [vmem:[%s2889_s2 + $0x28] sm:$0xff]  }
 0x1fd   :  { %v2086_v43 = vpop.eup %2085  ;;  %2097 = vpow2.f32 %v916_v6 }
 0x1fe   :  { %v914_v34 = vmul.f32 1.442695, %v886_v7  ;;  %v969_v25 = vsel %vm681_vm3, %v2086_v43, 0.0  ;;  %v1149_v31 = vpack.c.bf16 %v2086_v43, %v2082_v29  ;;  %v2071_v29 = vld [vmem:[%s2889_s2 + $0x30] sm:$0xff]  }
 0x1ff   :  { %970 = vadd.xlane.f32.xlu1 %v969_v25  ;;  %v867_v53 = vpop.permute.xlu1 %866 }
 0x200   :  { %2099 = vpow2.f32 %v914_v34  ;;  %v888_v36 = vsub.f32 %v2446_v42, %v867_v53  ;;  %2010 = vmatmul.mubr.msk.bf16.vlgmr.msra.gmra.mxu0 %vm681_vm3, %v1149_v31  ;;  %v2891_v31 = vsub.f32 %v2462_v59, %v2468_v63  ;;  %v2895_v59 = vsub.f32 %v2506_v19, %v2517_v24 }
 0x201   :  { %v2088_v54 = vpop.eup %2087  ;;  %2020 = vmatpush3.bf16.msra.mxu0 %v2069_v2  ;;  %2021 = vmatprep.mubr.msk.bf16.mxu0 %vm2170_vm1, %v2169_v0  ;;  %2101 = vpow2.f32 %v920_v18  ;;  %v764_v18 = vmul.f32 1.442695, %v747_v12  ;;  %v2894_v12 = vsub.f32 %v2477_v4, %v2488_v10  ;;  %v2898_v4 = vsub.f32 %v2519_v26, %v2533_v33 }
 0x202   :  { %v918_v40 = vmul.f32 1.442695, %v888_v36  ;;  %v975_v44 = vsel %vm681_vm3, %v2088_v54, 0.0  ;;  %v1150_v5 = vpack.c.bf16 %v2088_v54, %v2084_v58  ;;  %2031 = vmatprep.subr.bf16.mxu0 %v2169_v0  ;;  %v2090_v41 = vpop.eup %2089  ;;  %v766_v53 = vmul.f32 1.442695, %v2891_v31 }
 0x203   :  { %976 = vadd.xlane.f32.xlu1 %v975_v44  ;;  %v981_v46 = vsel %vm681_vm3, %v2090_v41, 0.0  ;;  %v2892_v36 = vsub.f32 %v2460_v57, %v2465_v62  ;;  %v774_v63 = vmul.f32 1.442695, %v2895_v59  ;;  %v2896_v57 = vsub.f32 %v2504_v17, %v2514_v23  ;;  %v927_v59 = vld [vmem:[#allocation3 + $0x28] sm:$0xff] }
 0x204   :  { %2103 = vpow2.f32 %v918_v40  ;;  %2016 = vmatmul.mubr.msk.bf16.vlgmr.msra.gmra.mxu1 %vm681_vm3, %v1150_v5  ;;  %v776_v10 = vmul.f32 1.442695, %v2898_v4  ;;  %v2899_v19 = vsub.f32 %v2540_v38, %v2560_v51  ;;  %v2900_v17 = vsub.f32 %v2538_v37, %v2555_v48 }
 0x205   :  { %v2092_v42 = vpop.eup %2091  ;;  %2026 = vmatpush3.bf16.msra.mxu1 %v2070_v39  ;;  %2027 = vmatprep.mubr.msk.bf16.mxu1 %vm2170_vm1, %v2169_v0  ;;  %2105 = vpow2.f32 %v764_v18  ;;  %v762_v54 = vmul.f32 1.442695, %v2892_v36  ;;  %v768_v39 = vmul.f32 1.442695, %v2894_v12  ;;  %v772_v62 = vmul.f32 1.442695, %v2896_v57 }
 0x206   :  { %v978_v28 = vsel %vm681_vm3, %v2092_v42, 0.0  ;;  %v1151_v13 = vpack.c.bf16 %v2090_v41, %v2092_v42  ;;  %2037 = vmatprep.subr.bf16.mxu1 %v2169_v0  ;;  %v2094_v55 = vpop.eup %2093  ;;  %2107 = vpow2.f32 %v766_v53  ;;  %v782_v24 = vmul.f32 1.442695, %v2899_v19 }
 0x207   :  { %982 = vadd.xlane.f32.xlu1 %v981_v46  ;;  %979 = vadd.xlane.f32.xlu0 %v978_v28  ;;  %v987_v58 = vsel %vm681_vm3, %v2094_v55, 0.0  ;;  %2109 = vpow2.f32 %v762_v54  ;;  %v780_v23 = vmul.f32 1.442695, %v2900_v17  ;;  %v2901_v26 = vsub.f32 %v2562_v52, %v2582_v15  ;;  %v928_v54 = vld [vmem:[#allocation3 + $0x30] sm:$0xff]  ;;  %v931_v17 = vld [vmem:[#allocation3 + $0x48] sm:$0xff] }
 0x208   :  { %2022 = vmatmul.mubr.msk.bf16.vlgmr.msra.gmra.mxu0 %vm681_vm3, %v1151_v13  ;;  %2111 = vpow2.f32 %v770_v9  ;;  %v2902_v38 = vsub.f32 %v2557_v49, %v2579_v8  ;;  %v2903_v37 = vsub.f32 %v2586_v22, %v2603_v60  ;;  %v2904_v52 = vsub.f32 %v2584_v21, %v2600_v47  ;;  %v922_v13 = vld [vmem:[#allocation3] sm:$0xff] }
 0x209   :  { %v2096_v56 = vpop.eup %2095  ;;  %2032 = vmatpush3.bf16.msra.mxu0 %v2071_v29  ;;  %2033 = vmatprep.mubr.msk.bf16.mxu0 %vm2170_vm1, %v2169_v0  ;;  %2113 = vpow2.f32 %v768_v39  ;;  %v786_v33 = vmul.f32 1.442695, %v2901_v26  ;;  %v2905_v8 = vsub.f32 %v2605_v61, %v2618_v45 }
 0x20a   :  { %v2098_v14 = vpop.eup %2097  ;;  %v984_v6 = vsel %vm681_vm3, %v2096_v56, 0.0  ;;  %v1152_v50 = vpack.c.bf16 %v2094_v55, %v2096_v56  ;;  %2115 = vpow2.f32 %v774_v63  ;;  %v784_v51 = vmul.f32 1.442695, %v2902_v38  ;;  %v924_v55 = vld [vmem:[#allocation3 + $0x10] sm:$0xff] }
 0x20b   :  { %988 = vadd.xlane.f32.xlu1 %v987_v58  ;;  %985 = vadd.xlane.f32.xlu0 %v984_v6  ;;  %v993_v30 = vsel %vm681_vm3, %v2098_v14, 0.0  ;;  %2117 = vpow2.f32 %v772_v62  ;;  %v790_v48 = vmul.f32 1.442695, %v2903_v37  ;;  %v788_v15 = vmul.f32 1.442695, %v2904_v52  ;;  %v932_v37 = vld [vmem:[#allocation3 + $0x50] sm:$0xff] }
 0x20c   :  { %2028 = vmatmul.mubr.msk.bf16.vlgmr.msra.gmra.mxu1 %vm681_vm3, %v1152_v50  ;;  %2119 = vpow2.f32 %v778_v16  ;;  %v792_v22 = vmul.f32 1.442695, %v2905_v8  ;;  %v923_v50 = vld [vmem:[#allocation3 + $0x8] sm:$0xff]  ;;  %v929_v16 = vld [vmem:[#allocation3 + $0x38] sm:$0xff] }
 0x20d   :  { %v2100_v20 = vpop.eup %2099  ;;  %2038 = vmatpush3.bf16.msra.mxu1 %v2072_v3  ;;  %2039 = vmatprep.mubr.msk.bf16.mxu1 %vm2170_vm1, %v2169_v0  ;;  %2121 = vpow2.f32 %v776_v10 }
 0x20e   :  { %v990_v32 = vsel %vm681_vm3, %v2100_v20, 0.0  ;;  %v1153_v7 = vpack.c.bf16 %v2098_v14, %v2100_v20  ;;  %v2102_v43 = vpop.eup %2101  ;;  %2123 = vpow2.f32 %v782_v24 }
 0x20f   :  { %994 = vadd.xlane.f32.xlu1 %v993_v30  ;;  %991 = vadd.xlane.f32.xlu0 %v990_v32  ;;  %v999_v34 = vsel %vm681_vm3, %v2102_v43, 0.0  ;;  %2125 = vpow2.f32 %v780_v23 }
 0x210   :  { %2034 = vmatmul.mubr.msk.bf16.vlgmr.msra.gmra.mxu0 %vm681_vm3, %v1153_v7  ;;  %2127 = vpow2.f32 %v786_v33  ;;  %v925_v7 = vld [vmem:[#allocation3 + $0x18] sm:$0xff] }
 0x211   :  { %v2104_v2 = vpop.eup %2103  ;;  %2129 = vpow2.f32 %v784_v51 }
 0x212   :  { %v996_v25 = vsel %vm681_vm3, %v2104_v2, 0.0  ;;  %v1154_v0 = vpack.c.bf16 %v2102_v43, %v2104_v2  ;;  %v2106_v40 = vpop.eup %2105  ;;  %2131 = vpow2.f32 %v790_v48  ;;  %v933_v48 = vld [vmem:[#allocation3 + $0x58] sm:$0xff] }
 0x213   :  { %1000 = vadd.xlane.f32.xlu1 %v999_v34  ;;  %997 = vadd.xlane.f32.xlu0 %v996_v25  ;;  %v2108_v44 = vpop.eup %2107  ;;  %2133 = vpow2.f32 %v788_v15  ;;  %v939_v30 = vmul.f32 %v2106_v40, %v923_v50  ;;  %v926_v34 = vld [vmem:[#allocation3 + $0x20] sm:$0xff]  ;;  %v936_v50 = vld [vmem:[#allocation3 + $0x70] sm:$0xff] }
 0x214   :  { %2040 = vmatmul.mubr.msk.bf16.vlgmr.msra.gmra.mxu1 %vm681_vm3, %v1154_v0  ;;  %v2110_v27 = vpop.eup %2109  ;;  %2135 = vpow2.f32 %v792_v22  ;;  %v940_v3 = vmul.f32 %v2108_v44, %v924_v55 }
 0x215   :  { %v2112_v35 = vpop.eup %2111  ;;  %v938_v56 = vmul.f32 %v2110_v27, %v922_v13  ;;  %v935_v13 = vld [vmem:[#allocation3 + $0x68] sm:$0xff] }
 0x216   :  { %v2114_v5 = vpop.eup %2113  ;;  %v942_v31 = vmul.f32 %v2112_v35, %v926_v34 }
 0x217   :  { %v2116_v41 = vpop.eup %2115  ;;  %v941_v2 = vmul.f32 %v2114_v5, %v925_v7 }
 0x218   :  { %v2747_v42 = vpop.eup %2117  ;;  %v944_v12 = vmul.f32 %v2116_v41, %v928_v54 }
 0x219   :  { %v2750_v49 = vpop.eup %2119  ;;  %v943_v62 = vmul.f32 %v2747_v42, %v927_v59 }
 0x21a   :  { %v2755_v60 = vpop.eup %2121 }
 0x21b   :  { %v2759_v21 = vpop.eup %2123  ;;  %v945_v19 = vmul.f32 %v2755_v60, %v929_v16  ;;  %v1035_v16 = vld [vmem:[#allocation4] sm:$0xff] }
 0x21c   :  { %v2761_v47 = vpop.eup %2125 }
 0x21d   :  { %v2765_v29 = vpop.eup %2127 }
 0x21e   :  { %v2767_v46 = vpop.eup %2129 }
 0x21f   :  { %v2771_v61 = vpop.eup %2131 }
 0x220   :  { %v2773_v45 = vpop.eup %2133 }
 0x221   :  { %v2777_v28 = vpop.eup %2135 }
 0x224   :  { %1058 = vperm.xlu1 %2048, %v2106_v40  }
 0x228   :  { %1063 = vperm.xlu1 %2048, %v2108_v44   ;;  %v930_v44 = vld [vmem:[#allocation3 + $0x40] sm:$0xff] }
 0x229   :  { %1053 = vperm.xlu0 %2047, %v2110_v27   ;;  %v946_v33 = vmul.f32 %v2750_v49, %v930_v44  ;;  %v1036_v44 = vld [vmem:[#allocation4 + $0x8] sm:$0xff] }
 0x22c   :  { %1073 = vperm.xlu1 %2048, %v2112_v35   ;;  %v947_v35 = vmul.f32 %v2761_v47, %v931_v17 }
 0x22d   :  { %1068 = vperm.xlu0 %2047, %v2114_v5  }
 0x230   :  { %1083 = vperm.xlu1 %2048, %v2116_v41  }
 0x231   :  { %1078 = vperm.xlu0 %2047, %v2747_v42   ;;  %v948_v42 = vmul.f32 %v2759_v21, %v932_v37 }
 0x234   :  { %1093 = vperm.xlu1 %2048, %v2750_v49   ;;  %v949_v49 = vmul.f32 %v2767_v46, %v933_v48 }
 0x235   :  { %1088 = vperm.xlu0 %2047, %v2755_v60  }
 0x238   :  { %1103 = vperm.xlu1 %2048, %v2759_v21   ;;  %v951_v21 = vmul.f32 %v2773_v45, %v935_v13 }
 0x239   :  { %1098 = vperm.xlu0 %2047, %v2761_v47   ;;  %v934_v47 = vld [vmem:[#allocation3 + $0x60] sm:$0xff] }
 0x23c   :  { %1113 = vperm.xlu1 %2048, %v2765_v29  }
 0x23d   :  { %1108 = vperm.xlu0 %2047, %v2767_v46  }
 0x240   :  { %1123 = vperm.xlu1 %2048, %v2771_v61  }
 0x241   :  { %1118 = vperm.xlu0 %2047, %v2773_v45  }
 0x245   :  { %1128 = vperm.xlu0 %2047, %v2777_v28  }
 0x274   :  { %v956_v14 = vpop.xlane.xlu1 %955 }
 0x275   :  { %v962_v58 = vpop.xlane.xlu0 %961  ;;  %v1002_v6 = vadd.f32 %v956_v14, %v938_v56  ;;  %v950_v14 = vmul.f32 %v2765_v29, %v934_v47 }
 0x276   :  { %v1004_v20 = vadd.f32 %v962_v58, %v940_v3 }
 0x277   :  { %1019 = vst.msk [vmem:[#allocation3] sm:$0xff] %vm22_vm2, %v1002_v6 }
 0x278   :  { %1021 = vst.msk [vmem:[#allocation3 + $0x10] sm:$0xff] %vm22_vm2, %v1004_v20  ;;  %v937_v20 = vld [vmem:[#allocation3 + $0x78] sm:$0xff] }
 0x279   :  { %v959_v32 = vpop.xlane.xlu0 %958  ;;  %v953_v29 = vmul.f32 %v2777_v28, %v937_v20 }
 0x27a   :  { %v1003_v43 = vadd.f32 %v959_v32, %v939_v30 }
 0x27c   :  { %1020 = vst.msk [vmem:[#allocation3 + $0x8] sm:$0xff] %vm22_vm2, %v1003_v43  ;;  %v965_v18 = vpop.xlane.xlu1 %964 }
 0x27d   :  { %v1005_v25 = vadd.f32 %v965_v18, %v941_v2  ;;  %v952_v2 = vmul.f32 %v2771_v61, %v936_v50 }
 0x27e   :  { %v1606_v0 = vld [vmem:[#allocation3] sm:$0xff] }
 0x27f   :  { %2137 = vrcp.f32 %v1606_v0  ;;  %1022 = vst.msk [vmem:[#allocation3 + $0x18] sm:$0xff] %vm22_vm2, %v1005_v25  ;;  %v1608_v53 = vld [vmem:[#allocation3 + $0x10] sm:$0xff] }
 0x280   :  { %v968_v36 = vpop.xlane.xlu0 %967  ;;  %2139 = vrcp.f32 %v1608_v53 }
 0x281   :  { %v1006_v1 = vadd.f32 %v968_v36, %v942_v31 }
 0x283   :  { %v1607_v9 = vld [vmem:[#allocation3 + $0x8] sm:$0xff]  ;;  %1023 = vst.msk [vmem:[#allocation3 + $0x20] sm:$0xff] %vm22_vm2, %v1006_v1 }
 0x284   :  { %2141 = vrcp.f32 %v1607_v9  ;;  %v974_v39 = vpop.xlane.xlu0 %973 }
 0x285   :  { %v1008_v63 = vadd.f32 %v974_v39, %v944_v12 }
 0x286   :  { %v1609_v57 = vld [vmem:[#allocation3 + $0x18] sm:$0xff] }
 0x287   :  { %1025 = vst.msk [vmem:[#allocation3 + $0x30] sm:$0xff] %vm22_vm2, %v1008_v63  ;;  %2143 = vrcp.f32 %v1609_v57 }
 0x288   :  { %v971_v11 = vpop.xlane.xlu1 %970 }
 0x289   :  { %v1007_v40 = vadd.f32 %v971_v11, %v943_v62 }
 0x28a   :  { %v1610_v4 = vld [vmem:[#allocation3 + $0x20] sm:$0xff] }
 0x28b   :  { %1024 = vst.msk [vmem:[#allocation3 + $0x28] sm:$0xff] %vm22_vm2, %v1007_v40  ;;  %2145 = vrcp.f32 %v1610_v4 }
 0x28c   :  { %v2138_v10 = vpop.eup %2137  ;;  %v977_v24 = vpop.xlane.xlu1 %976 }
 0x28d   :  { %1656 = vperm.xlu1 %2048, %v2138_v10   ;;  %v1009_v23 = vadd.f32 %v977_v24, %v945_v19  ;;  %v2140_v26 = vpop.eup %2139  ;;  %v1037_v19 = vld [vmem:[#allocation4 + $0x10] sm:$0xff] }
 0x28e   :  { %v1612_v27 = vld [vmem:[#allocation3 + $0x30] sm:$0xff] }
 0x28f   :  { %1026 = vst.msk [vmem:[#allocation3 + $0x38] sm:$0xff] %vm22_vm2, %v1009_v23  ;;  %2147 = vrcp.f32 %v1612_v27 }
 0x290   :  { %v980_v51 = vpop.xlane.xlu0 %979  ;;  %v983_v5 = vpop.xlane.xlu1 %982 }
 0x291   :  { %v2142_v38 = vpop.eup %2141  ;;  %1666 = vperm.xlu1 %2048, %v2140_v26   ;;  %v1010_v41 = vadd.f32 %v980_v51, %v946_v33  ;;  %v1011_v52 = vadd.f32 %v983_v5, %v947_v35  ;;  %v1038_v51 = vld [vmem:[#allocation4 + $0x18] sm:$0xff] }
 0x292   :  { %1661 = vperm.xlu0 %2047, %v2142_v38   ;;  %v1611_v15 = vld [vmem:[#allocation3 + $0x28] sm:$0xff] }
 0x293   :  { %1027 = vst.msk [vmem:[#allocation3 + $0x40] sm:$0xff] %vm22_vm2, %v1010_v41  ;;  %1028 = vst.msk [vmem:[#allocation3 + $0x48] sm:$0xff] %vm22_vm2, %v1011_v52  ;;  %2149 = vrcp.f32 %v1611_v15 }
 0x294   :  { %v2144_v8 = vpop.eup %2143  ;;  %v986_v22 = vpop.xlane.xlu0 %985 }
 0x295   :  { %v989_v60 = vpop.xlane.xlu1 %988  ;;  %v1012_v55 = vadd.f32 %v986_v22, %v948_v42 }
 0x296   :  { %v1013_v56 = vadd.f32 %v989_v60, %v949_v49  ;;  %1671 = vperm.xlu0 %2047, %v2144_v8   ;;  %v1613_v3 = vld [vmem:[#allocation3 + $0x38] sm:$0xff] }
 0x297   :  { %1029 = vst.msk [vmem:[#allocation3 + $0x50] sm:$0xff] %vm22_vm2, %v1012_v55  ;;  %2151 = vrcp.f32 %v1613_v3 }
 0x298   :  { %1030 = vst.msk [vmem:[#allocation3 + $0x58] sm:$0xff] %vm22_vm2, %v1013_v56  ;;  %v2146_v46 = vpop.eup %2145  ;;  %v992_v58 = vpop.xlane.xlu0 %991  ;;  %v1039_v56 = vld [vmem:[#allocation4 + $0x20] sm:$0xff] }
 0x299   :  { %v995_v6 = vpop.xlane.xlu1 %994  ;;  %v1014_v30 = vadd.f32 %v992_v58, %v950_v14  ;;  %1676 = vperm.xlu1 %2048, %v2146_v46   ;;  %v1041_v46 = vld [vmem:[#allocation4 + $0x30] sm:$0xff] }
 0x29a   :  { %v1015_v32 = vadd.f32 %v995_v6, %v951_v21  ;;  %v1614_v7 = vld [vmem:[#allocation3 + $0x40] sm:$0xff]  ;;  %v1615_v43 = vld [vmem:[#allocation3 + $0x48] sm:$0xff] }
 0x29b   :  { %1031 = vst.msk [vmem:[#allocation3 + $0x60] sm:$0xff] %vm22_vm2, %v1014_v30  ;;  %2153 = vrcp.f32 %v1614_v7  ;;  %v1040_v21 = vld [vmem:[#allocation4 + $0x28] sm:$0xff] }
 0x29c   :  { %1032 = vst.msk [vmem:[#allocation3 + $0x68] sm:$0xff] %vm22_vm2, %v1015_v32  ;;  %v2148_v45 = vpop.eup %2147  ;;  %v998_v18 = vpop.xlane.xlu0 %997  ;;  %2155 = vrcp.f32 %v1615_v43  ;;  %v1042_v43 = vld [vmem:[#allocation4 + $0x38] sm:$0xff] }
 0x29d   :  { %v1001_v34 = vpop.xlane.xlu1 %1000  ;;  %v1016_v25 = vadd.f32 %v998_v18, %v952_v2  ;;  %1686 = vperm.xlu1 %2048, %v2148_v45   ;;  %v1043_v2 = vld [vmem:[#allocation4 + $0x40] sm:$0xff] }
 0x29e   :  { %v1017_v0 = vadd.f32 %v1001_v34, %v953_v29  ;;  %v1616_v31 = vld [vmem:[#allocation3 + $0x50] sm:$0xff] }
 0x29f   :  { %v1617_v53 = vld [vmem:[#allocation3 + $0x58] sm:$0xff]  ;;  %1033 = vst.msk [vmem:[#allocation3 + $0x70] sm:$0xff] %vm22_vm2, %v1016_v25  ;;  %2157 = vrcp.f32 %v1616_v31 }
 0x2a0   :  { %1034 = vst.msk [vmem:[#allocation3 + $0x78] sm:$0xff] %vm22_vm2, %v1017_v0  ;;  %v2150_v36 = vpop.eup %2149  ;;  %2159 = vrcp.f32 %v1617_v53 }
 0x2a1   :  { %1681 = vperm.xlu0 %2047, %v2150_v36   ;;  %v1059_v1 = vpop.permute.xlu1 %1058 }
 0x2a2   :  { %v1618_v61 = vld [vmem:[#allocation3 + $0x60] sm:$0xff]  ;;  %v1132_v38 = vmul.f32 %v1059_v1, %v1036_v44 }
 0x2a3   :  { %v1619_v28 = vld [vmem:[#allocation3 + $0x68] sm:$0xff]  ;;  %2161 = vrcp.f32 %v1618_v61 }
 0x2a4   :  { %v2152_v54 = vpop.eup %2151  ;;  %2163 = vrcp.f32 %v1619_v28  ;;  %v1054_v63 = vpop.permute.xlu0 %1053  ;;  %v1044_v61 = vld [vmem:[#allocation4 + $0x48] sm:$0xff]  ;;  %v1045_v28 = vld [vmem:[#allocation4 + $0x50] sm:$0xff] }
 0x2a5   :  { %1691 = vperm.xlu0 %2047, %v2152_v54   ;;  %v1064_v57 = vpop.permute.xlu1 %1063  ;;  %v1131_v10 = vmul.f32 %v1054_v63, %v1035_v16  ;;  %v1047_v16 = vld [vmem:[#allocation4 + $0x60] sm:$0xff] }
 0x2a6   :  { %v1620_v9 = vld [vmem:[#allocation3 + $0x70] sm:$0xff]  ;;  %v1133_v26 = vmul.f32 %v1064_v57, %v1037_v19 }
 0x2a7   :  { %v1621_v12 = vld [vmem:[#allocation3 + $0x78] sm:$0xff]  ;;  %2165 = vrcp.f32 %v1620_v9 }
 0x2a8   :  { %v2154_v39 = vpop.eup %2153  ;;  %2167 = vrcp.f32 %v1621_v12  ;;  %v1069_v40 = vpop.permute.xlu0 %1068 }
 0x2a9   :  { %v2156_v59 = vpop.eup %2155  ;;  %1696 = vperm.xlu1 %2048, %v2154_v39   ;;  %v1074_v17 = vpop.permute.xlu1 %1073  ;;  %v1134_v49 = vmul.f32 %v1069_v40, %v1038_v51 }
 0x2aa   :  { %1701 = vperm.xlu0 %2047, %v2156_v59   ;;  %v1135_v14 = vmul.f32 %v1074_v17, %v1039_v56 }
 0x2ac   :  { %v2158_v62 = vpop.eup %2157  ;;  %v1079_v48 = vpop.permute.xlu0 %1078 }
 0x2ad   :  { %v2160_v11 = vpop.eup %2159  ;;  %1706 = vperm.xlu1 %2048, %v2158_v62   ;;  %v1084_v8 = vpop.permute.xlu1 %1083  ;;  %v1136_v30 = vmul.f32 %v1079_v48, %v1040_v21 }
 0x2ae   :  { %1711 = vperm.xlu0 %2047, %v2160_v11   ;;  %v1137_v32 = vmul.f32 %v1084_v8, %v1041_v46  ;;  %v1046_v11 = vld [vmem:[#allocation4 + $0x58] sm:$0xff] }
 0x2b0   :  { %v2162_v4 = vpop.eup %2161  ;;  %v1198_v23 = vpop.f32.mrf.mxu0 }
 0x2b1   :  { %v2164_v24 = vpop.eup %2163  ;;  %1716 = vperm.xlu1 %2048, %v2162_v4   ;;  %v1555_v27 = vadd.f32 %v1198_v23, %v1131_v10  ;;  %v1089_v55 = vpop.permute.xlu0 %1088 }
 0x2b2   :  { %1721 = vperm.xlu0 %2047, %v2164_v24   ;;  %v1999_v33 = vpop.f32.mrf.mxu0  ;;  %v1094_v3 = vpop.permute.xlu1 %1093  ;;  %v1138_v31 = vmul.f32 %v1089_v55, %v1042_v43 }
 0x2b3   :  { %1571 = vst.msk [vmem:[#allocation4] sm:$0xff] %vm55_vm0, %v1555_v27  ;;  %v1139_v53 = vmul.f32 %v1094_v3, %v1043_v2  ;;  %v1048_v33 = vld [vmem:[#allocation4 + $0x68] sm:$0xff] }
 0x2b4   :  { %v2166_v35 = vpop.eup %2165  ;;  %v1248_v5 = vpop.f32.mrf.mxu1 }
 0x2b5   :  { %v2168_v37 = vpop.eup %2167  ;;  %v1557_v41 = vadd.f32 %v1248_v5, %v1133_v26  ;;  %v1201_v52 = vpop.f32.mrf.mxu0  ;;  %1726 = vperm.xlu1 %2048, %v2166_v35   ;;  %v1049_v35 = vld [vmem:[#allocation4 + $0x70] sm:$0xff] }
 0x2b6   :  { %v1556_v15 = vadd.f32 %v1201_v52, %v1132_v38  ;;  %1731 = vperm.xlu0 %2047, %v2168_v37   ;;  %v2005_v42 = vpop.f32.mrf.mxu1  ;;  %v1099_v6 = vpop.permute.xlu0 %1098 }
 0x2b7   :  { %1573 = vst.msk [vmem:[#allocation4 + $0x10] sm:$0xff] %vm55_vm0, %v1557_v41  ;;  %v2000_v22 = vpop.f32.mrf.mxu0  ;;  %v1104_v7 = vpop.permute.xlu1 %1103  ;;  %v1140_v57 = vmul.f32 %v1099_v6, %v1044_v61 }
 0x2b8   :  { %1572 = vst.msk [vmem:[#allocation4 + $0x8] sm:$0xff] %vm55_vm0, %v1556_v15  ;;  %v1251_v60 = vpop.f32.mrf.mxu1  ;;  %v1141_v62 = vmul.f32 %v1104_v7, %v1045_v28 }
 0x2b9   :  { %v1558_v47 = vadd.f32 %v1251_v60, %v1134_v49  ;;  %v1050_v49 = vld [vmem:[#allocation4 + $0x78] sm:$0xff] }
 0x2ba   :  { %v2006_v13 = vpop.f32.mrf.mxu1  ;;  %v1109_v36 = vpop.permute.xlu0 %1108 }
 0x2bb   :  { %1574 = vst.msk [vmem:[#allocation4 + $0x18] sm:$0xff] %vm55_vm0, %v1558_v47  ;;  %v1114_v9 = vpop.permute.xlu1 %1113  ;;  %v1142_v23 = vmul.f32 %v1109_v36, %v1046_v11 }
 0x2bc   :  { %v1143_v27 = vmul.f32 %v1114_v9, %v1047_v16 }
 0x2be   :  { %v1119_v10 = vpop.permute.xlu0 %1118 }
 0x2bf   :  { %v1124_v26 = vpop.permute.xlu1 %1123  ;;  %v1144_v52 = vmul.f32 %v1119_v10, %v1048_v33  ;;  %v1639_v7 = vld [vmem:[#allocation4 + $0x8] sm:$0xff] }
 0x2c0   :  { %v1298_v58 = vpop.f32.mrf.mxu0  ;;  %v1145_v15 = vmul.f32 %v1124_v26, %v1049_v35 }
 0x2c1   :  { %v1559_v50 = vadd.f32 %v1298_v58, %v1135_v14  ;;  %v1638_v58 = vld [vmem:[#allocation4] sm:$0xff] }
 0x2c2   :  { %v2011_v20 = vpop.f32.mrf.mxu0  ;;  %v1129_v42 = vpop.permute.xlu0 %1128 }
 0x2c3   :  { %1575 = vst.msk [vmem:[#allocation4 + $0x20] sm:$0xff] %vm55_vm0, %v1559_v50  ;;  %v1146_v56 = vmul.f32 %v1129_v42, %v1050_v49  ;;  %v1640_v20 = vld [vmem:[#allocation4 + $0x10] sm:$0xff] }
 0x2c4   :  { %v1301_v29 = vpop.f32.mrf.mxu0  ;;  %v1348_v45 = vpop.f32.mrf.mxu1 }
 0x2c5   :  { %v1560_v18 = vadd.f32 %v1301_v29, %v1136_v30  ;;  %v1561_v34 = vadd.f32 %v1348_v45, %v1137_v32 }
 0x2c6   :  { %v2012_v25 = vpop.f32.mrf.mxu0  ;;  %v2017_v0 = vpop.f32.mrf.mxu1 }
 0x2c7   :  { %1576 = vst.msk [vmem:[#allocation4 + $0x28] sm:$0xff] %vm55_vm0, %v1560_v18  ;;  %1577 = vst.msk [vmem:[#allocation4 + $0x30] sm:$0xff] %vm55_vm0, %v1561_v34  ;;  %v1641_v18 = vld [vmem:[#allocation4 + $0x18] sm:$0xff] }
 0x2c8   :  { %v1351_v54 = vpop.f32.mrf.mxu1  ;;  %v1398_v1 = vpop.f32.mrf.mxu0 }
 0x2c9   :  { %v1562_v12 = vadd.f32 %v1351_v54, %v1138_v31  ;;  %v1563_v39 = vadd.f32 %v1398_v1, %v1139_v53 }
 0x2ca   :  { %v2018_v59 = vpop.f32.mrf.mxu1  ;;  %v2023_v63 = vpop.f32.mrf.mxu0  ;;  %v1642_v53 = vld [vmem:[#allocation4 + $0x20] sm:$0xff] }
 0x2cb   :  { %1578 = vst.msk [vmem:[#allocation4 + $0x38] sm:$0xff] %vm55_vm0, %v1562_v12  ;;  %1579 = vst.msk [vmem:[#allocation4 + $0x40] sm:$0xff] %vm55_vm0, %v1563_v39 }
 0x2cc   :  { %v1401_v40 = vpop.f32.mrf.mxu0  ;;  %v1448_v4 = vpop.f32.mrf.mxu1 }
 0x2cd   :  { %v1564_v19 = vadd.f32 %v1401_v40, %v1140_v57  ;;  %v1565_v24 = vadd.f32 %v1448_v4, %v1141_v62 }
 0x2ce   :  { %v2024_v44 = vpop.f32.mrf.mxu0  ;;  %v2029_v17 = vpop.f32.mrf.mxu1  ;;  %v1644_v28 = vld [vmem:[#allocation4 + $0x30] sm:$0xff]  ;;  %v1643_v39 = vld [vmem:[#allocation4 + $0x28] sm:$0xff] }
 0x2cf   :  { %1580 = vst.msk [vmem:[#allocation4 + $0x48] sm:$0xff] %vm55_vm0, %v1564_v19  ;;  %1581 = vst.msk [vmem:[#allocation4 + $0x50] sm:$0xff] %vm55_vm0, %v1565_v24 }
 0x2d0   :  { %v1451_v38 = vpop.f32.mrf.mxu1  ;;  %v1498_v51 = vpop.f32.mrf.mxu0 }
 0x2d1   :  { %v1566_v5 = vadd.f32 %v1451_v38, %v1142_v23  ;;  %v1567_v37 = vadd.f32 %v1498_v51, %v1143_v27 }
 0x2d2   :  { %v2030_v48 = vpop.f32.mrf.mxu1  ;;  %v2035_v41 = vpop.f32.mrf.mxu0  ;;  %v1645_v57 = vld [vmem:[#allocation4 + $0x38] sm:$0xff]  ;;  %v1646_v4 = vld [vmem:[#allocation4 + $0x40] sm:$0xff] }
 0x2d3   :  { %1582 = vst.msk [vmem:[#allocation4 + $0x58] sm:$0xff] %vm55_vm0, %v1566_v5  ;;  %1583 = vst.msk [vmem:[#allocation4 + $0x60] sm:$0xff] %vm55_vm0, %v1567_v37 }
 0x2d4   :  { %v1501_v8 = vpop.f32.mrf.mxu0  ;;  %v1548_v22 = vpop.f32.mrf.mxu1 }
 0x2d5   :  { %v1568_v60 = vadd.f32 %v1501_v8, %v1144_v52  ;;  %v1569_v47 = vadd.f32 %v1548_v22, %v1145_v15 }
 0x2d6   :  { %v2036_v13 = vpop.f32.mrf.mxu0  ;;  %v2041_v55 = vpop.f32.mrf.mxu1  ;;  %v1647_v19 = vld [vmem:[#allocation4 + $0x48] sm:$0xff]  ;;  %v1648_v27 = vld [vmem:[#allocation4 + $0x50] sm:$0xff] }
 0x2d7   :  { %1584 = vst.msk [vmem:[#allocation4 + $0x68] sm:$0xff] %vm55_vm0, %v1568_v60  ;;  %1585 = vst.msk [vmem:[#allocation4 + $0x70] sm:$0xff] %vm55_vm0, %v1569_v47 }
 0x2d8   :  { %v1551_v3 = vpop.f32.mrf.mxu1 }
 0x2d9   :  { %v1570_v14 = vadd.f32 %v1551_v3, %v1146_v56 }
 0x2da   :  { %v2042_v21 = vpop.f32.mrf.mxu1  ;;  %v1649_v33 = vld [vmem:[#allocation4 + $0x58] sm:$0xff]  ;;  %v1650_v41 = vld [vmem:[#allocation4 + $0x60] sm:$0xff] }
 0x2db   :  { %1586 = vst.msk [vmem:[#allocation4 + $0x78] sm:$0xff] %vm55_vm0, %v1570_v14 }
 0x2de   :  { %v1651_v15 = vld [vmem:[#allocation4 + $0x68] sm:$0xff]  ;;  %v1652_v60 = vld [vmem:[#allocation4 + $0x70] sm:$0xff] }
 0x2e2   :  { %v1653_v13 = vld [vmem:[#allocation4 + $0x78] sm:$0xff] }
 0x308   :  { %v1657_v46 = vpop.permute.xlu1 %1656 }
 0x309   :  { %v1734_v6 = vmul.f32 %v1657_v46, %v1638_v58 }
 0x30b   :  { %v1899_v50 = vpack.c.bf16 %v1734_v6, %v1734_v6 }
 0x30c   :  { %v1667_v30 = vpop.permute.xlu1 %1666 }
 0x30d   :  { %1815 = vst.msk [vmem:[%s2890_s4] sm:$0xf] %vm1814_vm4, %v1899_v50  ;;  %v1662_v32 = vpop.permute.xlu0 %1661  ;;  %v1736_v43 = vmul.f32 %v1667_v30, %v1640_v20 }
 0x30e   :  { %v1735_v2 = vmul.f32 %v1662_v32, %v1639_v7 }
 0x30f   :  { %v1901_v29 = vpack.c.bf16 %v1736_v43, %v1736_v43 }
 0x310   :  { %v1900_v45 = vpack.c.bf16 %v1735_v2, %v1735_v2 }
 0x311   :  { %1817 = vst.msk [vmem:[%s2890_s4 + $0x8] sm:$0xf] %vm1814_vm4, %v1901_v29  ;;  %v1672_v34 = vpop.permute.xlu0 %1671 }
 0x312   :  { %1816 = vst.msk [vmem:[%s2890_s4 + $0x4] sm:$0xf] %vm1814_vm4, %v1900_v45  ;;  %v1737_v25 = vmul.f32 %v1672_v34, %v1641_v18 }
 0x314   :  { %v1902_v0 = vpack.c.bf16 %v1737_v25, %v1737_v25  ;;  %v1677_v31 = vpop.permute.xlu1 %1676 }
 0x315   :  { %v1738_v36 = vmul.f32 %v1677_v31, %v1642_v53 }
 0x316   :  { %1818 = vst.msk [vmem:[%s2890_s4 + $0xc] sm:$0xf] %vm1814_vm4, %v1902_v0 }
 0x317   :  { %v1903_v61 = vpack.c.bf16 %v1738_v36, %v1738_v36 }
 0x318   :  { %v1687_v54 = vpop.permute.xlu1 %1686 }
 0x319   :  { %1819 = vst.msk [vmem:[%s2890_s4 + $0x10] sm:$0xf] %vm1814_vm4, %v1903_v61  ;;  %v1740_v1 = vmul.f32 %v1687_v54, %v1644_v28 }
 0x31b   :  { %v1905_v9 = vpack.c.bf16 %v1740_v1, %v1740_v1 }
 0x31c   :  { %v1682_v12 = vpop.permute.xlu0 %1681 }
 0x31d   :  { %1821 = vst.msk [vmem:[%s2890_s4 + $0x18] sm:$0xf] %vm1814_vm4, %v1905_v9  ;;  %v1739_v59 = vmul.f32 %v1682_v12, %v1643_v39 }
 0x31f   :  { %v1904_v63 = vpack.c.bf16 %v1739_v59, %v1739_v59 }
 0x320   :  { %v1692_v62 = vpop.permute.xlu0 %1691 }
 0x321   :  { %1820 = vst.msk [vmem:[%s2890_s4 + $0x14] sm:$0xf] %vm1814_vm4, %v1904_v63  ;;  %v1741_v11 = vmul.f32 %v1692_v62, %v1645_v57 }
 0x323   :  { %v1906_v16 = vpack.c.bf16 %v1741_v11, %v1741_v11 }
 0x324   :  { %v1697_v40 = vpop.permute.xlu1 %1696 }
 0x325   :  { %1822 = vst.msk [vmem:[%s2890_s4 + $0x1c] sm:$0xf] %vm1814_vm4, %v1906_v16  ;;  %v1702_v10 = vpop.permute.xlu0 %1701  ;;  %v1742_v24 = vmul.f32 %v1697_v40, %v1646_v4 }
 0x326   :  { %v1743_v44 = vmul.f32 %v1702_v10, %v1647_v19 }
 0x327   :  { %v1907_v17 = vpack.c.bf16 %v1742_v24, %v1742_v24 }
 0x328   :  { %v1908_v23 = vpack.c.bf16 %v1743_v44, %v1743_v44  ;;  %v1707_v26 = vpop.permute.xlu1 %1706 }
 0x329   :  { %1823 = vst.msk [vmem:[%s2890_s4 + $0x20] sm:$0xf] %vm1814_vm4, %v1907_v17  ;;  %v1712_v35 = vpop.permute.xlu0 %1711  ;;  %v1744_v38 = vmul.f32 %v1707_v26, %v1648_v27 }
 0x32a   :  { %1824 = vst.msk [vmem:[%s2890_s4 + $0x24] sm:$0xf] %vm1814_vm4, %v1908_v23  ;;  %v1745_v51 = vmul.f32 %v1712_v35, %v1649_v33 }
 0x32b   :  { %v1909_v5 = vpack.c.bf16 %v1744_v38, %v1744_v38 }
 0x32c   :  { %v1910_v37 = vpack.c.bf16 %v1745_v51, %v1745_v51  ;;  %v1717_v48 = vpop.permute.xlu1 %1716 }
 0x32d   :  { %1825 = vst.msk [vmem:[%s2890_s4 + $0x28] sm:$0xf] %vm1814_vm4, %v1909_v5  ;;  %v1722_v52 = vpop.permute.xlu0 %1721  ;;  %v1746_v42 = vmul.f32 %v1717_v48, %v1650_v41 }
 0x32e   :  { %1826 = vst.msk [vmem:[%s2890_s4 + $0x2c] sm:$0xf] %vm1814_vm4, %v1910_v37  ;;  %v1747_v49 = vmul.f32 %v1722_v52, %v1651_v15 }
 0x32f   :  { %v1911_v8 = vpack.c.bf16 %v1746_v42, %v1746_v42 }
 0x330   :  { %v1912_v22 = vpack.c.bf16 %v1747_v49, %v1747_v49  ;;  %v1727_v47 = vpop.permute.xlu1 %1726 }
 0x331   :  { %1827 = vst.msk [vmem:[%s2890_s4 + $0x30] sm:$0xf] %vm1814_vm4, %v1911_v8  ;;  %v1732_v55 = vpop.permute.xlu0 %1731  ;;  %v1748_v56 = vmul.f32 %v1727_v47, %v1652_v60 }
 0x332   :  { %1828 = vst.msk [vmem:[%s2890_s4 + $0x34] sm:$0xf] %vm1814_vm4, %v1912_v22  ;;  %v1749_v3 = vmul.f32 %v1732_v55, %v1653_v13 }
 0x333   :  { %v1913_v14 = vpack.c.bf16 %v1748_v56, %v1748_v56 }
 0x334   :  { %v1914_v21 = vpack.c.bf16 %v1749_v3, %v1749_v3 }
 0x335   :  { %1829 = vst.msk [vmem:[%s2890_s4 + $0x38] sm:$0xf] %vm1814_vm4, %v1913_v14 }
 0x336   :  { %1830 = vst.msk [vmem:[%s2890_s4 + $0x3c] sm:$0xf] %vm1814_vm4, %v1914_v21 }

// kernel: snip_predictor_forward.13
= control target key start
LH: loop header
LB: loop body
LE: loop exit
PB: predicated region body
PF: predicated region fallthrough
CT: control target
= control target key end

     0   :  { %vm73_vm0 = vcmask 123904   ;;  %v33_v0 = vlaneseq  ;;  %v432_v9 = vmov 0.0   ;;  %vm433_vm1 = vmmov 0   ;;  %s553_s1 = inlined_call_operand.vmem [shape: f32[2,16], index: 1, kind: input, shape index: {}]   ;;  %s554_s2 = inlined_call_operand.vmem [shape: bf16[128,128], index: 2, kind: input, shape index: {}]   ;;  %s555_s4 = inlined_call_operand.vmem [shape: bf16[128,128], index: 4, kind: input, shape index: {}]   ;;  %s556_s0 = inlined_call_operand.vmem [shape: bf16[2,16,128], index: 0, kind: input, shape index: {}]   ;;  %s557_s3 = inlined_call_operand.vmem [shape: f32[1,128], index: 3, kind: input, shape index: {}]   ;;  %s558_s5 = inlined_call_operand.vmem [shape: f32[1,128], index: 5, kind: input, shape index: {}]   ;;  %s559_s6 = inlined_call_operand.vmem [shape: f32[2,128], index: 6, kind: output, shape index: {}]  }
   0x1   :  { %v32_v1 = vld [vmem:[%s553_s1] sm:$0x3]  ;;  %v412_v8 = vld [vmem:[%s554_s2 + $0x38] sm:$0xff]   ;;  %370 = vmatprep.subr.bf16.mxu0 %v432_v9  ;;  %390 = vmatprep.subr.bf16.mxu1 %v432_v9  ;;  %v413_v10 = vld [vmem:[%s554_s2 + $0x30] sm:$0xff]   ;;  %vm115_vm2 = vcmask 1041409  }
   0x2   :  { %v74_v2 = vsel %vm73_vm0, %v32_v1, 0.0  ;;  %v34_v3 = vshrl.u32 %v33_v0, 7  ;;  %371 = vmatpush3.bf16.msra.mxu0 %v412_v8  ;;  %v414_v11 = vld [vmem:[%s554_s2 + $0x28] sm:$0xff]   ;;  %v415_v12 = vld [vmem:[%s554_s2 + $0x20] sm:$0xff]   ;;  %v416_v13 = vld [vmem:[%s554_s2 + $0x18] sm:$0xff]   ;;  %386 = vmatprep.mubr.msk.bf16.mxu0 %vm433_vm1, %v432_v9 }
   0x3   :  { %75 = vadd.xlane.f32.xlu0 %v74_v2  ;;  %372 = vmatprep.subr.bf16.mxu0 %v432_v9  ;;  %v417_v14 = vld [vmem:[%s554_s2 + $0x10] sm:$0xff]   ;;  %v418_v15 = vld [vmem:[%s554_s2 + $0x8] sm:$0xff]   ;;  %v419_v16 = vld [vmem:[%s554_s2] sm:$0xff]  }
   0x4   :  { %v46_v4 = vsub.s32 1, %v34_v3  ;;  %v35_v5 = vsub.s32 0, %v34_v3  ;;  %406 = vmatprep.mubr.msk.bf16.mxu1 %vm433_vm1, %v432_v9  ;;  %v420_v17 = vld [vmem:[%s555_s4 + $0x38] sm:$0xff]   ;;  %v421_v18 = vld [vmem:[%s555_s4 + $0x30] sm:$0xff]   ;;  %v422_v19 = vld [vmem:[%s555_s4 + $0x28] sm:$0xff]  }
   0x5   :  { %391 = vmatpush3.bf16.msra.mxu1 %v420_v17  ;;  %v423_v20 = vld [vmem:[%s555_s4 + $0x20] sm:$0xff]   ;;  %v424_v21 = vld [vmem:[%s555_s4 + $0x18] sm:$0xff]   ;;  %v425_v22 = vld [vmem:[%s555_s4 + $0x10] sm:$0xff]  }
   0x6   :  { %v47_v6 = vrot.slane %v32_v1, %v46_v4  ;;  %v36_v7 = vrot.slane %v32_v1, %v35_v5  ;;  %373 = vmatpush3.bf16.msra.mxu0 %v413_v10  ;;  %392 = vmatprep.subr.bf16.mxu1 %v432_v9  ;;  %v344_v24 = vld [vmem:[%s556_s0] sm:$0xff]   ;;  %v351_v33 = vld [vmem:[%s556_s0 + $0x8] sm:$0xff]  }
   0x7   :  { %374 = vmatprep.subr.bf16.mxu0 %v432_v9  ;;  %v345_v25 = vunpack.c.l.bf16 %v344_v24  ;;  %v346_v27 = vunpack.c.h.bf16 %v344_v24  ;;  %v350_v35 = vunpack.c.h.bf16 %v351_v33  ;;  %v349_v37 = vunpack.c.l.bf16 %v351_v33  ;;  %v426_v0 = vld [vmem:[%s555_s4 + $0x8] sm:$0xff]   ;;  %v427_v1 = vld [vmem:[%s555_s4] sm:$0xff]  }
   0x8   :  { %53 = vbcast.lane.b32.xlu1 %v47_v6, 264  ;;  %v325_v2 = vld [vmem:[%s557_s3] ss:$0 sm:$0xff] }
   0x9   :  { %393 = vmatpush3.bf16.msra.mxu1 %v421_v18 }
   0xa   :  { %375 = vmatpush3.bf16.msra.mxu0 %v414_v11  ;;  %394 = vmatprep.subr.bf16.mxu1 %v432_v9 }
   0xb   :  { %376 = vmatprep.subr.bf16.mxu0 %v432_v9 }
   0xc   :  { %38 = vbcast.lane.b32.xlu1 %v36_v7, 256 }
   0xd   :  { %395 = vmatpush3.bf16.msra.mxu1 %v422_v19 }
   0xe   :  { %377 = vmatpush3.bf16.msra.mxu0 %v415_v12  ;;  %396 = vmatprep.subr.bf16.mxu1 %v432_v9 }
   0xf   :  { %378 = vmatprep.subr.bf16.mxu0 %v432_v9 }
  0x10   :  { %42 = vbcast.lane.b32.xlu1 %v36_v7, 264 }
  0x11   :  { %397 = vmatpush3.bf16.msra.mxu1 %v423_v20 }
  0x12   :  { %379 = vmatpush3.bf16.msra.mxu0 %v416_v13  ;;  %398 = vmatprep.subr.bf16.mxu1 %v432_v9 }
  0x13   :  { %380 = vmatprep.subr.bf16.mxu0 %v432_v9 }
  0x15   :  { %399 = vmatpush3.bf16.msra.mxu1 %v424_v21 }
  0x16   :  { %381 = vmatpush3.bf16.msra.mxu0 %v417_v14  ;;  %400 = vmatprep.subr.bf16.mxu1 %v432_v9 }
  0x17   :  { %382 = vmatprep.subr.bf16.mxu0 %v432_v9 }
  0x19   :  { %49 = vbcast.lane.b32.xlu0 %v47_v6, 256  ;;  %401 = vmatpush3.bf16.msra.mxu1 %v425_v22 }
  0x1a   :  { %383 = vmatpush3.bf16.msra.mxu0 %v418_v15  ;;  %402 = vmatprep.subr.bf16.mxu1 %v432_v9 }
  0x1b   :  { %384 = vmatprep.subr.bf16.mxu0 %v432_v9 }
  0x1d   :  { %403 = vmatpush3.bf16.msra.mxu1 %v426_v0 }
  0x1e   :  { %385 = vmatpush3.bf16.msra.mxu0 %v419_v16  ;;  %404 = vmatprep.subr.bf16.mxu1 %v432_v9  ;;  %v334_v9 = vld [vmem:[%s558_s5] ss:$0 sm:$0xff] }
  0x21   :  { %405 = vmatpush3.bf16.msra.mxu1 %v427_v1 }
  0x7a   :  { %v54_v23 = vpop.permute.xlu1 %53 }
  0x7b   :  { %v58_v40 = vmul.f32 %v350_v35, %v54_v23 }
  0x7e   :  { %v39_v26 = vpop.permute.xlu1 %38 }
  0x7f   :  { %v55_v28 = vmul.f32 %v345_v25, %v39_v26 }
  0x82   :  { %v43_v29 = vpop.permute.xlu1 %42 }
  0x83   :  { %v56_v30 = vmul.f32 %v346_v27, %v43_v29 }
  0x85   :  { %v59_v31 = vadd.f32 %v56_v30, %v55_v28 }
  0x87   :  { %v60_v32 = vrot.slane %v59_v31, 4 }
  0x89   :  { %v61_v36 = vadd.f32 %v60_v32, %v59_v31 }
  0x8b   :  { %v62_v41 = vrot.slane %v61_v36, 2 }
  0x8c   :  { %v76_v34 = vpop.xlane.xlu0 %75 }
  0x8d   :  { %v78_v38 = vrot.slane %v76_v34, 1  ;;  %428 = vrcp.f32 %v76_v34  ;;  %v63_v44 = vadd.f32 %v62_v41, %v61_v36 }
  0x8f   :  { %430 = vrcp.f32 %v78_v38  ;;  %v64_v47 = vrot.slane %v63_v44, 1 }
  0x90   :  { %v50_v39 = vpop.permute.xlu0 %49 }
  0x91   :  { %v57_v42 = vmul.f32 %v349_v37, %v50_v39  ;;  %v65_v51 = vadd.f32 %v64_v47, %v63_v44 }
  0x93   :  { %v66_v43 = vadd.f32 %v58_v40, %v57_v42 }
  0x95   :  { %v67_v45 = vrot.slane %v66_v43, 4 }
  0x97   :  { %v68_v46 = vadd.f32 %v67_v45, %v66_v43 }
  0x99   :  { %v69_v48 = vrot.slane %v68_v46, 2 }
  0x9a   :  { %v429_v50 = vpop.eup %428 }
  0x9b   :  { %v70_v49 = vadd.f32 %v69_v48, %v68_v46  ;;  %v82_v54 = vmul.f32 %v429_v50, %v65_v51 }
  0x9c   :  { %v431_v55 = vpop.eup %430 }
  0x9d   :  { %v71_v52 = vrot.slane %v70_v49, 1  ;;  %v85_v57 = vpack.c.bf16 %v82_v54, %v82_v54 }
  0x9f   :  { %v72_v53 = vadd.f32 %v71_v52, %v70_v49  ;;  %v112_v60 = vunpack.c.l.b16 %v85_v57 }
  0xa1   :  { %v84_v56 = vmul.f32 %v431_v55, %v72_v53 }
  0xa3   :  { %v86_v58 = vpack.c.bf16 %v84_v56, %v84_v56 }
  0xa5   :  { %v113_v59 = vunpack.c.l.b16 %v86_v58 }
  0xa7   :  { %v114_v61 = vrot.slane %v113_v59, 7 }
  0xa9   :  { %v116_v62 = vsel %vm115_vm2, %v114_v61, %v112_v60 }
  0xaa   :  { %v117_v63 = vpack.c.b16 %v116_v62, %v116_v62 }
  0xac   :  { %387 = vmatmul.mubr.bf16.vlgmr.msra.gmra.mxu0 %v117_v63 }
 0x16c   :  { %v201_v3 = vpop.f32.mrf.mxu0 }
 0x16d   :  { %v202_v4 = vadd.f32 %v325_v2, %v201_v3 }
 0x16e   :  { %v388_v5 = vpop.f32.mrf.mxu0 }
 0x16f   :  { %v207_v6 = vmax.f32 %v202_v4, 0.0 }
 0x170   :  { %v204_v7 = vpop.f32.mrf.mxu0 }
 0x171   :  { %v208_v8 = vpack.c.bf16 %v207_v6, %v207_v6 }
 0x172   :  { %v389_v10 = vpop.f32.mrf.mxu0 }
 0x173   :  { %407 = vmatmul.mubr.bf16.vlgmr.msra.gmra.mxu1 %v208_v8 }
 0x233   :  { %v314_v11 = vpop.f32.mrf.mxu1 }
 0x234   :  { %v315_v12 = vadd.f32 %v334_v9, %v314_v11 }
 0x235   :  { %v408_v13 = vpop.f32.mrf.mxu1 }
 0x236   :  { %320 = vst [vmem:[%s559_s6] sm:$0x3] %v315_v12 }
 0x237   :  { %v317_v14 = vpop.f32.mrf.mxu1 }
 0x239   :  { %v409_v15 = vpop.f32.mrf.mxu1 }

</bundles_post_ra>
